<compile_context>
chip_gen: v6e
topology: v6e:2x2x1
jax: 0.10.0
libtpu: 0.0.40
codegen_flags: <defaults>
</compile_context>

<pallas_src>
import jax
import jax.numpy as jnp
from jax.experimental import pallas as pl
from jax.experimental.pallas import tpu as pltpu


# Static branch structure of RFB_modified: (1,k)/(k,1) separable convs followed by a
# 3x3 conv with dilation = k, for k in (3, 5, 7).  Kept OUT of the jitted pytree.
BRANCH_KS = (3, 5, 7)


# ----------------------------------------------------------------------------
# Pallas kernels
# ----------------------------------------------------------------------------
def _mm_bias_kernel(x_ref, w_ref, b_ref, o_ref):
    # One K-folded matmul per conv: (TM, K) @ (K, Cout) + bias (folded BN).
    y = jnp.dot(x_ref[...], w_ref[...], preferred_element_type=jnp.float32)
    o_ref[...] = (y + b_ref[...]).astype(o_ref.dtype)


def _mm_bias_add_relu_kernel(x_ref, res_ref, w_ref, b_ref, o_ref):
    # Fused conv_cat + conv_res residual add + final ReLU.
    y = jnp.dot(x_ref[...], w_ref[...], preferred_element_type=jnp.float32)
    o_ref[...] = jnp.maximum(y + b_ref[...] + res_ref[...], 0.0).astype(o_ref.dtype)


def _pick_tm(m):
    # Prefer 256-row M-tiles (>=2 grid steps at the demo size -> both TCs on v7x,
    # pipeline has something to hide DMA under); fall back to whatever divides M.
    for t in (256, 512, 128, 64, 32, 16, 8):
        if m % t == 0:
            return t
    return m


def conv_matmul(x, w, b):
    m, k = x.shape
    co = w.shape[1]
    tm = _pick_tm(m)
    return pl.pallas_call(
        _mm_bias_kernel,
        out_shape=jax.ShapeDtypeStruct((m, co), x.dtype),
        grid=(m // tm,),
        in_specs=[
            pl.BlockSpec((tm, k), lambda i: (i, 0)),
            pl.BlockSpec((k, co), lambda i: (0, 0)),
            pl.BlockSpec((1, co), lambda i: (0, 0)),
        ],
        out_specs=pl.BlockSpec((tm, co), lambda i: (i, 0)),
        compiler_params=pltpu.CompilerParams(dimension_semantics=("parallel",)),
    )(x, w, b)


def conv_matmul_add_relu(x, res, w, b):
    m, k = x.shape
    co = w.shape[1]
    tm = _pick_tm(m)
    return pl.pallas_call(
        _mm_bias_add_relu_kernel,
        out_shape=jax.ShapeDtypeStruct((m, co), x.dtype),
        grid=(m // tm,),
        in_specs=[
            pl.BlockSpec((tm, k), lambda i: (i, 0)),
            pl.BlockSpec((tm, co), lambda i: (i, 0)),
            pl.BlockSpec((k, co), lambda i: (0, 0)),
            pl.BlockSpec((1, co), lambda i: (0, 0)),
        ],
        out_specs=pl.BlockSpec((tm, co), lambda i: (i, 0)),
        compiler_params=pltpu.CompilerParams(dimension_semantics=("parallel",)),
    )(x, res, w, b)


# ----------------------------------------------------------------------------
# Host-side glue: lane-concatenated im2col (one K = taps*C matmul per conv)
# ----------------------------------------------------------------------------
def _im2col(img, offsets):
    # img: (N, H, W, C) -> (N*H*W, len(offsets)*C), taps concatenated on the lane axis.
    # `offsets` is a static Python list of (dy, dx) integer pairs.
    n, h, w, c = img.shape
    py = max(abs(dy) for dy, _ in offsets)
    px = max(abs(dx) for _, dx in offsets)
    xp = jnp.pad(img, ((0, 0), (py, py), (px, px), (0, 0)))
    cols = [
        xp[:, py + dy:py + dy + h, px + dx:px + dx + w, :].reshape(n * h * w, c)
        for dy, dx in offsets
    ]
    return jnp.concatenate(cols, axis=-1)


# ----------------------------------------------------------------------------
# Parameters: random conv weights with inference BatchNorm folded in.
# Weight layout: (taps*Cin, Cout), tap-major then Cin -- matches _im2col ordering.
# ----------------------------------------------------------------------------
def _rand_bn_conv(key, taps, cin, cout, eps=1e-5):
    ks = jax.random.split(key, 5)
    wscale = (1.0 / float(taps * cin)) ** 0.5
    w = wscale * jax.random.normal(ks[0], (taps * cin, cout), jnp.float32)
    gamma = 1.0 + 0.1 * jax.random.normal(ks[1], (cout,), jnp.float32)
    beta = 0.1 * jax.random.normal(ks[2], (cout,), jnp.float32)
    mean = 0.1 * jax.random.normal(ks[3], (cout,), jnp.float32)
    var = 1.0 + 0.1 * jnp.abs(jax.random.normal(ks[4], (cout,), jnp.float32))
    s = gamma / jnp.sqrt(var + eps)
    return w * s[None, :], (beta - mean * s)[None, :]


def make_params(in_c, out_c, key):
    keys = iter(jax.random.split(key, 16))

    # Five 1x1 convs over x (branch0, branch1/2/3 first conv, conv_res) fused:
    # weights concatenated on the output-channel axis -> one matmul.
    stem_ws, stem_bs = [], []
    for _ in range(5):
        w, b = _rand_bn_conv(next(keys), 1, in_c, out_c)
        stem_ws.append(w)
        stem_bs.append(b)
    stem_w = jnp.concatenate(stem_ws, axis=1)        # (in_c, 5*out_c)
    stem_b = jnp.concatenate(stem_bs, axis=1)        # (1, 5*out_c)

    # NOTE: kernel size / dilation (k, d) are NOT stored here -- they must remain
    # static Python ints (see BRANCH_KS), otherwise jit traces them to arrays.
    branches = []
    for k in BRANCH_KS:
        wa, ba = _rand_bn_conv(next(keys), k, out_c, out_c)   # (1,k), pad (0,k//2)
        wb, bb = _rand_bn_conv(next(keys), k, out_c, out_c)   # (k,1), pad (k//2,0)
        wc, bc = _rand_bn_conv(next(keys), 9, out_c, out_c)   # 3x3, dilation=k, pad=k
        branches.append(dict(wa=wa, ba=ba, wb=wb, bb=bb, wc=wc, bc=bc))

    cat_w, cat_b = _rand_bn_conv(next(keys), 9, 4 * out_c, out_c)  # conv_cat 3x3 pad 1

    return dict(stem_w=stem_w, stem_b=stem_b, branches=branches,
                cat_w=cat_w, cat_b=cat_b)


# ----------------------------------------------------------------------------
# RFB_modified forward
# ----------------------------------------------------------------------------
def rfb_forward(x, params, out_c):
    # x: NCHW (PyTorch convention)
    n, in_c, h, w = x.shape
    hw = h * w
    x_flat = jnp.transpose(x, (0, 2, 3, 1)).reshape(n * hw, in_c)

    # Fused 5-way 1x1 conv (+folded BN): one lane-dense (M, 5*out_c) matmul.
    stem = conv_matmul(x_flat, params["stem_w"], params["stem_b"])
    x0 = stem[:, 0 * out_c:1 * out_c]           # branch0 output
    res = stem[:, 4 * out_c:5 * out_c]          # conv_res output

    def run_branch(y, spec, k):
        d = k                                   # dilation equals separable kernel size
        r = k // 2
        # (1,k) conv, padding (0, r)
        taps = _im2col(y.reshape(n, h, w, out_c), [(0, j - r) for j in range(k)])
        y = conv_matmul(taps, spec["wa"], spec["ba"])
        # (k,1) conv, padding (r, 0)
        taps = _im2col(y.reshape(n, h, w, out_c), [(j - r, 0) for j in range(k)])
        y = conv_matmul(taps, spec["wb"], spec["bb"])
        # 3x3 conv, dilation=d, padding=d
        taps = _im2col(y.reshape(n, h, w, out_c),
                       [(dy * d, dx * d) for dy in (-1, 0, 1) for dx in (-1, 0, 1)])
        return conv_matmul(taps, spec["wc"], spec["bc"])

    outs = [x0]
    for i, (spec, k) in enumerate(zip(params["branches"], BRANCH_KS)):
        y_in = stem[:, (i + 1) * out_c:(i + 2) * out_c]
        outs.append(run_branch(y_in, spec, k))

    # conv_cat (3x3, pad 1) fused with conv_res residual add + final ReLU.
    xcat = jnp.concatenate(outs, axis=-1)                       # (M, 4*out_c)
    cat_taps = _im2col(xcat.reshape(n, h, w, 4 * out_c),
                       [(dy, dx) for dy in (-1, 0, 1) for dx in (-1, 0, 1)])
    out = conv_matmul_add_relu(cat_taps, res, params["cat_w"], params["cat_b"])

    out = out.reshape(n, h, w, out_c)
    return jnp.transpose(out, (0, 3, 1, 2))                     # back to NCHW


if __name__ == "__main__":
    key = jax.random.PRNGKey(0)
    k_x, k_p = jax.random.split(key)

    N, Cin, Cout, H, W = 2, 64, 32, 16, 16      # RFB_modified(in_channel=64, out_channel=32)
    x = jax.random.normal(k_x, (N, Cin, H, W), jnp.float32)
    params = make_params(Cin, Cout, k_p)

    fwd = jax.jit(rfb_forward, static_argnums=(2,))
    out = fwd(x, params, Cout)
    out = jax.block_until_ready(out)

    assert out.shape == (N, Cout, H, W)
    assert bool(jnp.all(jnp.isfinite(out)))
    assert bool(jnp.all(out >= 0.0))            # final ReLU
    print("KERNEL_OK")
</pallas_src>

<mosaic_0001>
module attributes {stable_mosaic.version = 11 : i64} {
  func.func @_mm_bias_kernel(%arg0: i32, %arg1: memref<256x64xf32, #tpu.memory_space<vmem>>, %arg2: memref<64x160xf32, #tpu.memory_space<vmem>>, %arg3: memref<1x160xf32, #tpu.memory_space<vmem>>, %arg4: memref<256x160xf32, #tpu.memory_space<vmem>>) attributes {dimension_semantics = [#tpu.dimension_semantics<parallel>], iteration_bounds = array<i64: 2>, scalar_prefetch = 0 : i64, scratch_operands = 0 : i64, tpu.core_type = #tpu.core_type<tc>, window_params = [{transform_indices = @transform_0, window_bounds = array<i64: 256, 64>}, {pipeline_mode = #tpu.pipeline_mode<synchronous>, transform_indices = @transform_1, window_bounds = array<i64: 64, 160>}, {pipeline_mode = #tpu.pipeline_mode<synchronous>, transform_indices = @transform_2, window_bounds = array<i64: 1, 160>}, {transform_indices = @transform_3, window_bounds = array<i64: 256, 160>}]} {
    %c0 = arith.constant 0 : index
    %c0_0 = arith.constant 0 : index
    %0 = vector.load %arg1[%c0, %c0_0] : memref<256x64xf32, #tpu.memory_space<vmem>>, vector<256x64xf32>
    %c0_1 = arith.constant 0 : index
    %c0_2 = arith.constant 0 : index
    %1 = vector.load %arg2[%c0_1, %c0_2] : memref<64x160xf32, #tpu.memory_space<vmem>>, vector<64x160xf32>
    %cst = arith.constant dense<0.000000e+00> : vector<256x160xf32>
    %2 = tpu.matmul %0, %1, %cst {dimension_numbers = #tpu.dot_dimension_numbers<[1], [0], [0], [1], [0, 0, 1, 1], [], []>} : vector<256x64xf32>, vector<64x160xf32>, vector<256x160xf32> -> vector<256x160xf32>
    %c0_3 = arith.constant 0 : index
    %c0_4 = arith.constant 0 : index
    %3 = vector.load %arg3[%c0_3, %c0_4] : memref<1x160xf32, #tpu.memory_space<vmem>>, vector<1x160xf32>
    %4 = vector.broadcast %3 : vector<1x160xf32> to vector<256x160xf32>
    %5 = arith.addf %2, %4 : vector<256x160xf32>
    %c0_5 = arith.constant 0 : index
    %c0_6 = arith.constant 0 : index
    %6 = vector.load %arg4[%c0_5, %c0_6] : memref<256x160xf32, #tpu.memory_space<vmem>>, vector<256x160xf32>
    tpu.vector_store %arg4[%c0_5, %c0_6], %5 {strides = array<i32>} : memref<256x160xf32, #tpu.memory_space<vmem>>, vector<256x160xf32>,
    return
  }
  func.func @transform_0(%arg0: i32) -> (i32, i32) {
    %c0_i32 = arith.constant 0 : i32
    %c0_i32_0 = arith.constant 0 : i32
    return %arg0, %c0_i32 : i32, i32
  }
  func.func @transform_1(%arg0: i32) -> (i32, i32) {
    %c0_i32 = arith.constant 0 : i32
    %c0_i32_0 = arith.constant 0 : i32
    %c0_i32_1 = arith.constant 0 : i32
    return %c0_i32, %c0_i32_0 : i32, i32
  }
  func.func @transform_2(%arg0: i32) -> (i32, i32) {
    %c0_i32 = arith.constant 0 : i32
    %c0_i32_0 = arith.constant 0 : i32
    %c0_i32_1 = arith.constant 0 : i32
    return %c0_i32, %c0_i32_0 : i32, i32
  }
  func.func @transform_3(%arg0: i32) -> (i32, i32) {
    %c0_i32 = arith.constant 0 : i32
    %c0_i32_0 = arith.constant 0 : i32
    return %arg0, %c0_i32 : i32, i32
  }
}

module attributes {stable_mosaic.version = 11 : i64} {
  func.func @_mm_bias_kernel(%arg0: i32, %arg1: memref<256x96xf32, #tpu.memory_space<vmem>>, %arg2: memref<96x32xf32, #tpu.memory_space<vmem>>, %arg3: memref<1x32xf32, #tpu.memory_space<vmem>>, %arg4: memref<256x32xf32, #tpu.memory_space<vmem>>) attributes {dimension_semantics = [#tpu.dimension_semantics<parallel>], iteration_bounds = array<i64: 2>, scalar_prefetch = 0 : i64, scratch_operands = 0 : i64, tpu.core_type = #tpu.core_type<tc>, window_params = [{transform_indices = @transform_0, window_bounds = array<i64: 256, 96>}, {pipeline_mode = #tpu.pipeline_mode<synchronous>, transform_indices = @transform_1, window_bounds = array<i64: 96, 32>}, {pipeline_mode = #tpu.pipeline_mode<synchronous>, transform_indices = @transform_2, window_bounds = array<i64: 1, 32>}, {transform_indices = @transform_3, window_bounds = array<i64: 256, 32>}]} {
    %c0 = arith.constant 0 : index
    %c0_0 = arith.constant 0 : index
    %0 = vector.load %arg1[%c0, %c0_0] : memref<256x96xf32, #tpu.memory_space<vmem>>, vector<256x96xf32>
    %c0_1 = arith.constant 0 : index
    %c0_2 = arith.constant 0 : index
    %1 = vector.load %arg2[%c0_1, %c0_2] : memref<96x32xf32, #tpu.memory_space<vmem>>, vector<96x32xf32>
    %cst = arith.constant dense<0.000000e+00> : vector<256x32xf32>
    %2 = tpu.matmul %0, %1, %cst {dimension_numbers = #tpu.dot_dimension_numbers<[1], [0], [0], [1], [0, 0, 1, 1], [], []>} : vector<256x96xf32>, vector<96x32xf32>, vector<256x32xf32> -> vector<256x32xf32>
    %c0_3 = arith.constant 0 : index
    %c0_4 = arith.constant 0 : index
    %3 = vector.load %arg3[%c0_3, %c0_4] : memref<1x32xf32, #tpu.memory_space<vmem>>, vector<1x32xf32>
    %4 = vector.broadcast %3 : vector<1x32xf32> to vector<256x32xf32>
    %5 = arith.addf %2, %4 : vector<256x32xf32>
    %c0_5 = arith.constant 0 : index
    %c0_6 = arith.constant 0 : index
    %6 = vector.load %arg4[%c0_5, %c0_6] : memref<256x32xf32, #tpu.memory_space<vmem>>, vector<256x32xf32>
    tpu.vector_store %arg4[%c0_5, %c0_6], %5 {strides = array<i32>} : memref<256x32xf32, #tpu.memory_space<vmem>>, vector<256x32xf32>,
    return
  }
  func.func @transform_0(%arg0: i32) -> (i32, i32) {
    %c0_i32 = arith.constant 0 : i32
    %c0_i32_0 = arith.constant 0 : i32
    return %arg0, %c0_i32 : i32, i32
  }
  func.func @transform_1(%arg0: i32) -> (i32, i32) {
    %c0_i32 = arith.constant 0 : i32
    %c0_i32_0 = arith.constant 0 : i32
    %c0_i32_1 = arith.constant 0 : i32
    return %c0_i32, %c0_i32_0 : i32, i32
  }
  func.func @transform_2(%arg0: i32) -> (i32, i32) {
    %c0_i32 = arith.constant 0 : i32
    %c0_i32_0 = arith.constant 0 : i32
    %c0_i32_1 = arith.constant 0 : i32
    return %c0_i32, %c0_i32_0 : i32, i32
  }
  func.func @transform_3(%arg0: i32) -> (i32, i32) {
    %c0_i32 = arith.constant 0 : i32
    %c0_i32_0 = arith.constant 0 : i32
    return %arg0, %c0_i32 : i32, i32
  }
}

module attributes {stable_mosaic.version = 11 : i64} {
  func.func @_mm_bias_kernel(%arg0: i32, %arg1: memref<256x288xf32, #tpu.memory_space<vmem>>, %arg2: memref<288x32xf32, #tpu.memory_space<vmem>>, %arg3: memref<1x32xf32, #tpu.memory_space<vmem>>, %arg4: memref<256x32xf32, #tpu.memory_space<vmem>>) attributes {dimension_semantics = [#tpu.dimension_semantics<parallel>], iteration_bounds = array<i64: 2>, scalar_prefetch = 0 : i64, scratch_operands = 0 : i64, tpu.core_type = #tpu.core_type<tc>, window_params = [{transform_indices = @transform_0, window_bounds = array<i64: 256, 288>}, {pipeline_mode = #tpu.pipeline_mode<synchronous>, transform_indices = @transform_1, window_bounds = array<i64: 288, 32>}, {pipeline_mode = #tpu.pipeline_mode<synchronous>, transform_indices = @transform_2, window_bounds = array<i64: 1, 32>}, {transform_indices = @transform_3, window_bounds = array<i64: 256, 32>}]} {
    %c0 = arith.constant 0 : index
    %c0_0 = arith.constant 0 : index
    %0 = vector.load %arg1[%c0, %c0_0] : memref<256x288xf32, #tpu.memory_space<vmem>>, vector<256x288xf32>
    %c0_1 = arith.constant 0 : index
    %c0_2 = arith.constant 0 : index
    %1 = vector.load %arg2[%c0_1, %c0_2] : memref<288x32xf32, #tpu.memory_space<vmem>>, vector<288x32xf32>
    %cst = arith.constant dense<0.000000e+00> : vector<256x32xf32>
    %2 = tpu.matmul %0, %1, %cst {dimension_numbers = #tpu.dot_dimension_numbers<[1], [0], [0], [1], [0, 0, 1, 1], [], []>} : vector<256x288xf32>, vector<288x32xf32>, vector<256x32xf32> -> vector<256x32xf32>
    %c0_3 = arith.constant 0 : index
    %c0_4 = arith.constant 0 : index
    %3 = vector.load %arg3[%c0_3, %c0_4] : memref<1x32xf32, #tpu.memory_space<vmem>>, vector<1x32xf32>
    %4 = vector.broadcast %3 : vector<1x32xf32> to vector<256x32xf32>
    %5 = arith.addf %2, %4 : vector<256x32xf32>
    %c0_5 = arith.constant 0 : index
    %c0_6 = arith.constant 0 : index
    %6 = vector.load %arg4[%c0_5, %c0_6] : memref<256x32xf32, #tpu.memory_space<vmem>>, vector<256x32xf32>
    tpu.vector_store %arg4[%c0_5, %c0_6], %5 {strides = array<i32>} : memref<256x32xf32, #tpu.memory_space<vmem>>, vector<256x32xf32>,
    return
  }
  func.func @transform_0(%arg0: i32) -> (i32, i32) {
    %c0_i32 = arith.constant 0 : i32
    %c0_i32_0 = arith.constant 0 : i32
    return %arg0, %c0_i32 : i32, i32
  }
  func.func @transform_1(%arg0: i32) -> (i32, i32) {
    %c0_i32 = arith.constant 0 : i32
    %c0_i32_0 = arith.constant 0 : i32
    %c0_i32_1 = arith.constant 0 : i32
    return %c0_i32, %c0_i32_0 : i32, i32
  }
  func.func @transform_2(%arg0: i32) -> (i32, i32) {
    %c0_i32 = arith.constant 0 : i32
    %c0_i32_0 = arith.constant 0 : i32
    %c0_i32_1 = arith.constant 0 : i32
    return %c0_i32, %c0_i32_0 : i32, i32
  }
  func.func @transform_3(%arg0: i32) -> (i32, i32) {
    %c0_i32 = arith.constant 0 : i32
    %c0_i32_0 = arith.constant 0 : i32
    return %arg0, %c0_i32 : i32, i32
  }
}

module attributes {stable_mosaic.version = 11 : i64} {
  func.func @_mm_bias_kernel(%arg0: i32, %arg1: memref<256x160xf32, #tpu.memory_space<vmem>>, %arg2: memref<160x32xf32, #tpu.memory_space<vmem>>, %arg3: memref<1x32xf32, #tpu.memory_space<vmem>>, %arg4: memref<256x32xf32, #tpu.memory_space<vmem>>) attributes {dimension_semantics = [#tpu.dimension_semantics<parallel>], iteration_bounds = array<i64: 2>, scalar_prefetch = 0 : i64, scratch_operands = 0 : i64, tpu.core_type = #tpu.core_type<tc>, window_params = [{transform_indices = @transform_0, window_bounds = array<i64: 256, 160>}, {pipeline_mode = #tpu.pipeline_mode<synchronous>, transform_indices = @transform_1, window_bounds = array<i64: 160, 32>}, {pipeline_mode = #tpu.pipeline_mode<synchronous>, transform_indices = @transform_2, window_bounds = array<i64: 1, 32>}, {transform_indices = @transform_3, window_bounds = array<i64: 256, 32>}]} {
    %c0 = arith.constant 0 : index
    %c0_0 = arith.constant 0 : index
    %0 = vector.load %arg1[%c0, %c0_0] : memref<256x160xf32, #tpu.memory_space<vmem>>, vector<256x160xf32>
    %c0_1 = arith.constant 0 : index
    %c0_2 = arith.constant 0 : index
    %1 = vector.load %arg2[%c0_1, %c0_2] : memref<160x32xf32, #tpu.memory_space<vmem>>, vector<160x32xf32>
    %cst = arith.constant dense<0.000000e+00> : vector<256x32xf32>
    %2 = tpu.matmul %0, %1, %cst {dimension_numbers = #tpu.dot_dimension_numbers<[1], [0], [0], [1], [0, 0, 1, 1], [], []>} : vector<256x160xf32>, vector<160x32xf32>, vector<256x32xf32> -> vector<256x32xf32>
    %c0_3 = arith.constant 0 : index
    %c0_4 = arith.constant 0 : index
    %3 = vector.load %arg3[%c0_3, %c0_4] : memref<1x32xf32, #tpu.memory_space<vmem>>, vector<1x32xf32>
    %4 = vector.broadcast %3 : vector<1x32xf32> to vector<256x32xf32>
    %5 = arith.addf %2, %4 : vector<256x32xf32>
    %c0_5 = arith.constant 0 : index
    %c0_6 = arith.constant 0 : index
    %6 = vector.load %arg4[%c0_5, %c0_6] : memref<256x32xf32, #tpu.memory_space<vmem>>, vector<256x32xf32>
    tpu.vector_store %arg4[%c0_5, %c0_6], %5 {strides = array<i32>} : memref<256x32xf32, #tpu.memory_space<vmem>>, vector<256x32xf32>,
    return
  }
  func.func @transform_0(%arg0: i32) -> (i32, i32) {
    %c0_i32 = arith.constant 0 : i32
    %c0_i32_0 = arith.constant 0 : i32
    return %arg0, %c0_i32 : i32, i32
  }
  func.func @transform_1(%arg0: i32) -> (i32, i32) {
    %c0_i32 = arith.constant 0 : i32
    %c0_i32_0 = arith.constant 0 : i32
    %c0_i32_1 = arith.constant 0 : i32
    return %c0_i32, %c0_i32_0 : i32, i32
  }
  func.func @transform_2(%arg0: i32) -> (i32, i32) {
    %c0_i32 = arith.constant 0 : i32
    %c0_i32_0 = arith.constant 0 : i32
    %c0_i32_1 = arith.constant 0 : i32
    return %c0_i32, %c0_i32_0 : i32, i32
  }
  func.func @transform_3(%arg0: i32) -> (i32, i32) {
    %c0_i32 = arith.constant 0 : i32
    %c0_i32_0 = arith.constant 0 : i32
    return %arg0, %c0_i32 : i32, i32
  }
}

module attributes {stable_mosaic.version = 11 : i64} {
  func.func @_mm_bias_kernel(%arg0: i32, %arg1: memref<256x224xf32, #tpu.memory_space<vmem>>, %arg2: memref<224x32xf32, #tpu.memory_space<vmem>>, %arg3: memref<1x32xf32, #tpu.memory_space<vmem>>, %arg4: memref<256x32xf32, #tpu.memory_space<vmem>>) attributes {dimension_semantics = [#tpu.dimension_semantics<parallel>], iteration_bounds = array<i64: 2>, scalar_prefetch = 0 : i64, scratch_operands = 0 : i64, tpu.core_type = #tpu.core_type<tc>, window_params = [{transform_indices = @transform_0, window_bounds = array<i64: 256, 224>}, {pipeline_mode = #tpu.pipeline_mode<synchronous>, transform_indices = @transform_1, window_bounds = array<i64: 224, 32>}, {pipeline_mode = #tpu.pipeline_mode<synchronous>, transform_indices = @transform_2, window_bounds = array<i64: 1, 32>}, {transform_indices = @transform_3, window_bounds = array<i64: 256, 32>}]} {
    %c0 = arith.constant 0 : index
    %c0_0 = arith.constant 0 : index
    %0 = vector.load %arg1[%c0, %c0_0] : memref<256x224xf32, #tpu.memory_space<vmem>>, vector<256x224xf32>
    %c0_1 = arith.constant 0 : index
    %c0_2 = arith.constant 0 : index
    %1 = vector.load %arg2[%c0_1, %c0_2] : memref<224x32xf32, #tpu.memory_space<vmem>>, vector<224x32xf32>
    %cst = arith.constant dense<0.000000e+00> : vector<256x32xf32>
    %2 = tpu.matmul %0, %1, %cst {dimension_numbers = #tpu.dot_dimension_numbers<[1], [0], [0], [1], [0, 0, 1, 1], [], []>} : vector<256x224xf32>, vector<224x32xf32>, vector<256x32xf32> -> vector<256x32xf32>
    %c0_3 = arith.constant 0 : index
    %c0_4 = arith.constant 0 : index
    %3 = vector.load %arg3[%c0_3, %c0_4] : memref<1x32xf32, #tpu.memory_space<vmem>>, vector<1x32xf32>
    %4 = vector.broadcast %3 : vector<1x32xf32> to vector<256x32xf32>
    %5 = arith.addf %2, %4 : vector<256x32xf32>
    %c0_5 = arith.constant 0 : index
    %c0_6 = arith.constant 0 : index
    %6 = vector.load %arg4[%c0_5, %c0_6] : memref<256x32xf32, #tpu.memory_space<vmem>>, vector<256x32xf32>
    tpu.vector_store %arg4[%c0_5, %c0_6], %5 {strides = array<i32>} : memref<256x32xf32, #tpu.memory_space<vmem>>, vector<256x32xf32>,
    return
  }
  func.func @transform_0(%arg0: i32) -> (i32, i32) {
    %c0_i32 = arith.constant 0 : i32
    %c0_i32_0 = arith.constant 0 : i32
    return %arg0, %c0_i32 : i32, i32
  }
  func.func @transform_1(%arg0: i32) -> (i32, i32) {
    %c0_i32 = arith.constant 0 : i32
    %c0_i32_0 = arith.constant 0 : i32
    %c0_i32_1 = arith.constant 0 : i32
    return %c0_i32, %c0_i32_0 : i32, i32
  }
  func.func @transform_2(%arg0: i32) -> (i32, i32) {
    %c0_i32 = arith.constant 0 : i32
    %c0_i32_0 = arith.constant 0 : i32
    %c0_i32_1 = arith.constant 0 : i32
    return %c0_i32, %c0_i32_0 : i32, i32
  }
  func.func @transform_3(%arg0: i32) -> (i32, i32) {
    %c0_i32 = arith.constant 0 : i32
    %c0_i32_0 = arith.constant 0 : i32
    return %arg0, %c0_i32 : i32, i32
  }
}

module attributes {stable_mosaic.version = 11 : i64} {
  func.func @_mm_bias_add_relu_kernel(%arg0: i32, %arg1: memref<256x1152xf32, #tpu.memory_space<vmem>>, %arg2: memref<256x32xf32, #tpu.memory_space<vmem>>, %arg3: memref<1152x32xf32, #tpu.memory_space<vmem>>, %arg4: memref<1x32xf32, #tpu.memory_space<vmem>>, %arg5: memref<256x32xf32, #tpu.memory_space<vmem>>) attributes {dimension_semantics = [#tpu.dimension_semantics<parallel>], iteration_bounds = array<i64: 2>, scalar_prefetch = 0 : i64, scratch_operands = 0 : i64, tpu.core_type = #tpu.core_type<tc>, window_params = [{transform_indices = @transform_0, window_bounds = array<i64: 256, 1152>}, {transform_indices = @transform_1, window_bounds = array<i64: 256, 32>}, {pipeline_mode = #tpu.pipeline_mode<synchronous>, transform_indices = @transform_2, window_bounds = array<i64: 1152, 32>}, {pipeline_mode = #tpu.pipeline_mode<synchronous>, transform_indices = @transform_3, window_bounds = array<i64: 1, 32>}, {transform_indices = @transform_4, window_bounds = array<i64: 256, 32>}]} {
    %c0 = arith.constant 0 : index
    %c0_0 = arith.constant 0 : index
    %0 = vector.load %arg1[%c0, %c0_0] : memref<256x1152xf32, #tpu.memory_space<vmem>>, vector<256x1152xf32>
    %c0_1 = arith.constant 0 : index
    %c0_2 = arith.constant 0 : index
    %1 = vector.load %arg3[%c0_1, %c0_2] : memref<1152x32xf32, #tpu.memory_space<vmem>>, vector<1152x32xf32>
    %cst = arith.constant dense<0.000000e+00> : vector<256x32xf32>
    %2 = tpu.matmul %0, %1, %cst {dimension_numbers = #tpu.dot_dimension_numbers<[1], [0], [0], [1], [0, 0, 1, 1], [], []>} : vector<256x1152xf32>, vector<1152x32xf32>, vector<256x32xf32> -> vector<256x32xf32>
    %c0_3 = arith.constant 0 : index
    %c0_4 = arith.constant 0 : index
    %3 = vector.load %arg4[%c0_3, %c0_4] : memref<1x32xf32, #tpu.memory_space<vmem>>, vector<1x32xf32>
    %4 = vector.broadcast %3 : vector<1x32xf32> to vector<256x32xf32>
    %5 = arith.addf %2, %4 : vector<256x32xf32>
    %c0_5 = arith.constant 0 : index
    %c0_6 = arith.constant 0 : index
    %6 = vector.load %arg2[%c0_5, %c0_6] : memref<256x32xf32, #tpu.memory_space<vmem>>, vector<256x32xf32>
    %7 = arith.addf %5, %6 : vector<256x32xf32>
    %cst_7 = arith.constant 0.000000e+00 : f32
    %8 = vector.broadcast %cst_7 : f32 to vector<256x32xf32>
    %9 = arith.maximumf %7, %8 : vector<256x32xf32>
    %c0_8 = arith.constant 0 : index
    %c0_9 = arith.constant 0 : index
    %10 = vector.load %arg5[%c0_8, %c0_9] : memref<256x32xf32, #tpu.memory_space<vmem>>, vector<256x32xf32>
    tpu.vector_store %arg5[%c0_8, %c0_9], %9 {strides = array<i32>} : memref<256x32xf32, #tpu.memory_space<vmem>>, vector<256x32xf32>,
    return
  }
  func.func @transform_0(%arg0: i32) -> (i32, i32) {
    %c0_i32 = arith.constant 0 : i32
    %c0_i32_0 = arith.constant 0 : i32
    return %arg0, %c0_i32 : i32, i32
  }
  func.func @transform_1(%arg0: i32) -> (i32, i32) {
    %c0_i32 = arith.constant 0 : i32
    %c0_i32_0 = arith.constant 0 : i32
    return %arg0, %c0_i32 : i32, i32
  }
  func.func @transform_2(%arg0: i32) -> (i32, i32) {
    %c0_i32 = arith.constant 0 : i32
    %c0_i32_0 = arith.constant 0 : i32
    %c0_i32_1 = arith.constant 0 : i32
    return %c0_i32, %c0_i32_0 : i32, i32
  }
  func.func @transform_3(%arg0: i32) -> (i32, i32) {
    %c0_i32 = arith.constant 0 : i32
    %c0_i32_0 = arith.constant 0 : i32
    %c0_i32_1 = arith.constant 0 : i32
    return %c0_i32, %c0_i32_0 : i32, i32
  }
  func.func @transform_4(%arg0: i32) -> (i32, i32) {
    %c0_i32 = arith.constant 0 : i32
    %c0_i32_0 = arith.constant 0 : i32
    return %arg0, %c0_i32 : i32, i32
  }
}

</mosaic_0001>

<bundles_post_ra>
// kernel: rfb_forward.11
= control target key start
LH: loop header
LB: loop body
LE: loop exit
PB: predicated region body
PF: predicated region fallthrough
CT: control target
= control target key end

     0   :  { %8 = vsyncpa [#allocation3], 0  ;;  %s1474_s0 = inlined_call_operand.hbm [shape: f32[512,64], index: 0, kind: input, shape index: {}]   ;;  %s1475_s1 = inlined_call_operand.hbm [shape: f32[64,160], index: 1, kind: input, shape index: {}]   ;;  %s1476_s2 = inlined_call_operand.hbm [shape: f32[1,160], index: 2, kind: input, shape index: {}]   ;;  %s1477_s3 = inlined_call_operand.vmem [shape: f32[512,160], index: 3, kind: output, shape index: {}]  }
   0x1   :  { %10 = vsyncpa [#allocation3 + $0x1], 0 }
   0x2   :  { %11 = vsyncpa [#allocation5], 0  ;;  %s1070_s12 = smov 0   ;;  %s1072_s13 = smov 0  }
   0x3   :  { %s1074_s14 = smov 0   ;;  %s1076_s15 = smov 0  }
   0x4 LB: > { %s789_s16 = sadd.s32 4294967295, %s1040_s15   ;;  %p37_p0 = scmp.ne.s32.totalorder %s1032_s13, %s1028_s12  ;;  %s1040_s15 = sphi %s1076_s15, %s1493_s15   ;;  %s1036_s14 = sphi %s1074_s14, %s1492_s14   ;;  %s1032_s13 = sphi %s1072_s13, %s1491_s13   ;;  %s1028_s12 = sphi %s1070_s12, %s1490_s12  }
   0x5   : > { %p1092_p1 = scmp.eq.s32.totalorder %s789_s16, 0  ;;  %p791_p2 = scmp.ge.s32.totalorder %s1040_s15, 1 }
   0x6   : > { %p116_p3 = scmp.lt.s32.totalorder %s1040_s15, 3  ;;  %s1042_s20 = smov [#allocation4]  }
   0x7   : > { %s1482_s17 = scalar_select %p1092_p1, 1, 0 }
   0x8   : > { %p1100_p4 = por %p1092_p1, %p37_p0  ;;  %p1104_p5 = pnand %p791_p2, %p116_p3 }
   0x9   : > { %s128_s21 = sshll.u32 %s1042_s20, 4  ;;  %s1043_s23 = smov [#allocation6]   ;;  %s129_s21 = int_to_ptr.vmem [resolvable:$true] %s128_s21 }
   0xa   : > { %s1483_s18 = scalar_select %p1100_p4, 1, 0 }
   0xb   : > { %s1484_s19 = scalar_select %p1104_p5, 1, 0 }
   0xc   : > { %p867_p6 = pneg %p1104_p5  ;;  %s142_s24 = sshll.u32 %s1043_s23, 4  ;;  %s143_s24 = int_to_ptr.vmem [resolvable:$true] %s142_s24 }
   0xd   : > { %s933_s25 = scalar_lea.vmem %s129_s21, 2048  ;;  %p941_p12 = scmp.lt.s32.totalorder %s129_s21, %s129_s21 }
   0xe   : > { %p1112_p7 = pnand %p867_p6, %p1092_p1  ;;  %p934_p9 = scmp.ne.s32.totalorder %s129_s21, %s933_s25 }
   0xf   : > { %p942_p13 = scmp.lt.s32.totalorder %s933_s25, %s933_s25 }
  0x10   : > { %p924_p8 = pneg %p1112_p7 }
  0x11   : > { %p943_p0 = por %p942_p13, %p941_p12 }
  0x12   : > { %p936_p10 = pnand %p934_p9, %p924_p8 }
  0x14   : > { %p937_p11 = pneg %p936_p10 }
  0x16   : > { %p944_p2 = pnand %p943_p0, %p937_p11 }
  0x18   : > { %947 = shalt.err (!%p944_p2)
}
  0x19   : > { %s1044_s26 = smov 256   ;;  %s1045_s27 = smov 16  }
  0x1a   : > { %870 = dma.hbm_to_vmem [thread:$0]  (!%p1112_p7), %s1475_s1, 2048, %s129_s21, [#allocation5], %s1044_s26, %s1044_s26, %s1045_s27  }
  0x1b   : > { %s959_s30 = scalar_lea.vmem %s143_s24, 32  ;;  %p967_p10 = scmp.lt.s32.totalorder %s143_s24, %s143_s24 }
  0x1c   : > { %p960_p3 = scmp.ne.s32.totalorder %s143_s24, %s959_s30  ;;  %p968_p1 = scmp.lt.s32.totalorder %s959_s30, %s959_s30 }
  0x1e   : > { %p962_p6 = pnand %p960_p3, %p924_p8  ;;  %p969_p12 = por %p968_p1, %p967_p10 }
  0x20   : > { %p963_p9 = pneg %p962_p6 }
  0x22   : > { %p970_p11 = pnand %p969_p12, %p963_p9 }
  0x24   : > { %973 = shalt.err (!%p970_p11)
}
  0x25   : > { %873 = dma.hbm_to_vmem [thread:$0]  (!%p1112_p7), %s1476_s2, 32, %s143_s24, [#allocation5]  }
  0x26   : > { %s1135_s6 = sadd.s32 1, %s1040_s15   ;;  %s24_s7 = sadd.s32 1, %s1036_s14 }
  0x27   : > { %s21_s8 = ssub.s32 %s1040_s15, %s1135_s6  ;;  %p31_p1 = scmp.ne.s32.totalorder %s1036_s14, %s1032_s13 }
  0x28   : > { %p22_p8 = scmp.eq.s32.totalorder %s21_s8, 0  ;;  %p32_p13 = scmp.eq.s32.totalorder %s1040_s15, 0 }
  0x29   : > { %p880_p0 = scmp.lt.s32.totalorder %s1040_s15, 2  ;;  %s153_s9 = sand.u32 1, %s1036_s14  }
  0x2a   : > { %s1146_s10 = scalar_select %p22_p8, %s1036_s14, %s24_s7  }
  0x2b   : > { %p33_p2 = por %p32_p13, %p31_p1  ;;  %s795_s11 = sshll.u32 %s153_s9, 8 }
  0x2c   : > { %s839_s12 = sshll.u32 %s1040_s15, 12  ;;  %s157_s23 = scalar_lea.vmem [#allocation2], %s795_s11 }
  0x2d   : > { %s1152_s22 = scalar_lea.hbm %s1474_s0, %s839_s12  ;;  %s164_s24 = sshll.u32 %s157_s23, 4  ;;  %s1158_s24 = int_to_ptr.vmem [resolvable:$true] %s164_s24 }
  0x2e   : > { %p1154_p7 = pnand %p880_p0, %p33_p2  ;;  %s1160_s26 = scalar_lea.sflag [#allocation3], %s153_s9 }
  0x2f   : > { %s974_s27 = scalar_lea.hbm %s1152_s22, 4096  ;;  %s979_s30 = scalar_lea.hbm %s1474_s0, 8192 }
  0x30   : > { %p975_p3 = scmp.ne.s32.totalorder %s1152_s22, %s974_s27  ;;  %p976_p6 = pneg %p1154_p7 }
  0x31   : > { %p980_p12 = scmp.lt.s32.totalorder %s1152_s22, %s1474_s0  ;;  %p981_p11 = scmp.lt.s32.totalorder %s979_s30, %s974_s27 }
  0x32   : > { %p977_p9 = pnand %p976_p6, %p975_p3 }
  0x33   : > { %p982_p1 = por %p981_p11, %p980_p12 }
  0x34   : > { %p978_p10 = pneg %p977_p9 }
  0x36   : > { %p983_p8 = pnand %p982_p1, %p978_p10 }
  0x38   : > { %986 = shalt.err (!%p983_p8)
}
  0x39   : > { %s987_s7 = scalar_lea.vmem %s1158_s24, 4096  ;;  %s1046_s8 = smov [#allocation2]  }
  0x3a   : > { %p988_p13 = scmp.ne.s32.totalorder %s1158_s24, %s987_s7  ;;  %s992_s9 = sshll.u32 %s1046_s8, 4  ;;  %s993_s9 = int_to_ptr.vmem [resolvable:$false] %s992_s9 }
  0x3b   : > { %s994_s11 = scalar_lea.vmem %s993_s9, 8192  ;;  %p995_p3 = scmp.lt.s32.totalorder %s1158_s24, %s993_s9 }
  0x3c   : > { %p990_p0 = pnand %p988_p13, %p976_p6  ;;  %p996_p9 = scmp.lt.s32.totalorder %s994_s11, %s987_s7 }
  0x3e   : > { %p991_p2 = pneg %p990_p0  ;;  %p997_p4 = por %p996_p9, %p995_p3 }
  0x40   : > { %p998_p5 = pnand %p997_p4, %p991_p2 }
  0x42   : > { %1001 = shalt.err (!%p998_p5)
}
  0x43   : > { %s1047_s12 = smov 128   ;;  %s1048_s20 = smov 8  }
  0x44   : > { %877 = dma.hbm_to_vmem [thread:$0]  (!%p1154_p7), %s1152_s22, 4096, %s1158_s24, %s1160_s26, %s1047_s12, %s1047_s12, %s1048_s20  }
  0x45   : > { %p1487_p6 = scmp.ne.s32.totalorder %s1484_s19, 0 }
  0x46   : > { %s178_s21 = sand.u32 (!%p1487_p6), 1, %s1032_s13   ;;  %p1488_p4 = scmp.ne.s32.totalorder (!%p1487_p6), %s1483_s18, 0 }
  0x47   : > { %176 = sbr.rel (%p1487_p6) target bundleno = 356 (0x164), region = 32  ;;  %s799_s23 = sshll.u32 (!%p1487_p6), %s178_s21, 8 }
  0x48   : > { %s179_s27 = scalar_lea.sflag (!%p1487_p6), [#allocation3], %s178_s21  ;;  %s1184_s28 = scalar_lea.vmem (!%p1487_p6), [#allocation2], %s799_s23 }
  0x4c   : > { %1019 = dma.done.wait (%p1488_p4), %s179_s27, 4096  }
  0x4d   : > { %1021 = vsyncadd (%p1488_p4), %s179_s27, 4294963200  ;;  %p1489_p5 = scmp.ne.s32.totalorder %s1482_s17, 0 }
  0x4f   : > { %1023 = dma.done.wait (%p1489_p5), [#allocation5], 2080  }
  0x50   : > { %1025 = vsyncadd (%p1489_p5), [#allocation5], 4294965216  ;;  %v1049_v0 = vmov 0.0   ;;  %v269_v1 = vld [vmem:[#allocation4 + $0x78] sm:$0xff]  ;;  %v268_v2 = vld [vmem:[#allocation4 + $0x70] sm:$0xff]  ;;  %vm282_vm0 = vcmask 523264   ;;  %v272_v49 = vlaneseq }
  0x51   : > { %443 = vmatprep.mubr.f32.mxu0 %v1049_v0  ;;  %539 = vmatprep.mubr.f32.mxu1 %v1049_v0  ;;  %v267_v3 = vld [vmem:[#allocation4 + $0x68] sm:$0xff]  ;;  %v266_v4 = vld [vmem:[#allocation4 + $0x60] sm:$0xff]  ;;  %v265_v5 = vld [vmem:[#allocation4 + $0x58] sm:$0xff]  ;;  %s802_s17 = sshll.u32 %s789_s16, 5  ;;  %vm637_vm1 = vcmask 261120  }
  0x52   : > { %395 = vmatprep.subr.mxu0 %v269_v1  ;;  %841 = vmatprep.subr.mxu1 %v269_v1  ;;  %v264_v6 = vld [vmem:[#allocation4 + $0x50] sm:$0xff]  ;;  %v263_v7 = vld [vmem:[#allocation4 + $0x48] sm:$0xff]  ;;  %v262_v8 = vld [vmem:[#allocation4 + $0x40] sm:$0xff]  ;;  %p216_p7 = scmp.lt.s32.totalorder %s802_s17, 63  ;;  %v273_v50 = vshrl.u32 %v272_v49, 7 }
  0x53   : > { %396 = vmatpush1.msra.mxu0 %v268_v2  ;;  %849 = vmatpush1.msra.mxu1 %v268_v2  ;;  %v261_v9 = vld [vmem:[#allocation4 + $0x38] sm:$0xff]  ;;  %v260_v10 = vld [vmem:[#allocation4 + $0x30] sm:$0xff]  ;;  %v259_v11 = vld [vmem:[#allocation4 + $0x28] sm:$0xff] }
  0x54   : > { %397 = vmatprep.subr.mxu0 %v267_v3  ;;  %842 = vmatprep.subr.mxu1 %v267_v3  ;;  %v258_v12 = vld [vmem:[#allocation4 + $0x20] sm:$0xff]  ;;  %v257_v13 = vld [vmem:[#allocation4 + $0x18] sm:$0xff]  ;;  %v256_v14 = vld [vmem:[#allocation4 + $0x10] sm:$0xff]  ;;  %s1495_s17 = smov (!%p216_p7, %s802_s17), 63  ;;  %v274_v51 = vsub.s32 0, %v273_v50  ;;  %v278_v53 = vsub.s32 1, %v273_v50 }
  0x55   : > { %398 = vmatpush1.msra.mxu0 %v266_v4  ;;  %850 = vmatpush1.msra.mxu1 %v266_v4  ;;  %v255_v15 = vld [vmem:[#allocation4 + $0x8] sm:$0xff]  ;;  %v254_v16 = vld [vmem:[#allocation4] sm:$0xff]  ;;  %v224_v21 = vld [vmem:[%s1184_s28 + $0x10] sm:$0xff]  ;;  %s840_s18 = sshll.u32 %s1495_s17, 4 }
  0x56   : > { %399 = vmatprep.subr.mxu0 %v265_v5  ;;  %843 = vmatprep.subr.mxu1 %v265_v5  ;;  %v222_v17 = vld [vmem:[%s1184_s28] sm:$0xff]  ;;  %v223_v19 = vld [vmem:[%s1184_s28 + $0x8] sm:$0xff]  ;;  %v240_v22 = vld [vmem:[%s1184_s28 + $0x90] sm:$0xff]  ;;  %s1299_s24 = scalar_lea.vmem %s1477_s3, %s840_s18 }
  0x57   : > { %400 = vmatpush1.msra.mxu0 %v264_v6  ;;  %851 = vmatpush1.msra.mxu1 %v264_v6  ;;  %v238_v18 = vld [vmem:[%s1184_s28 + $0x80] sm:$0xff]  ;;  %v239_v20 = vld [vmem:[%s1184_s28 + $0x88] sm:$0xff]  ;;  %v225_v23 = vld [vmem:[%s1184_s28 + $0x18] sm:$0xff] }
  0x58   : > { %401 = vmatprep.subr.mxu0 %v263_v7  ;;  %844 = vmatprep.subr.mxu1 %v263_v7  ;;  %v241_v24 = vld [vmem:[%s1184_s28 + $0x98] sm:$0xff]  ;;  %v226_v25 = vld [vmem:[%s1184_s28 + $0x20] sm:$0xff]  ;;  %v227_v27 = vld [vmem:[%s1184_s28 + $0x28] sm:$0xff] }
  0x59   : > { %402 = vmatpush1.msra.mxu0 %v262_v8  ;;  %852 = vmatpush1.msra.mxu1 %v262_v8  ;;  %v242_v26 = vld [vmem:[%s1184_s28 + $0xa0] sm:$0xff]  ;;  %v243_v28 = vld [vmem:[%s1184_s28 + $0xa8] sm:$0xff]  ;;  %v228_v29 = vld [vmem:[%s1184_s28 + $0x30] sm:$0xff] }
  0x5a   : > { %403 = vmatprep.subr.mxu0 %v261_v9  ;;  %845 = vmatprep.subr.mxu1 %v261_v9  ;;  %v244_v30 = vld [vmem:[%s1184_s28 + $0xb0] sm:$0xff]  ;;  %v229_v31 = vld [vmem:[%s1184_s28 + $0x38] sm:$0xff]  ;;  %v230_v33 = vld [vmem:[%s1184_s28 + $0x40] sm:$0xff] }
  0x5b   : > { %404 = vmatpush1.msra.mxu0 %v260_v10  ;;  %853 = vmatpush1.msra.mxu1 %v260_v10  ;;  %v245_v32 = vld [vmem:[%s1184_s28 + $0xb8] sm:$0xff]  ;;  %v246_v34 = vld [vmem:[%s1184_s28 + $0xc0] sm:$0xff]  ;;  %v231_v35 = vld [vmem:[%s1184_s28 + $0x48] sm:$0xff] }
  0x5c   : > { %405 = vmatprep.subr.mxu0 %v259_v11  ;;  %846 = vmatprep.subr.mxu1 %v259_v11  ;;  %v247_v36 = vld [vmem:[%s1184_s28 + $0xc8] sm:$0xff]  ;;  %v232_v37 = vld [vmem:[%s1184_s28 + $0x50] sm:$0xff]  ;;  %v233_v39 = vld [vmem:[%s1184_s28 + $0x58] sm:$0xff] }
  0x5d   : > { %406 = vmatpush1.msra.mxu0 %v258_v12  ;;  %854 = vmatpush1.msra.mxu1 %v258_v12  ;;  %v248_v38 = vld [vmem:[%s1184_s28 + $0xd0] sm:$0xff]  ;;  %v249_v40 = vld [vmem:[%s1184_s28 + $0xd8] sm:$0xff]  ;;  %v234_v41 = vld [vmem:[%s1184_s28 + $0x60] sm:$0xff] }
  0x5e   : > { %407 = vmatprep.subr.mxu0 %v257_v13  ;;  %847 = vmatprep.subr.mxu1 %v257_v13  ;;  %v250_v42 = vld [vmem:[%s1184_s28 + $0xe0] sm:$0xff]  ;;  %v235_v43 = vld [vmem:[%s1184_s28 + $0x68] sm:$0xff]  ;;  %v236_v45 = vld [vmem:[%s1184_s28 + $0x70] sm:$0xff] }
  0x5f   : > { %408 = vmatpush1.msra.mxu0 %v256_v14  ;;  %855 = vmatpush1.msra.mxu1 %v256_v14  ;;  %v251_v44 = vld [vmem:[%s1184_s28 + $0xe8] sm:$0xff]  ;;  %v252_v46 = vld [vmem:[%s1184_s28 + $0xf0] sm:$0xff]  ;;  %v237_v47 = vld [vmem:[%s1184_s28 + $0x78] sm:$0xff] }
  0x60   : > { %409 = vmatprep.subr.mxu0 %v255_v15  ;;  %848 = vmatprep.subr.mxu1 %v255_v15  ;;  %v253_v48 = vld [vmem:[%s1184_s28 + $0xf8] sm:$0xff]  ;;  %v270_v52 = vld [vmem:[#allocation6] sm:$0x3] }
  0x61   : > { %410 = vmatpush1.msra.mxu0 %v254_v16  ;;  %856 = vmatpush1.msra.mxu1 %v254_v16  ;;  %v1292_v54 = vrot.slane %v270_v52, %v274_v51  ;;  %v1294_v55 = vrot.slane %v270_v52, %v278_v53 }
  0x62   : > { %805 = vmatmul.mubr.msk.f32.vlgmr.msra.gmra.mxu0 %vm282_vm0, %v222_v17  ;;  %821 = vmatmul.mubr.msk.f32.vlgmr.msra.gmra.mxu1 %vm282_vm0, %v238_v18 }
  0x63   : > { %449 = vmatprep.mubr.f32.mxu0 %v1049_v0  ;;  %545 = vmatprep.mubr.f32.mxu1 %v1049_v0 }
  0x66   : > { %806 = vmatmul.mubr.msk.f32.gmra.mxu0 %vm282_vm0, %v223_v19  ;;  %822 = vmatmul.mubr.msk.f32.gmra.mxu1 %vm282_vm0, %v239_v20 }
  0x67   : > { %455 = vmatprep.mubr.f32.mxu0 %v1049_v0  ;;  %551 = vmatprep.mubr.f32.mxu1 %v1049_v0 }
  0x6a   : > { %807 = vmatmul.mubr.msk.f32.gmra.mxu0 %vm282_vm0, %v224_v21  ;;  %823 = vmatmul.mubr.msk.f32.gmra.mxu1 %vm282_vm0, %v240_v22 }
  0x6b   : > { %461 = vmatprep.mubr.f32.mxu0 %v1049_v0  ;;  %557 = vmatprep.mubr.f32.mxu1 %v1049_v0 }
  0x6e   : > { %808 = vmatmul.mubr.msk.f32.gmra.mxu0 %vm282_vm0, %v225_v23  ;;  %824 = vmatmul.mubr.msk.f32.gmra.mxu1 %vm282_vm0, %v241_v24 }
  0x6f   : > { %467 = vmatprep.mubr.f32.mxu0 %v1049_v0  ;;  %563 = vmatprep.mubr.f32.mxu1 %v1049_v0 }
  0x72   : > { %809 = vmatmul.mubr.msk.f32.gmra.mxu0 %vm282_vm0, %v226_v25  ;;  %825 = vmatmul.mubr.msk.f32.gmra.mxu1 %vm282_vm0, %v242_v26 }
  0x73   : > { %473 = vmatprep.mubr.f32.mxu0 %v1049_v0  ;;  %569 = vmatprep.mubr.f32.mxu1 %v1049_v0 }
  0x76   : > { %810 = vmatmul.mubr.msk.f32.gmra.mxu0 %vm282_vm0, %v227_v27  ;;  %826 = vmatmul.mubr.msk.f32.gmra.mxu1 %vm282_vm0, %v243_v28 }
  0x77   : > { %479 = vmatprep.mubr.f32.mxu0 %v1049_v0  ;;  %575 = vmatprep.mubr.f32.mxu1 %v1049_v0 }
  0x7a   : > { %811 = vmatmul.mubr.msk.f32.gmra.mxu0 %vm282_vm0, %v228_v29  ;;  %827 = vmatmul.mubr.msk.f32.gmra.mxu1 %vm282_vm0, %v244_v30 }
  0x7b   : > { %485 = vmatprep.mubr.f32.mxu0 %v1049_v0  ;;  %581 = vmatprep.mubr.f32.mxu1 %v1049_v0 }
  0x7e   : > { %812 = vmatmul.mubr.msk.f32.gmra.mxu0 %vm282_vm0, %v229_v31  ;;  %828 = vmatmul.mubr.msk.f32.gmra.mxu1 %vm282_vm0, %v245_v32 }
  0x7f   : > { %491 = vmatprep.mubr.f32.mxu0 %v1049_v0  ;;  %587 = vmatprep.mubr.f32.mxu1 %v1049_v0 }
  0x82   : > { %813 = vmatmul.mubr.msk.f32.gmra.mxu0 %vm282_vm0, %v230_v33  ;;  %829 = vmatmul.mubr.msk.f32.gmra.mxu1 %vm282_vm0, %v246_v34 }
  0x83   : > { %497 = vmatprep.mubr.f32.mxu0 %v1049_v0  ;;  %593 = vmatprep.mubr.f32.mxu1 %v1049_v0 }
  0x86   : > { %814 = vmatmul.mubr.msk.f32.gmra.mxu0 %vm282_vm0, %v231_v35  ;;  %830 = vmatmul.mubr.msk.f32.gmra.mxu1 %vm282_vm0, %v247_v36 }
  0x87   : > { %503 = vmatprep.mubr.f32.mxu0 %v1049_v0  ;;  %599 = vmatprep.mubr.f32.mxu1 %v1049_v0 }
  0x8a   : > { %815 = vmatmul.mubr.msk.f32.gmra.mxu0 %vm282_vm0, %v232_v37  ;;  %831 = vmatmul.mubr.msk.f32.gmra.mxu1 %vm282_vm0, %v248_v38 }
  0x8b   : > { %509 = vmatprep.mubr.f32.mxu0 %v1049_v0  ;;  %605 = vmatprep.mubr.f32.mxu1 %v1049_v0 }
  0x8e   : > { %816 = vmatmul.mubr.msk.f32.gmra.mxu0 %vm282_vm0, %v233_v39  ;;  %832 = vmatmul.mubr.msk.f32.gmra.mxu1 %vm282_vm0, %v249_v40 }
  0x8f   : > { %515 = vmatprep.mubr.f32.mxu0 %v1049_v0  ;;  %611 = vmatprep.mubr.f32.mxu1 %v1049_v0 }
  0x92   : > { %817 = vmatmul.mubr.msk.f32.gmra.mxu0 %vm282_vm0, %v234_v41  ;;  %833 = vmatmul.mubr.msk.f32.gmra.mxu1 %vm282_vm0, %v250_v42 }
  0x93   : > { %521 = vmatprep.mubr.f32.mxu0 %v1049_v0  ;;  %617 = vmatprep.mubr.f32.mxu1 %v1049_v0 }
  0x96   : > { %818 = vmatmul.mubr.msk.f32.gmra.mxu0 %vm282_vm0, %v235_v43  ;;  %834 = vmatmul.mubr.msk.f32.gmra.mxu1 %vm282_vm0, %v251_v44 }
  0x97   : > { %527 = vmatprep.mubr.f32.mxu0 %v1049_v0  ;;  %623 = vmatprep.mubr.f32.mxu1 %v1049_v0 }
  0x9a   : > { %819 = vmatmul.mubr.msk.f32.gmra.mxu0 %vm282_vm0, %v236_v45  ;;  %835 = vmatmul.mubr.msk.f32.gmra.mxu1 %vm282_vm0, %v252_v46 }
  0x9b   : > { %533 = vmatprep.mubr.f32.mxu0 %v1049_v0  ;;  %629 = vmatprep.mubr.f32.mxu1 %v1049_v0 }
  0x9e   : > { %820 = vmatmul.mubr.msk.f32.gmra.mxu0 %vm282_vm0, %v237_v47  ;;  %836 = vmatmul.mubr.msk.f32.gmra.mxu1 %vm282_vm0, %v253_v48 }
 0x122   : > { %v445_v56 = vpop.f32.mrf.mxu0  ;;  %v541_v57 = vpop.f32.mrf.mxu1 }
 0x123   : > { %v446_v58 = vadd.f32 %v445_v56, %v1292_v54  ;;  %v542_v59 = vadd.f32 %v541_v57, %v1292_v54 }
 0x124   : > { %v447_v60 = vpop.f32.mrf.mxu0  ;;  %v543_v61 = vpop.f32.mrf.mxu1 }
 0x125   : > { %636 = vst [vmem:[%s1299_s24] sm:$0xff] %v446_v58  ;;  %669 = vst [vmem:[%s1299_s24 + $0x100] sm:$0xff] %v542_v59  ;;  %v448_v62 = vadd.f32 %v447_v60, %v1294_v55  ;;  %v544_v63 = vadd.f32 %v543_v61, %v1294_v55 }
 0x126   : > { %v451_v0 = vpop.f32.mrf.mxu0  ;;  %v547_v1 = vpop.f32.mrf.mxu1 }
 0x127   : > { %638 = vst.msk [vmem:[%s1299_s24 + $0x8] sm:$0xff] %vm637_vm1, %v448_v62  ;;  %670 = vst.msk [vmem:[%s1299_s24 + $0x108] sm:$0xff] %vm637_vm1, %v544_v63  ;;  %v452_v2 = vadd.f32 %v451_v0, %v1292_v54  ;;  %v548_v3 = vadd.f32 %v547_v1, %v1292_v54 }
 0x128   : > { %v453_v4 = vpop.f32.mrf.mxu0  ;;  %v549_v5 = vpop.f32.mrf.mxu1 }
 0x129   : > { %639 = vst [vmem:[%s1299_s24 + $0x10] sm:$0xff] %v452_v2  ;;  %671 = vst [vmem:[%s1299_s24 + $0x110] sm:$0xff] %v548_v3  ;;  %v454_v6 = vadd.f32 %v453_v4, %v1294_v55  ;;  %v550_v7 = vadd.f32 %v549_v5, %v1294_v55 }
 0x12a   : > { %v457_v8 = vpop.f32.mrf.mxu0  ;;  %v553_v9 = vpop.f32.mrf.mxu1 }
 0x12b   : > { %640 = vst.msk [vmem:[%s1299_s24 + $0x18] sm:$0xff] %vm637_vm1, %v454_v6  ;;  %672 = vst.msk [vmem:[%s1299_s24 + $0x118] sm:$0xff] %vm637_vm1, %v550_v7  ;;  %v458_v10 = vadd.f32 %v457_v8, %v1292_v54  ;;  %v554_v11 = vadd.f32 %v553_v9, %v1292_v54 }
 0x12c   : > { %v459_v12 = vpop.f32.mrf.mxu0  ;;  %v555_v13 = vpop.f32.mrf.mxu1 }
 0x12d   : > { %641 = vst [vmem:[%s1299_s24 + $0x20] sm:$0xff] %v458_v10  ;;  %673 = vst [vmem:[%s1299_s24 + $0x120] sm:$0xff] %v554_v11  ;;  %v460_v14 = vadd.f32 %v459_v12, %v1294_v55  ;;  %v556_v15 = vadd.f32 %v555_v13, %v1294_v55 }
 0x12e   : > { %v463_v16 = vpop.f32.mrf.mxu0  ;;  %v559_v17 = vpop.f32.mrf.mxu1 }
 0x12f   : > { %642 = vst.msk [vmem:[%s1299_s24 + $0x28] sm:$0xff] %vm637_vm1, %v460_v14  ;;  %674 = vst.msk [vmem:[%s1299_s24 + $0x128] sm:$0xff] %vm637_vm1, %v556_v15  ;;  %v464_v18 = vadd.f32 %v463_v16, %v1292_v54  ;;  %v560_v19 = vadd.f32 %v559_v17, %v1292_v54 }
 0x130   : > { %v465_v20 = vpop.f32.mrf.mxu0  ;;  %v561_v21 = vpop.f32.mrf.mxu1 }
 0x131   : > { %643 = vst [vmem:[%s1299_s24 + $0x30] sm:$0xff] %v464_v18  ;;  %675 = vst [vmem:[%s1299_s24 + $0x130] sm:$0xff] %v560_v19  ;;  %v466_v22 = vadd.f32 %v465_v20, %v1294_v55  ;;  %v562_v23 = vadd.f32 %v561_v21, %v1294_v55 }
 0x132   : > { %v469_v24 = vpop.f32.mrf.mxu0  ;;  %v565_v25 = vpop.f32.mrf.mxu1 }
 0x133   : > { %644 = vst.msk [vmem:[%s1299_s24 + $0x38] sm:$0xff] %vm637_vm1, %v466_v22  ;;  %676 = vst.msk [vmem:[%s1299_s24 + $0x138] sm:$0xff] %vm637_vm1, %v562_v23  ;;  %v470_v26 = vadd.f32 %v469_v24, %v1292_v54  ;;  %v566_v27 = vadd.f32 %v565_v25, %v1292_v54 }
 0x134   : > { %v471_v28 = vpop.f32.mrf.mxu0  ;;  %v567_v29 = vpop.f32.mrf.mxu1 }
 0x135   : > { %645 = vst [vmem:[%s1299_s24 + $0x40] sm:$0xff] %v470_v26  ;;  %677 = vst [vmem:[%s1299_s24 + $0x140] sm:$0xff] %v566_v27  ;;  %v472_v30 = vadd.f32 %v471_v28, %v1294_v55  ;;  %v568_v31 = vadd.f32 %v567_v29, %v1294_v55 }
 0x136   : > { %v475_v32 = vpop.f32.mrf.mxu0  ;;  %v571_v33 = vpop.f32.mrf.mxu1 }
 0x137   : > { %646 = vst.msk [vmem:[%s1299_s24 + $0x48] sm:$0xff] %vm637_vm1, %v472_v30  ;;  %678 = vst.msk [vmem:[%s1299_s24 + $0x148] sm:$0xff] %vm637_vm1, %v568_v31  ;;  %v476_v34 = vadd.f32 %v475_v32, %v1292_v54  ;;  %v572_v35 = vadd.f32 %v571_v33, %v1292_v54 }
 0x138   : > { %v477_v36 = vpop.f32.mrf.mxu0  ;;  %v573_v37 = vpop.f32.mrf.mxu1 }
 0x139   : > { %647 = vst [vmem:[%s1299_s24 + $0x50] sm:$0xff] %v476_v34  ;;  %679 = vst [vmem:[%s1299_s24 + $0x150] sm:$0xff] %v572_v35  ;;  %v478_v38 = vadd.f32 %v477_v36, %v1294_v55  ;;  %v574_v39 = vadd.f32 %v573_v37, %v1294_v55 }
 0x13a   : > { %v481_v40 = vpop.f32.mrf.mxu0  ;;  %v577_v41 = vpop.f32.mrf.mxu1 }
 0x13b   : > { %648 = vst.msk [vmem:[%s1299_s24 + $0x58] sm:$0xff] %vm637_vm1, %v478_v38  ;;  %680 = vst.msk [vmem:[%s1299_s24 + $0x158] sm:$0xff] %vm637_vm1, %v574_v39  ;;  %v482_v42 = vadd.f32 %v481_v40, %v1292_v54  ;;  %v578_v43 = vadd.f32 %v577_v41, %v1292_v54 }
 0x13c   : > { %v483_v44 = vpop.f32.mrf.mxu0  ;;  %v579_v45 = vpop.f32.mrf.mxu1 }
 0x13d   : > { %649 = vst [vmem:[%s1299_s24 + $0x60] sm:$0xff] %v482_v42  ;;  %681 = vst [vmem:[%s1299_s24 + $0x160] sm:$0xff] %v578_v43  ;;  %v484_v46 = vadd.f32 %v483_v44, %v1294_v55  ;;  %v580_v47 = vadd.f32 %v579_v45, %v1294_v55 }
 0x13e   : > { %v487_v48 = vpop.f32.mrf.mxu0  ;;  %v583_v49 = vpop.f32.mrf.mxu1 }
 0x13f   : > { %650 = vst.msk [vmem:[%s1299_s24 + $0x68] sm:$0xff] %vm637_vm1, %v484_v46  ;;  %682 = vst.msk [vmem:[%s1299_s24 + $0x168] sm:$0xff] %vm637_vm1, %v580_v47  ;;  %v488_v50 = vadd.f32 %v487_v48, %v1292_v54  ;;  %v584_v51 = vadd.f32 %v583_v49, %v1292_v54 }
 0x140   : > { %v489_v52 = vpop.f32.mrf.mxu0  ;;  %v585_v53 = vpop.f32.mrf.mxu1 }
 0x141   : > { %651 = vst [vmem:[%s1299_s24 + $0x70] sm:$0xff] %v488_v50  ;;  %683 = vst [vmem:[%s1299_s24 + $0x170] sm:$0xff] %v584_v51  ;;  %v490_v56 = vadd.f32 %v489_v52, %v1294_v55  ;;  %v586_v57 = vadd.f32 %v585_v53, %v1294_v55 }
 0x142   : > { %v493_v58 = vpop.f32.mrf.mxu0  ;;  %v589_v59 = vpop.f32.mrf.mxu1 }
 0x143   : > { %652 = vst.msk [vmem:[%s1299_s24 + $0x78] sm:$0xff] %vm637_vm1, %v490_v56  ;;  %684 = vst.msk [vmem:[%s1299_s24 + $0x178] sm:$0xff] %vm637_vm1, %v586_v57  ;;  %v494_v60 = vadd.f32 %v493_v58, %v1292_v54  ;;  %v590_v61 = vadd.f32 %v589_v59, %v1292_v54 }
 0x144   : > { %v495_v62 = vpop.f32.mrf.mxu0  ;;  %v591_v63 = vpop.f32.mrf.mxu1 }
 0x145   : > { %653 = vst [vmem:[%s1299_s24 + $0x80] sm:$0xff] %v494_v60  ;;  %685 = vst [vmem:[%s1299_s24 + $0x180] sm:$0xff] %v590_v61  ;;  %v496_v0 = vadd.f32 %v495_v62, %v1294_v55  ;;  %v592_v1 = vadd.f32 %v591_v63, %v1294_v55 }
 0x146   : > { %v499_v2 = vpop.f32.mrf.mxu0  ;;  %v595_v3 = vpop.f32.mrf.mxu1 }
 0x147   : > { %654 = vst.msk [vmem:[%s1299_s24 + $0x88] sm:$0xff] %vm637_vm1, %v496_v0  ;;  %686 = vst.msk [vmem:[%s1299_s24 + $0x188] sm:$0xff] %vm637_vm1, %v592_v1  ;;  %v500_v4 = vadd.f32 %v499_v2, %v1292_v54  ;;  %v596_v5 = vadd.f32 %v595_v3, %v1292_v54 }
 0x148   : > { %v501_v6 = vpop.f32.mrf.mxu0  ;;  %v597_v7 = vpop.f32.mrf.mxu1 }
 0x149   : > { %655 = vst [vmem:[%s1299_s24 + $0x90] sm:$0xff] %v500_v4  ;;  %687 = vst [vmem:[%s1299_s24 + $0x190] sm:$0xff] %v596_v5  ;;  %v502_v8 = vadd.f32 %v501_v6, %v1294_v55  ;;  %v598_v9 = vadd.f32 %v597_v7, %v1294_v55 }
 0x14a   : > { %v505_v10 = vpop.f32.mrf.mxu0  ;;  %v601_v11 = vpop.f32.mrf.mxu1 }
 0x14b   : > { %656 = vst.msk [vmem:[%s1299_s24 + $0x98] sm:$0xff] %vm637_vm1, %v502_v8  ;;  %688 = vst.msk [vmem:[%s1299_s24 + $0x198] sm:$0xff] %vm637_vm1, %v598_v9  ;;  %v506_v12 = vadd.f32 %v505_v10, %v1292_v54  ;;  %v602_v13 = vadd.f32 %v601_v11, %v1292_v54 }
 0x14c   : > { %v507_v14 = vpop.f32.mrf.mxu0  ;;  %v603_v15 = vpop.f32.mrf.mxu1 }
 0x14d   : > { %657 = vst [vmem:[%s1299_s24 + $0xa0] sm:$0xff] %v506_v12  ;;  %689 = vst [vmem:[%s1299_s24 + $0x1a0] sm:$0xff] %v602_v13  ;;  %v508_v16 = vadd.f32 %v507_v14, %v1294_v55  ;;  %v604_v17 = vadd.f32 %v603_v15, %v1294_v55 }
 0x14e   : > { %v511_v18 = vpop.f32.mrf.mxu0  ;;  %v607_v19 = vpop.f32.mrf.mxu1 }
 0x14f   : > { %658 = vst.msk [vmem:[%s1299_s24 + $0xa8] sm:$0xff] %vm637_vm1, %v508_v16  ;;  %690 = vst.msk [vmem:[%s1299_s24 + $0x1a8] sm:$0xff] %vm637_vm1, %v604_v17  ;;  %v512_v20 = vadd.f32 %v511_v18, %v1292_v54  ;;  %v608_v21 = vadd.f32 %v607_v19, %v1292_v54 }
 0x150   : > { %v513_v22 = vpop.f32.mrf.mxu0  ;;  %v609_v23 = vpop.f32.mrf.mxu1 }
 0x151   : > { %659 = vst [vmem:[%s1299_s24 + $0xb0] sm:$0xff] %v512_v20  ;;  %691 = vst [vmem:[%s1299_s24 + $0x1b0] sm:$0xff] %v608_v21  ;;  %v514_v24 = vadd.f32 %v513_v22, %v1294_v55  ;;  %v610_v25 = vadd.f32 %v609_v23, %v1294_v55 }
 0x152   : > { %v517_v26 = vpop.f32.mrf.mxu0  ;;  %v613_v27 = vpop.f32.mrf.mxu1 }
 0x153   : > { %660 = vst.msk [vmem:[%s1299_s24 + $0xb8] sm:$0xff] %vm637_vm1, %v514_v24  ;;  %692 = vst.msk [vmem:[%s1299_s24 + $0x1b8] sm:$0xff] %vm637_vm1, %v610_v25  ;;  %v518_v28 = vadd.f32 %v517_v26, %v1292_v54  ;;  %v614_v29 = vadd.f32 %v613_v27, %v1292_v54 }
 0x154   : > { %v519_v30 = vpop.f32.mrf.mxu0  ;;  %v615_v31 = vpop.f32.mrf.mxu1 }
 0x155   : > { %661 = vst [vmem:[%s1299_s24 + $0xc0] sm:$0xff] %v518_v28  ;;  %693 = vst [vmem:[%s1299_s24 + $0x1c0] sm:$0xff] %v614_v29  ;;  %v520_v32 = vadd.f32 %v519_v30, %v1294_v55  ;;  %v616_v33 = vadd.f32 %v615_v31, %v1294_v55 }
 0x156   : > { %v523_v34 = vpop.f32.mrf.mxu0  ;;  %v619_v35 = vpop.f32.mrf.mxu1 }
 0x157   : > { %662 = vst.msk [vmem:[%s1299_s24 + $0xc8] sm:$0xff] %vm637_vm1, %v520_v32  ;;  %694 = vst.msk [vmem:[%s1299_s24 + $0x1c8] sm:$0xff] %vm637_vm1, %v616_v33  ;;  %v524_v36 = vadd.f32 %v523_v34, %v1292_v54  ;;  %v620_v37 = vadd.f32 %v619_v35, %v1292_v54 }
 0x158   : > { %v525_v38 = vpop.f32.mrf.mxu0  ;;  %v621_v39 = vpop.f32.mrf.mxu1 }
 0x159   : > { %663 = vst [vmem:[%s1299_s24 + $0xd0] sm:$0xff] %v524_v36  ;;  %695 = vst [vmem:[%s1299_s24 + $0x1d0] sm:$0xff] %v620_v37  ;;  %v526_v40 = vadd.f32 %v525_v38, %v1294_v55  ;;  %v622_v41 = vadd.f32 %v621_v39, %v1294_v55 }
 0x15a   : > { %v529_v42 = vpop.f32.mrf.mxu0  ;;  %v625_v43 = vpop.f32.mrf.mxu1 }
 0x15b   : > { %664 = vst.msk [vmem:[%s1299_s24 + $0xd8] sm:$0xff] %vm637_vm1, %v526_v40  ;;  %696 = vst.msk [vmem:[%s1299_s24 + $0x1d8] sm:$0xff] %vm637_vm1, %v622_v41  ;;  %v530_v44 = vadd.f32 %v529_v42, %v1292_v54  ;;  %v626_v45 = vadd.f32 %v625_v43, %v1292_v54 }
 0x15c   : > { %v531_v46 = vpop.f32.mrf.mxu0  ;;  %v627_v47 = vpop.f32.mrf.mxu1 }
 0x15d   : > { %665 = vst [vmem:[%s1299_s24 + $0xe0] sm:$0xff] %v530_v44  ;;  %697 = vst [vmem:[%s1299_s24 + $0x1e0] sm:$0xff] %v626_v45  ;;  %v532_v48 = vadd.f32 %v531_v46, %v1294_v55  ;;  %v628_v49 = vadd.f32 %v627_v47, %v1294_v55 }
 0x15e   : > { %v535_v50 = vpop.f32.mrf.mxu0  ;;  %v631_v51 = vpop.f32.mrf.mxu1 }
 0x15f   : > { %666 = vst.msk [vmem:[%s1299_s24 + $0xe8] sm:$0xff] %vm637_vm1, %v532_v48  ;;  %698 = vst.msk [vmem:[%s1299_s24 + $0x1e8] sm:$0xff] %vm637_vm1, %v628_v49  ;;  %v536_v52 = vadd.f32 %v535_v50, %v1292_v54  ;;  %v632_v53 = vadd.f32 %v631_v51, %v1292_v54 }
 0x160   : > { %v537_v56 = vpop.f32.mrf.mxu0  ;;  %v633_v57 = vpop.f32.mrf.mxu1 }
 0x161   : > { %667 = vst [vmem:[%s1299_s24 + $0xf0] sm:$0xff] %v536_v52  ;;  %699 = vst [vmem:[%s1299_s24 + $0x1f0] sm:$0xff] %v632_v53  ;;  %v538_v58 = vadd.f32 %v537_v56, %v1294_v55  ;;  %v634_v59 = vadd.f32 %v633_v57, %v1294_v55 }
 0x163   : > { %668 = vst.msk [vmem:[%s1299_s24 + $0xf8] sm:$0xff] %vm637_vm1, %v538_v58  ;;  %700 = vst.msk [vmem:[%s1299_s24 + $0x1f8] sm:$0xff] %vm637_vm1, %v634_v59 }
 0x164 PF: > { %p14_p10 = scmp.ge.s32.totalorder %s1135_s6, 4   ;;  %s1490_s12 = smov %s1032_s13 }
 0x165   : > { %s1491_s13 = smov %s1036_s14  ;;  %s1492_s14 = smov %s1146_s10 }
 0x166   : > { %s1493_s15 = smov %s1135_s6  ;;  %16 = sbr.rel (!%p14_p10) target bundleno = 4 (0x4), region = 80 }
 0x16b   :  { %725 = vsyncpa [#allocation3], 1 }
 0x16c   :  { %727 = vsyncpa [#allocation3 + $0x1], 1 }
 0x16d   :  { %728 = vsyncpa [#allocation5], 1 }

// kernel: rfb_forward.12
= control target key start
LH: loop header
LB: loop body
LE: loop exit
PB: predicated region body
PF: predicated region fallthrough
CT: control target
= control target key end

     0   :  { %s856_s12 = smov 0   ;;  %s1085_s0 = inlined_call_operand.vmem [shape: f32[512,96], index: 0, kind: input, shape index: {}]   ;;  %s1086_s1 = inlined_call_operand.vmem [shape: f32[96,32], index: 1, kind: input, shape index: {}]   ;;  %s1087_s2 = inlined_call_operand.vmem [shape: f32[1,32], index: 2, kind: input, shape index: {}]   ;;  %s1088_s3 = inlined_call_operand.vmem [shape: f32[512,32], index: 3, kind: output, shape index: {}]  }
   0x1 LB: > { %s636_s13 = sadd.s32 4294967295, %s834_s12   ;;  %p640_p0 = scmp.ge.s32.totalorder %s834_s12, 1  ;;  %s834_s12 = sphi %s856_s12, %s13_s12  }
   0x2   : > { %p138_p1 = scmp.lt.s32.totalorder %s834_s12, 3 }
   0x4   : > { %p139_p2 = pnand %p640_p0, %p138_p1 }
   0x5   : > { %s641_s22 = sshll.u32 (!%p139_p2), %s636_s13, 5 }
   0x6   : > { %142 = sbr.rel (%p139_p2) target bundleno = 263 (0x107), region = 32  ;;  %p163_p3 = scmp.lt.s32.totalorder (!%p139_p2), %s641_s22, 63 }
   0xb   : > { %v217_v0 = vld [vmem:[%s1086_s1 + $0x58] sm:$0xff]  ;;  %v216_v1 = vld [vmem:[%s1086_s1 + $0x50] sm:$0xff]  ;;  %v215_v2 = vld [vmem:[%s1086_s1 + $0x48] sm:$0xff]  ;;  %s1090_s22 = smov (!%p163_p3, %s641_s22), 63  ;;  %vm225_vm0 = vcmask 785408   ;;  %vm547_vm1 = vcmask 261120  }
   0xc   : > { %724 = vmatprep.subr.mxu0 %v217_v0  ;;  %796 = vmatprep.subr.mxu1 %v217_v0  ;;  %v214_v3 = vld [vmem:[%s1086_s1 + $0x40] sm:$0xff]  ;;  %v213_v4 = vld [vmem:[%s1086_s1 + $0x38] sm:$0xff]  ;;  %v212_v5 = vld [vmem:[%s1086_s1 + $0x30] sm:$0xff]  ;;  %s642_s8 = sshll.u32 %s1090_s22, 3 }
   0xd   : > { %725 = vmatpush3.msra.mxu0 %v217_v0  ;;  %808 = vmatpush3.msra.mxu1 %v217_v0  ;;  %v211_v6 = vld [vmem:[%s1086_s1 + $0x28] sm:$0xff]  ;;  %v210_v7 = vld [vmem:[%s1086_s1 + $0x20] sm:$0xff]  ;;  %v209_v8 = vld [vmem:[%s1086_s1 + $0x18] sm:$0xff]  ;;  %s905_s14 = scalar_lea.vmem %s1085_s0, %s642_s8  ;;  %s984_s21 = scalar_lea.vmem %s1088_s3, %s642_s8 }
   0xe   : > { %726 = vmatprep.subr.mxu0 %v216_v1  ;;  %797 = vmatprep.subr.mxu1 %v216_v1  ;;  %v208_v9 = vld [vmem:[%s1086_s1 + $0x10] sm:$0xff]  ;;  %v207_v10 = vld [vmem:[%s1086_s1 + $0x8] sm:$0xff]  ;;  %v206_v11 = vld [vmem:[%s1086_s1] sm:$0xff] }
   0xf   : > { %727 = vmatpush3.msra.mxu0 %v216_v1  ;;  %809 = vmatpush3.msra.mxu1 %v216_v1  ;;  %v174_v12 = vld [vmem:[%s905_s14] sm:$0xff]  ;;  %v175_v14 = vld [vmem:[%s905_s14 + $0x8] sm:$0xff]  ;;  %v176_v16 = vld [vmem:[%s905_s14 + $0x10] sm:$0xff] }
  0x10   : > { %728 = vmatprep.subr.mxu0 %v215_v2  ;;  %798 = vmatprep.subr.mxu1 %v215_v2  ;;  %v190_v13 = vld [vmem:[%s905_s14 + $0x80] sm:$0xff]  ;;  %v191_v15 = vld [vmem:[%s905_s14 + $0x88] sm:$0xff]  ;;  %v192_v17 = vld [vmem:[%s905_s14 + $0x90] sm:$0xff] }
  0x11   : > { %729 = vmatpush3.msra.mxu0 %v215_v2  ;;  %810 = vmatpush3.msra.mxu1 %v215_v2  ;;  %v177_v18 = vld [vmem:[%s905_s14 + $0x18] sm:$0xff]  ;;  %v178_v20 = vld [vmem:[%s905_s14 + $0x20] sm:$0xff]  ;;  %v179_v22 = vld [vmem:[%s905_s14 + $0x28] sm:$0xff] }
  0x12   : > { %730 = vmatprep.subr.mxu0 %v214_v3  ;;  %799 = vmatprep.subr.mxu1 %v214_v3  ;;  %v193_v19 = vld [vmem:[%s905_s14 + $0x98] sm:$0xff]  ;;  %v194_v21 = vld [vmem:[%s905_s14 + $0xa0] sm:$0xff]  ;;  %v195_v23 = vld [vmem:[%s905_s14 + $0xa8] sm:$0xff] }
  0x13   : > { %731 = vmatpush3.msra.mxu0 %v214_v3  ;;  %811 = vmatpush3.msra.mxu1 %v214_v3  ;;  %v180_v24 = vld [vmem:[%s905_s14 + $0x30] sm:$0xff]  ;;  %v181_v26 = vld [vmem:[%s905_s14 + $0x38] sm:$0xff]  ;;  %v182_v28 = vld [vmem:[%s905_s14 + $0x40] sm:$0xff] }
  0x14   : > { %732 = vmatprep.subr.mxu0 %v213_v4  ;;  %800 = vmatprep.subr.mxu1 %v213_v4  ;;  %v196_v25 = vld [vmem:[%s905_s14 + $0xb0] sm:$0xff]  ;;  %v197_v27 = vld [vmem:[%s905_s14 + $0xb8] sm:$0xff]  ;;  %v198_v29 = vld [vmem:[%s905_s14 + $0xc0] sm:$0xff] }
  0x15   : > { %733 = vmatpush3.msra.mxu0 %v213_v4  ;;  %812 = vmatpush3.msra.mxu1 %v213_v4  ;;  %v183_v30 = vld [vmem:[%s905_s14 + $0x48] sm:$0xff]  ;;  %v184_v32 = vld [vmem:[%s905_s14 + $0x50] sm:$0xff]  ;;  %v185_v34 = vld [vmem:[%s905_s14 + $0x58] sm:$0xff] }
  0x16   : > { %734 = vmatprep.subr.mxu0 %v212_v5  ;;  %801 = vmatprep.subr.mxu1 %v212_v5  ;;  %v199_v31 = vld [vmem:[%s905_s14 + $0xc8] sm:$0xff]  ;;  %v200_v33 = vld [vmem:[%s905_s14 + $0xd0] sm:$0xff]  ;;  %v201_v35 = vld [vmem:[%s905_s14 + $0xd8] sm:$0xff] }
  0x17   : > { %735 = vmatpush3.msra.mxu0 %v212_v5  ;;  %813 = vmatpush3.msra.mxu1 %v212_v5  ;;  %v186_v36 = vld [vmem:[%s905_s14 + $0x60] sm:$0xff]  ;;  %v187_v38 = vld [vmem:[%s905_s14 + $0x68] sm:$0xff]  ;;  %v188_v40 = vld [vmem:[%s905_s14 + $0x70] sm:$0xff] }
  0x18   : > { %736 = vmatprep.subr.mxu0 %v211_v6  ;;  %802 = vmatprep.subr.mxu1 %v211_v6  ;;  %v202_v37 = vld [vmem:[%s905_s14 + $0xe0] sm:$0xff]  ;;  %v203_v39 = vld [vmem:[%s905_s14 + $0xe8] sm:$0xff]  ;;  %v204_v41 = vld [vmem:[%s905_s14 + $0xf0] sm:$0xff] }
  0x19   : > { %737 = vmatpush3.msra.mxu0 %v211_v6  ;;  %814 = vmatpush3.msra.mxu1 %v211_v6  ;;  %v189_v42 = vld [vmem:[%s905_s14 + $0x78] sm:$0xff]  ;;  %v977_v44 = vld [vmem:[%s1087_s2] ss:$0 sm:$0xff] }
  0x1a   : > { %738 = vmatprep.subr.mxu0 %v210_v7  ;;  %803 = vmatprep.subr.mxu1 %v210_v7  ;;  %v205_v43 = vld [vmem:[%s905_s14 + $0xf8] sm:$0xff] }
  0x1b   : > { %739 = vmatpush3.msra.mxu0 %v210_v7  ;;  %815 = vmatpush3.msra.mxu1 %v210_v7 }
  0x1c   : > { %740 = vmatprep.subr.mxu0 %v209_v8  ;;  %804 = vmatprep.subr.mxu1 %v209_v8 }
  0x1d   : > { %741 = vmatpush3.msra.mxu0 %v209_v8  ;;  %816 = vmatpush3.msra.mxu1 %v209_v8 }
  0x1e   : > { %742 = vmatprep.subr.mxu0 %v208_v9  ;;  %805 = vmatprep.subr.mxu1 %v208_v9 }
  0x1f   : > { %743 = vmatpush3.msra.mxu0 %v208_v9  ;;  %817 = vmatpush3.msra.mxu1 %v208_v9 }
  0x20   : > { %744 = vmatprep.subr.mxu0 %v207_v10  ;;  %806 = vmatprep.subr.mxu1 %v207_v10 }
  0x21   : > { %745 = vmatpush3.msra.mxu0 %v207_v10  ;;  %818 = vmatpush3.msra.mxu1 %v207_v10 }
  0x22   : > { %746 = vmatprep.subr.mxu0 %v206_v11  ;;  %807 = vmatprep.subr.mxu1 %v206_v11 }
  0x23   : > { %747 = vmatpush3.msra.mxu0 %v206_v11  ;;  %819 = vmatpush3.msra.mxu1 %v206_v11 }
  0x24   : > { %748 = vmatprep.mubr.msk.f32.mxu0 %vm225_vm0, %v174_v12  ;;  %772 = vmatprep.mubr.msk.f32.mxu1 %vm225_vm0, %v190_v13 }
  0x25   : > { %749 = vmatmul.mubr.msk.f32.vlgmr.msra.gmra.mxu0 %vm225_vm0, %v175_v14  ;;  %773 = vmatmul.mubr.msk.f32.vlgmr.msra.gmra.mxu1 %vm225_vm0, %v191_v15 }
  0x26   : > { %751 = vmatprep.mubr.msk.f32.mxu0 %vm225_vm0, %v176_v16  ;;  %775 = vmatprep.mubr.msk.f32.mxu1 %vm225_vm0, %v192_v17 }
  0x29   : > { %752 = vmatmul.mubr.msk.f32.gmra.mxu0 %vm225_vm0, %v177_v18  ;;  %776 = vmatmul.mubr.msk.f32.gmra.mxu1 %vm225_vm0, %v193_v19 }
  0x2a   : > { %754 = vmatprep.mubr.msk.f32.mxu0 %vm225_vm0, %v178_v20  ;;  %778 = vmatprep.mubr.msk.f32.mxu1 %vm225_vm0, %v194_v21 }
  0x2d   : > { %755 = vmatmul.mubr.msk.f32.gmra.mxu0 %vm225_vm0, %v179_v22  ;;  %779 = vmatmul.mubr.msk.f32.gmra.mxu1 %vm225_vm0, %v195_v23 }
  0x2e   : > { %757 = vmatprep.mubr.msk.f32.mxu0 %vm225_vm0, %v180_v24  ;;  %781 = vmatprep.mubr.msk.f32.mxu1 %vm225_vm0, %v196_v25 }
  0x31   : > { %758 = vmatmul.mubr.msk.f32.gmra.mxu0 %vm225_vm0, %v181_v26  ;;  %782 = vmatmul.mubr.msk.f32.gmra.mxu1 %vm225_vm0, %v197_v27 }
  0x32   : > { %760 = vmatprep.mubr.msk.f32.mxu0 %vm225_vm0, %v182_v28  ;;  %784 = vmatprep.mubr.msk.f32.mxu1 %vm225_vm0, %v198_v29 }
  0x35   : > { %761 = vmatmul.mubr.msk.f32.gmra.mxu0 %vm225_vm0, %v183_v30  ;;  %785 = vmatmul.mubr.msk.f32.gmra.mxu1 %vm225_vm0, %v199_v31 }
  0x36   : > { %763 = vmatprep.mubr.msk.f32.mxu0 %vm225_vm0, %v184_v32  ;;  %787 = vmatprep.mubr.msk.f32.mxu1 %vm225_vm0, %v200_v33 }
  0x39   : > { %764 = vmatmul.mubr.msk.f32.gmra.mxu0 %vm225_vm0, %v185_v34  ;;  %788 = vmatmul.mubr.msk.f32.gmra.mxu1 %vm225_vm0, %v201_v35 }
  0x3a   : > { %766 = vmatprep.mubr.msk.f32.mxu0 %vm225_vm0, %v186_v36  ;;  %790 = vmatprep.mubr.msk.f32.mxu1 %vm225_vm0, %v202_v37 }
  0x3d   : > { %767 = vmatmul.mubr.msk.f32.gmra.mxu0 %vm225_vm0, %v187_v38  ;;  %791 = vmatmul.mubr.msk.f32.gmra.mxu1 %vm225_vm0, %v203_v39 }
  0x3e   : > { %769 = vmatprep.mubr.msk.f32.mxu0 %vm225_vm0, %v188_v40  ;;  %793 = vmatprep.mubr.msk.f32.mxu1 %vm225_vm0, %v204_v41 }
  0x41   : > { %770 = vmatmul.mubr.msk.f32.gmra.mxu0 %vm225_vm0, %v189_v42  ;;  %794 = vmatmul.mubr.msk.f32.gmra.mxu1 %vm225_vm0, %v205_v43 }
  0xe5   : > { %v750_v45 = vpop.f32.mrf.mxu0  ;;  %v774_v46 = vpop.f32.mrf.mxu1 }
  0xe6   : > { %v394_v47 = vadd.f32 %v750_v45, %v977_v44  ;;  %v474_v48 = vadd.f32 %v774_v46, %v977_v44 }
  0xe7   : > { %v388_v49 = vpop.f32.mrf.mxu0  ;;  %v468_v50 = vpop.f32.mrf.mxu1 }
  0xe8   : > { %549 = vst.msk [vmem:[%s984_s21 + $0x8] sm:$0xff] %vm547_vm1, %v394_v47  ;;  %565 = vst.msk [vmem:[%s984_s21 + $0x88] sm:$0xff] %vm547_vm1, %v474_v48  ;;  %v389_v51 = vadd.f32 %v977_v44, %v388_v49  ;;  %v469_v52 = vadd.f32 %v977_v44, %v468_v50 }
  0xe9   : > { %v753_v53 = vpop.f32.mrf.mxu0  ;;  %v777_v54 = vpop.f32.mrf.mxu1 }
  0xea   : > { %548 = vst.msk [vmem:[%s984_s21] sm:$0xff] %vm547_vm1, %v389_v51  ;;  %564 = vst.msk [vmem:[%s984_s21 + $0x80] sm:$0xff] %vm547_vm1, %v469_v52  ;;  %v404_v55 = vadd.f32 %v753_v53, %v977_v44  ;;  %v484_v56 = vadd.f32 %v777_v54, %v977_v44 }
  0xeb   : > { %v398_v57 = vpop.f32.mrf.mxu0  ;;  %v478_v58 = vpop.f32.mrf.mxu1 }
  0xec   : > { %551 = vst.msk [vmem:[%s984_s21 + $0x18] sm:$0xff] %vm547_vm1, %v404_v55  ;;  %567 = vst.msk [vmem:[%s984_s21 + $0x98] sm:$0xff] %vm547_vm1, %v484_v56  ;;  %v399_v59 = vadd.f32 %v977_v44, %v398_v57  ;;  %v479_v60 = vadd.f32 %v977_v44, %v478_v58 }
  0xed   : > { %v756_v61 = vpop.f32.mrf.mxu0  ;;  %v780_v62 = vpop.f32.mrf.mxu1 }
  0xee   : > { %550 = vst.msk [vmem:[%s984_s21 + $0x10] sm:$0xff] %vm547_vm1, %v399_v59  ;;  %566 = vst.msk [vmem:[%s984_s21 + $0x90] sm:$0xff] %vm547_vm1, %v479_v60  ;;  %v414_v63 = vadd.f32 %v756_v61, %v977_v44  ;;  %v494_v0 = vadd.f32 %v780_v62, %v977_v44 }
  0xef   : > { %v408_v1 = vpop.f32.mrf.mxu0  ;;  %v488_v2 = vpop.f32.mrf.mxu1 }
  0xf0   : > { %553 = vst.msk [vmem:[%s984_s21 + $0x28] sm:$0xff] %vm547_vm1, %v414_v63  ;;  %569 = vst.msk [vmem:[%s984_s21 + $0xa8] sm:$0xff] %vm547_vm1, %v494_v0  ;;  %v409_v3 = vadd.f32 %v977_v44, %v408_v1  ;;  %v489_v4 = vadd.f32 %v977_v44, %v488_v2 }
  0xf1   : > { %v759_v5 = vpop.f32.mrf.mxu0  ;;  %v783_v6 = vpop.f32.mrf.mxu1 }
  0xf2   : > { %552 = vst.msk [vmem:[%s984_s21 + $0x20] sm:$0xff] %vm547_vm1, %v409_v3  ;;  %568 = vst.msk [vmem:[%s984_s21 + $0xa0] sm:$0xff] %vm547_vm1, %v489_v4  ;;  %v424_v7 = vadd.f32 %v759_v5, %v977_v44  ;;  %v504_v8 = vadd.f32 %v783_v6, %v977_v44 }
  0xf3   : > { %v418_v9 = vpop.f32.mrf.mxu0  ;;  %v498_v10 = vpop.f32.mrf.mxu1 }
  0xf4   : > { %555 = vst.msk [vmem:[%s984_s21 + $0x38] sm:$0xff] %vm547_vm1, %v424_v7  ;;  %571 = vst.msk [vmem:[%s984_s21 + $0xb8] sm:$0xff] %vm547_vm1, %v504_v8  ;;  %v419_v11 = vadd.f32 %v977_v44, %v418_v9  ;;  %v499_v12 = vadd.f32 %v977_v44, %v498_v10 }
  0xf5   : > { %v762_v13 = vpop.f32.mrf.mxu0  ;;  %v786_v14 = vpop.f32.mrf.mxu1 }
  0xf6   : > { %554 = vst.msk [vmem:[%s984_s21 + $0x30] sm:$0xff] %vm547_vm1, %v419_v11  ;;  %570 = vst.msk [vmem:[%s984_s21 + $0xb0] sm:$0xff] %vm547_vm1, %v499_v12  ;;  %v434_v15 = vadd.f32 %v762_v13, %v977_v44  ;;  %v514_v16 = vadd.f32 %v786_v14, %v977_v44 }
  0xf7   : > { %v428_v17 = vpop.f32.mrf.mxu0  ;;  %v508_v18 = vpop.f32.mrf.mxu1 }
  0xf8   : > { %557 = vst.msk [vmem:[%s984_s21 + $0x48] sm:$0xff] %vm547_vm1, %v434_v15  ;;  %573 = vst.msk [vmem:[%s984_s21 + $0xc8] sm:$0xff] %vm547_vm1, %v514_v16  ;;  %v429_v19 = vadd.f32 %v977_v44, %v428_v17  ;;  %v509_v20 = vadd.f32 %v977_v44, %v508_v18 }
  0xf9   : > { %v765_v21 = vpop.f32.mrf.mxu0  ;;  %v789_v22 = vpop.f32.mrf.mxu1 }
  0xfa   : > { %556 = vst.msk [vmem:[%s984_s21 + $0x40] sm:$0xff] %vm547_vm1, %v429_v19  ;;  %572 = vst.msk [vmem:[%s984_s21 + $0xc0] sm:$0xff] %vm547_vm1, %v509_v20  ;;  %v444_v23 = vadd.f32 %v765_v21, %v977_v44  ;;  %v524_v24 = vadd.f32 %v789_v22, %v977_v44 }
  0xfb   : > { %v438_v25 = vpop.f32.mrf.mxu0  ;;  %v518_v26 = vpop.f32.mrf.mxu1 }
  0xfc   : > { %559 = vst.msk [vmem:[%s984_s21 + $0x58] sm:$0xff] %vm547_vm1, %v444_v23  ;;  %575 = vst.msk [vmem:[%s984_s21 + $0xd8] sm:$0xff] %vm547_vm1, %v524_v24  ;;  %v439_v27 = vadd.f32 %v977_v44, %v438_v25  ;;  %v519_v28 = vadd.f32 %v977_v44, %v518_v26 }
  0xfd   : > { %v768_v29 = vpop.f32.mrf.mxu0  ;;  %v792_v30 = vpop.f32.mrf.mxu1 }
  0xfe   : > { %558 = vst.msk [vmem:[%s984_s21 + $0x50] sm:$0xff] %vm547_vm1, %v439_v27  ;;  %574 = vst.msk [vmem:[%s984_s21 + $0xd0] sm:$0xff] %vm547_vm1, %v519_v28  ;;  %v454_v31 = vadd.f32 %v768_v29, %v977_v44  ;;  %v534_v32 = vadd.f32 %v792_v30, %v977_v44 }
  0xff   : > { %v448_v33 = vpop.f32.mrf.mxu0  ;;  %v528_v34 = vpop.f32.mrf.mxu1 }
 0x100   : > { %561 = vst.msk [vmem:[%s984_s21 + $0x68] sm:$0xff] %vm547_vm1, %v454_v31  ;;  %577 = vst.msk [vmem:[%s984_s21 + $0xe8] sm:$0xff] %vm547_vm1, %v534_v32  ;;  %v449_v35 = vadd.f32 %v977_v44, %v448_v33  ;;  %v529_v36 = vadd.f32 %v977_v44, %v528_v34 }
 0x101   : > { %v771_v37 = vpop.f32.mrf.mxu0  ;;  %v795_v38 = vpop.f32.mrf.mxu1 }
 0x102   : > { %560 = vst.msk [vmem:[%s984_s21 + $0x60] sm:$0xff] %vm547_vm1, %v449_v35  ;;  %576 = vst.msk [vmem:[%s984_s21 + $0xe0] sm:$0xff] %vm547_vm1, %v529_v36  ;;  %v464_v39 = vadd.f32 %v771_v37, %v977_v44  ;;  %v544_v40 = vadd.f32 %v795_v38, %v977_v44 }
 0x103   : > { %v458_v41 = vpop.f32.mrf.mxu0  ;;  %v538_v42 = vpop.f32.mrf.mxu1 }
 0x104   : > { %563 = vst.msk [vmem:[%s984_s21 + $0x78] sm:$0xff] %vm547_vm1, %v464_v39  ;;  %579 = vst.msk [vmem:[%s984_s21 + $0xf8] sm:$0xff] %vm547_vm1, %v544_v40  ;;  %v459_v43 = vadd.f32 %v977_v44, %v458_v41  ;;  %v539_v45 = vadd.f32 %v977_v44, %v538_v42 }
 0x106   : > { %562 = vst.msk [vmem:[%s984_s21 + $0x70] sm:$0xff] %vm547_vm1, %v459_v43  ;;  %578 = vst.msk [vmem:[%s984_s21 + $0xf0] sm:$0xff] %vm547_vm1, %v539_v45 }
 0x107 PF: > { %s13_s12 = sadd.s32 1, %s834_s12  }
 0x108   : > { %p10_p4 = scmp.ge.s32.totalorder %s13_s12, 4  }
 0x10a   :  { %12 = sbr.rel (!%p10_p4) target bundleno = 1 (0x1), region = 62 }

// kernel: rfb_forward.14
= control target key start
LH: loop header
LB: loop body
LE: loop exit
PB: predicated region body
PF: predicated region fallthrough
CT: control target
= control target key end

     0   :  { %s1190_s12 = smov 0   ;;  %s1642_s0 = inlined_call_operand.vmem [shape: f32[512,288], index: 0, kind: input, shape index: {}]   ;;  %s1643_s1 = inlined_call_operand.vmem [shape: f32[288,32], index: 1, kind: input, shape index: {}]   ;;  %s1644_s2 = inlined_call_operand.vmem [shape: f32[1,32], index: 2, kind: input, shape index: {}]   ;;  %s1645_s3 = inlined_call_operand.vmem [shape: f32[512,32], index: 3, kind: output, shape index: {}]  }
   0x1 LB: > { %s951_s13 = sadd.s32 4294967295, %s1167_s12   ;;  %p955_p0 = scmp.ge.s32.totalorder %s1167_s12, 1  ;;  %s1167_s12 = sphi %s1190_s12, %s13_s12  }
   0x2   : > { %p139_p1 = scmp.lt.s32.totalorder %s1167_s12, 3 }
   0x4   : > { %p140_p2 = pnand %p955_p0, %p139_p1 }
   0x5   : > { %s956_s8 = sshll.u32 (!%p140_p2), %s951_s13, 5 }
   0x6   : > { %143 = sbr.rel (%p140_p2) target bundleno = 367 (0x16f), region = 32  ;;  %p165_p3 = scmp.lt.s32.totalorder (!%p140_p2), %s956_s8, 63 }
   0xb   : > { %v288_v0 = vld [vmem:[%s1643_s1 + $0x78] sm:$0xff]  ;;  %v1169_v1 = vmov 0.0   ;;  %v287_v2 = vld [vmem:[%s1643_s1 + $0x70] sm:$0xff]  ;;  %v286_v3 = vld [vmem:[%s1643_s1 + $0x68] sm:$0xff]  ;;  %s1647_s8 = smov (!%p165_p3, %s956_s8), 63  ;;  %vm316_vm0 = vcmask 261120  }
   0xc   : > { %413 = vmatprep.subr.mxu0 %v1169_v1  ;;  %1087 = vmatprep.subr.mxu1 %v1169_v1  ;;  %v285_v4 = vld [vmem:[%s1643_s1 + $0x60] sm:$0xff]  ;;  %v284_v5 = vld [vmem:[%s1643_s1 + $0x58] sm:$0xff]  ;;  %v283_v6 = vld [vmem:[%s1643_s1 + $0x50] sm:$0xff]  ;;  %s1151_s22 = smul.u32 24, %s1647_s8  ;;  %s959_s15 = sshll.u32 %s1647_s8, 3 }
   0xd   : > { %414 = vmatpush1.msra.mxu0 %v288_v0  ;;  %1119 = vmatpush1.msra.mxu1 %v288_v0  ;;  %v282_v7 = vld [vmem:[%s1643_s1 + $0x48] sm:$0xff]  ;;  %v281_v8 = vld [vmem:[%s1643_s1 + $0x40] sm:$0xff]  ;;  %v280_v9 = vld [vmem:[%s1643_s1 + $0x38] sm:$0xff]  ;;  %s1534_s20 = scalar_lea.vmem %s1645_s3, %s959_s15 }
   0xe   : > { %415 = vmatprep.subr.mxu0 %v1169_v1  ;;  %1088 = vmatprep.subr.mxu1 %v1169_v1  ;;  %v279_v10 = vld [vmem:[%s1643_s1 + $0x30] sm:$0xff]  ;;  %v278_v11 = vld [vmem:[%s1643_s1 + $0x28] sm:$0xff]  ;;  %v277_v12 = vld [vmem:[%s1643_s1 + $0x20] sm:$0xff]  ;;  %s1359_s29 = scalar_lea.vmem %s1642_s0, %s1151_s22 }
   0xf   : > { %416 = vmatpush1.msra.mxu0 %v287_v2  ;;  %1120 = vmatpush1.msra.mxu1 %v287_v2  ;;  %v276_v13 = vld [vmem:[%s1643_s1 + $0x18] sm:$0xff]  ;;  %v275_v14 = vld [vmem:[%s1643_s1 + $0x10] sm:$0xff]  ;;  %v274_v15 = vld [vmem:[%s1643_s1 + $0x8] sm:$0xff] }
  0x10   : > { %417 = vmatprep.subr.mxu0 %v1169_v1  ;;  %1089 = vmatprep.subr.mxu1 %v1169_v1  ;;  %v273_v16 = vld [vmem:[%s1643_s1] sm:$0xff]  ;;  %v304_v17 = vld [vmem:[%s1643_s1 + $0xf8] sm:$0xff]  ;;  %v303_v18 = vld [vmem:[%s1643_s1 + $0xf0] sm:$0xff] }
  0x11   : > { %418 = vmatpush1.msra.mxu0 %v286_v3  ;;  %1121 = vmatpush1.msra.mxu1 %v286_v3  ;;  %v302_v19 = vld [vmem:[%s1643_s1 + $0xe8] sm:$0xff]  ;;  %v301_v20 = vld [vmem:[%s1643_s1 + $0xe0] sm:$0xff]  ;;  %v300_v21 = vld [vmem:[%s1643_s1 + $0xd8] sm:$0xff] }
  0x12   : > { %419 = vmatprep.subr.mxu0 %v1169_v1  ;;  %1090 = vmatprep.subr.mxu1 %v1169_v1  ;;  %v299_v22 = vld [vmem:[%s1643_s1 + $0xd0] sm:$0xff]  ;;  %v298_v23 = vld [vmem:[%s1643_s1 + $0xc8] sm:$0xff]  ;;  %v297_v24 = vld [vmem:[%s1643_s1 + $0xc0] sm:$0xff] }
  0x13   : > { %420 = vmatpush1.msra.mxu0 %v285_v4  ;;  %1122 = vmatpush1.msra.mxu1 %v285_v4  ;;  %v296_v25 = vld [vmem:[%s1643_s1 + $0xb8] sm:$0xff]  ;;  %v295_v26 = vld [vmem:[%s1643_s1 + $0xb0] sm:$0xff]  ;;  %v294_v27 = vld [vmem:[%s1643_s1 + $0xa8] sm:$0xff] }
  0x14   : > { %421 = vmatprep.subr.mxu0 %v1169_v1  ;;  %1091 = vmatprep.subr.mxu1 %v1169_v1  ;;  %v293_v28 = vld [vmem:[%s1643_s1 + $0xa0] sm:$0xff]  ;;  %v292_v29 = vld [vmem:[%s1643_s1 + $0x98] sm:$0xff]  ;;  %v291_v30 = vld [vmem:[%s1643_s1 + $0x90] sm:$0xff] }
  0x15   : > { %422 = vmatpush1.msra.mxu0 %v284_v5  ;;  %1123 = vmatpush1.msra.mxu1 %v284_v5  ;;  %v290_v31 = vld [vmem:[%s1643_s1 + $0x88] sm:$0xff]  ;;  %v289_v32 = vld [vmem:[%s1643_s1 + $0x80] sm:$0xff]  ;;  %v308_v37 = vld [vmem:[%s1643_s1 + $0x118] sm:$0xff] }
  0x16   : > { %423 = vmatprep.subr.mxu0 %v1169_v1  ;;  %1092 = vmatprep.subr.mxu1 %v1169_v1  ;;  %v178_v33 = vld [vmem:[%s1359_s29 + $0x8] sm:$0xff]  ;;  %v177_v35 = vld [vmem:[%s1359_s29] sm:$0xff]  ;;  %v307_v40 = vld [vmem:[%s1643_s1 + $0x110] sm:$0xff] }
  0x17   : > { %424 = vmatpush1.msra.mxu0 %v283_v6  ;;  %1124 = vmatpush1.msra.mxu1 %v283_v6  ;;  %v250_v34 = vld [vmem:[%s1359_s29 + $0x248] sm:$0xff]  ;;  %v249_v36 = vld [vmem:[%s1359_s29 + $0x240] sm:$0xff]  ;;  %v180_v41 = vld [vmem:[%s1359_s29 + $0x18] sm:$0xff] }
  0x18   : > { %425 = vmatprep.subr.mxu0 %v1169_v1  ;;  %1093 = vmatprep.subr.mxu1 %v1169_v1  ;;  %v181_v38 = vld [vmem:[%s1359_s29 + $0x20] sm:$0xff]  ;;  %v252_v42 = vld [vmem:[%s1359_s29 + $0x258] sm:$0xff]  ;;  %v306_v45 = vld [vmem:[%s1643_s1 + $0x108] sm:$0xff] }
  0x19   : > { %426 = vmatpush1.msra.mxu0 %v282_v7  ;;  %1125 = vmatpush1.msra.mxu1 %v282_v7  ;;  %v253_v39 = vld [vmem:[%s1359_s29 + $0x260] sm:$0xff]  ;;  %v184_v43 = vld [vmem:[%s1359_s29 + $0x38] sm:$0xff]  ;;  %v183_v46 = vld [vmem:[%s1359_s29 + $0x30] sm:$0xff] }
  0x1a   : > { %427 = vmatprep.subr.mxu0 %v1169_v1  ;;  %1094 = vmatprep.subr.mxu1 %v1169_v1  ;;  %v256_v44 = vld [vmem:[%s1359_s29 + $0x278] sm:$0xff]  ;;  %v255_v47 = vld [vmem:[%s1359_s29 + $0x270] sm:$0xff]  ;;  %v305_v50 = vld [vmem:[%s1643_s1 + $0x100] sm:$0xff] }
  0x1b   : > { %428 = vmatpush1.msra.mxu0 %v281_v8  ;;  %1126 = vmatpush1.msra.mxu1 %v281_v8  ;;  %v187_v48 = vld [vmem:[%s1359_s29 + $0x50] sm:$0xff]  ;;  %v186_v51 = vld [vmem:[%s1359_s29 + $0x48] sm:$0xff]  ;;  %v189_v55 = vld [vmem:[%s1359_s29 + $0x60] sm:$0xff] }
  0x1c   : > { %429 = vmatprep.subr.mxu0 %v1169_v1  ;;  %1095 = vmatprep.subr.mxu1 %v1169_v1  ;;  %v259_v49 = vld [vmem:[%s1359_s29 + $0x290] sm:$0xff]  ;;  %v258_v52 = vld [vmem:[%s1359_s29 + $0x288] sm:$0xff]  ;;  %v261_v56 = vld [vmem:[%s1359_s29 + $0x2a0] sm:$0xff] }
  0x1d   : > { %430 = vmatpush1.msra.mxu0 %v280_v9  ;;  %1127 = vmatpush1.msra.mxu1 %v280_v9  ;;  %v190_v53 = vld [vmem:[%s1359_s29 + $0x68] sm:$0xff]  ;;  %v193_v57 = vld [vmem:[%s1359_s29 + $0x80] sm:$0xff]  ;;  %v192_v59 = vld [vmem:[%s1359_s29 + $0x78] sm:$0xff] }
  0x1e   : > { %431 = vmatprep.subr.mxu0 %v1169_v1  ;;  %1096 = vmatprep.subr.mxu1 %v1169_v1  ;;  %v262_v54 = vld [vmem:[%s1359_s29 + $0x2a8] sm:$0xff]  ;;  %v265_v58 = vld [vmem:[%s1359_s29 + $0x2c0] sm:$0xff]  ;;  %v264_v60 = vld [vmem:[%s1359_s29 + $0x2b8] sm:$0xff] }
  0x1f   : > { %432 = vmatpush1.msra.mxu0 %v279_v10  ;;  %1128 = vmatpush1.msra.mxu1 %v279_v10  ;;  %v196_v61 = vld [vmem:[%s1359_s29 + $0x98] sm:$0xff]  ;;  %v195_v63 = vld [vmem:[%s1359_s29 + $0x90] sm:$0xff]  ;;  %v198_v3 = vld [vmem:[%s1359_s29 + $0xa8] sm:$0xff] }
  0x20   : > { %433 = vmatprep.subr.mxu0 %v1169_v1  ;;  %1097 = vmatprep.subr.mxu1 %v1169_v1  ;;  %v268_v62 = vld [vmem:[%s1359_s29 + $0x2d8] sm:$0xff]  ;;  %v267_v0 = vld [vmem:[%s1359_s29 + $0x2d0] sm:$0xff]  ;;  %v270_v4 = vld [vmem:[%s1359_s29 + $0x2e8] sm:$0xff] }
  0x21   : > { %434 = vmatpush1.msra.mxu0 %v278_v11  ;;  %1129 = vmatpush1.msra.mxu1 %v278_v11  ;;  %v271_v2 = vld [vmem:[%s1359_s29 + $0x2f0] sm:$0xff]  ;;  %v202_v5 = vld [vmem:[%s1359_s29 + $0xc8] sm:$0xff]  ;;  %v201_v7 = vld [vmem:[%s1359_s29 + $0xc0] sm:$0xff] }
  0x22   : > { %435 = vmatprep.subr.mxu0 %v1169_v1  ;;  %1098 = vmatprep.subr.mxu1 %v1169_v1  ;;  %v179_v6 = vld [vmem:[%s1359_s29 + $0x10] sm:$0xff]  ;;  %v182_v8 = vld [vmem:[%s1359_s29 + $0x28] sm:$0xff]  ;;  %v205_v9 = vld [vmem:[%s1359_s29 + $0xe0] sm:$0xff] }
  0x23   : > { %436 = vmatpush1.msra.mxu0 %v277_v12  ;;  %1130 = vmatpush1.msra.mxu1 %v277_v12  ;;  %v185_v10 = vld [vmem:[%s1359_s29 + $0x40] sm:$0xff]  ;;  %v204_v11 = vld [vmem:[%s1359_s29 + $0xd8] sm:$0xff] }
  0x24   : > { %437 = vmatprep.subr.mxu0 %v1169_v1  ;;  %1099 = vmatprep.subr.mxu1 %v1169_v1  ;;  %v188_v12 = vld [vmem:[%s1359_s29 + $0x58] sm:$0xff] }
  0x25   : > { %438 = vmatpush1.msra.mxu0 %v276_v13  ;;  %1131 = vmatpush1.msra.mxu1 %v276_v13  ;;  %v208_v13 = vld [vmem:[%s1359_s29 + $0xf8] sm:$0xff] }
  0x26   : > { %439 = vmatprep.subr.mxu0 %v1169_v1  ;;  %1100 = vmatprep.subr.mxu1 %v1169_v1 }
  0x27   : > { %440 = vmatpush1.msra.mxu0 %v275_v14  ;;  %1132 = vmatpush1.msra.mxu1 %v275_v14  ;;  %v191_v14 = vld [vmem:[%s1359_s29 + $0x70] sm:$0xff] }
  0x28   : > { %441 = vmatprep.subr.mxu0 %v1169_v1  ;;  %1101 = vmatprep.subr.mxu1 %v1169_v1 }
  0x29   : > { %442 = vmatpush1.msra.mxu0 %v274_v15  ;;  %1133 = vmatpush1.msra.mxu1 %v274_v15  ;;  %v207_v15 = vld [vmem:[%s1359_s29 + $0xf0] sm:$0xff] }
  0x2a   : > { %443 = vmatprep.subr.mxu0 %v1169_v1  ;;  %1102 = vmatprep.subr.mxu1 %v1169_v1 }
  0x2b   : > { %444 = vmatpush1.msra.mxu0 %v273_v16  ;;  %1134 = vmatpush1.msra.mxu1 %v273_v16  ;;  %v194_v16 = vld [vmem:[%s1359_s29 + $0x88] sm:$0xff] }
  0x2c   : > { %445 = vmatprep.subr.mxu0 %v1169_v1  ;;  %1103 = vmatprep.subr.mxu1 %v1169_v1 }
  0x2d   : > { %446 = vmatpush2.msra.mxu0 %v304_v17  ;;  %1135 = vmatpush2.msra.mxu1 %v304_v17  ;;  %v211_v17 = vld [vmem:[%s1359_s29 + $0x110] sm:$0xff] }
  0x2e   : > { %447 = vmatprep.subr.mxu0 %v1169_v1  ;;  %1104 = vmatprep.subr.mxu1 %v1169_v1 }
  0x2f   : > { %448 = vmatpush2.msra.mxu0 %v303_v18  ;;  %1136 = vmatpush2.msra.mxu1 %v303_v18  ;;  %v197_v18 = vld [vmem:[%s1359_s29 + $0xa0] sm:$0xff] }
  0x30   : > { %449 = vmatprep.subr.mxu0 %v1169_v1  ;;  %1105 = vmatprep.subr.mxu1 %v1169_v1 }
  0x31   : > { %450 = vmatpush2.msra.mxu0 %v302_v19  ;;  %1137 = vmatpush2.msra.mxu1 %v302_v19  ;;  %v210_v19 = vld [vmem:[%s1359_s29 + $0x108] sm:$0xff] }
  0x32   : > { %451 = vmatprep.subr.mxu0 %v1169_v1  ;;  %1106 = vmatprep.subr.mxu1 %v1169_v1 }
  0x33   : > { %452 = vmatpush2.msra.mxu0 %v301_v20  ;;  %1138 = vmatpush2.msra.mxu1 %v301_v20  ;;  %v200_v20 = vld [vmem:[%s1359_s29 + $0xb8] sm:$0xff] }
  0x34   : > { %453 = vmatprep.subr.mxu0 %v1169_v1  ;;  %1107 = vmatprep.subr.mxu1 %v1169_v1 }
  0x35   : > { %454 = vmatpush2.msra.mxu0 %v300_v21  ;;  %1139 = vmatpush2.msra.mxu1 %v300_v21  ;;  %v214_v21 = vld [vmem:[%s1359_s29 + $0x128] sm:$0xff] }
  0x36   : > { %455 = vmatprep.subr.mxu0 %v1169_v1  ;;  %1108 = vmatprep.subr.mxu1 %v1169_v1 }
  0x37   : > { %456 = vmatpush2.msra.mxu0 %v299_v22  ;;  %1140 = vmatpush2.msra.mxu1 %v299_v22  ;;  %v203_v22 = vld [vmem:[%s1359_s29 + $0xd0] sm:$0xff] }
  0x38   : > { %457 = vmatprep.subr.mxu0 %v1169_v1  ;;  %1109 = vmatprep.subr.mxu1 %v1169_v1 }
  0x39   : > { %458 = vmatpush2.msra.mxu0 %v298_v23  ;;  %1141 = vmatpush2.msra.mxu1 %v298_v23  ;;  %v213_v23 = vld [vmem:[%s1359_s29 + $0x120] sm:$0xff] }
  0x3a   : > { %459 = vmatprep.subr.mxu0 %v1169_v1  ;;  %1110 = vmatprep.subr.mxu1 %v1169_v1 }
  0x3b   : > { %460 = vmatpush2.msra.mxu0 %v297_v24  ;;  %1142 = vmatpush2.msra.mxu1 %v297_v24  ;;  %v206_v24 = vld [vmem:[%s1359_s29 + $0xe8] sm:$0xff] }
  0x3c   : > { %461 = vmatprep.subr.mxu0 %v1169_v1  ;;  %1111 = vmatprep.subr.mxu1 %v1169_v1 }
  0x3d   : > { %462 = vmatpush2.msra.mxu0 %v296_v25  ;;  %1143 = vmatpush2.msra.mxu1 %v296_v25  ;;  %v217_v25 = vld [vmem:[%s1359_s29 + $0x140] sm:$0xff] }
  0x3e   : > { %463 = vmatprep.subr.mxu0 %v1169_v1  ;;  %1112 = vmatprep.subr.mxu1 %v1169_v1 }
  0x3f   : > { %464 = vmatpush2.msra.mxu0 %v295_v26  ;;  %1144 = vmatpush2.msra.mxu1 %v295_v26  ;;  %v209_v26 = vld [vmem:[%s1359_s29 + $0x100] sm:$0xff] }
  0x40   : > { %465 = vmatprep.subr.mxu0 %v1169_v1  ;;  %1113 = vmatprep.subr.mxu1 %v1169_v1 }
  0x41   : > { %466 = vmatpush2.msra.mxu0 %v294_v27  ;;  %1145 = vmatpush2.msra.mxu1 %v294_v27  ;;  %v216_v27 = vld [vmem:[%s1359_s29 + $0x138] sm:$0xff] }
  0x42   : > { %467 = vmatprep.subr.mxu0 %v1169_v1  ;;  %1114 = vmatprep.subr.mxu1 %v1169_v1 }
  0x43   : > { %468 = vmatpush2.msra.mxu0 %v293_v28  ;;  %1146 = vmatpush2.msra.mxu1 %v293_v28  ;;  %v212_v28 = vld [vmem:[%s1359_s29 + $0x118] sm:$0xff] }
  0x44   : > { %469 = vmatprep.subr.mxu0 %v1169_v1  ;;  %1115 = vmatprep.subr.mxu1 %v1169_v1 }
  0x45   : > { %470 = vmatpush2.msra.mxu0 %v292_v29  ;;  %1147 = vmatpush2.msra.mxu1 %v292_v29  ;;  %v220_v29 = vld [vmem:[%s1359_s29 + $0x158] sm:$0xff] }
  0x46   : > { %471 = vmatprep.subr.mxu0 %v1169_v1  ;;  %1116 = vmatprep.subr.mxu1 %v1169_v1 }
  0x47   : > { %472 = vmatpush2.msra.mxu0 %v291_v30  ;;  %1148 = vmatpush2.msra.mxu1 %v291_v30  ;;  %v215_v30 = vld [vmem:[%s1359_s29 + $0x130] sm:$0xff] }
  0x48   : > { %473 = vmatprep.subr.mxu0 %v1169_v1  ;;  %1117 = vmatprep.subr.mxu1 %v1169_v1 }
  0x49   : > { %474 = vmatpush2.msra.mxu0 %v290_v31  ;;  %1149 = vmatpush2.msra.mxu1 %v290_v31  ;;  %v219_v31 = vld [vmem:[%s1359_s29 + $0x150] sm:$0xff] }
  0x4a   : > { %475 = vmatprep.subr.mxu0 %v1169_v1  ;;  %1118 = vmatprep.subr.mxu1 %v1169_v1  ;;  %v199_v1 = vld [vmem:[%s1359_s29 + $0xb0] sm:$0xff] }
  0x4b   : > { %476 = vmatpush2.msra.mxu0 %v289_v32  ;;  %1150 = vmatpush2.msra.mxu1 %v289_v32  ;;  %v218_v32 = vld [vmem:[%s1359_s29 + $0x148] sm:$0xff] }
  0x4c   : > { %477 = vmatprep.mubr.f32.mxu0 %v178_v33  ;;  %597 = vmatprep.mubr.f32.mxu1 %v250_v34  ;;  %v223_v33 = vld [vmem:[%s1359_s29 + $0x170] sm:$0xff]  ;;  %v221_v34 = vld [vmem:[%s1359_s29 + $0x160] sm:$0xff] }
  0x4d   : > { %478 = vmatmul.mubr.f32.vlgmr.msra.gmra.mxu0 %v177_v35  ;;  %598 = vmatmul.mubr.f32.vlgmr.msra.gmra.mxu1 %v249_v36  ;;  %v222_v35 = vld [vmem:[%s1359_s29 + $0x168] sm:$0xff]  ;;  %v224_v36 = vld [vmem:[%s1359_s29 + $0x178] sm:$0xff] }
  0x4e   : > { %1031 = vmatprep.subr.mxu1 %v308_v37  ;;  %482 = vmatprep.mubr.f32.mxu0 %v181_v38  ;;  %v227_v38 = vld [vmem:[%s1359_s29 + $0x190] sm:$0xff] }
  0x4f   : > { %1032 = vmatpush3.msra.mxu1 %v308_v37  ;;  %602 = vmatprep.mubr.f32.mxu1 %v253_v39  ;;  %v226_v37 = vld [vmem:[%s1359_s29 + $0x188] sm:$0xff]  ;;  %v225_v39 = vld [vmem:[%s1359_s29 + $0x180] sm:$0xff] }
  0x50   : > { %1033 = vmatprep.subr.mxu1 %v307_v40 }
  0x51   : > { %483 = vmatmul.mubr.f32.gmra.mxu0 %v180_v41  ;;  %603 = vmatmul.mubr.f32.gmra.mxu1 %v252_v42  ;;  %v229_v41 = vld [vmem:[%s1359_s29 + $0x1a0] sm:$0xff] }
  0x52   : > { %487 = vmatprep.mubr.f32.mxu0 %v184_v43  ;;  %607 = vmatprep.mubr.f32.mxu1 %v256_v44  ;;  %v233_v42 = vld [vmem:[%s1359_s29 + $0x1c0] sm:$0xff]  ;;  %v228_v43 = vld [vmem:[%s1359_s29 + $0x198] sm:$0xff] }
  0x53   : > { %1034 = vmatpush3.msra.mxu1 %v307_v40  ;;  %v230_v40 = vld [vmem:[%s1359_s29 + $0x1a8] sm:$0xff]  ;;  %v236_v44 = vld [vmem:[%s1359_s29 + $0x1d8] sm:$0xff] }
  0x54   : > { %1035 = vmatprep.subr.mxu1 %v306_v45 }
  0x55   : > { %488 = vmatmul.mubr.f32.gmra.mxu0 %v183_v46  ;;  %608 = vmatmul.mubr.f32.gmra.mxu1 %v255_v47  ;;  %v239_v46 = vld [vmem:[%s1359_s29 + $0x1f0] sm:$0xff] }
  0x56   : > { %492 = vmatprep.mubr.f32.mxu0 %v187_v48  ;;  %612 = vmatprep.mubr.f32.mxu1 %v259_v49  ;;  %v231_v47 = vld [vmem:[%s1359_s29 + $0x1b0] sm:$0xff]  ;;  %v242_v48 = vld [vmem:[%s1359_s29 + $0x208] sm:$0xff] }
  0x57   : > { %1036 = vmatpush3.msra.mxu1 %v306_v45  ;;  %v232_v45 = vld [vmem:[%s1359_s29 + $0x1b8] sm:$0xff]  ;;  %v235_v49 = vld [vmem:[%s1359_s29 + $0x1d0] sm:$0xff] }
  0x58   : > { %1037 = vmatprep.subr.mxu1 %v305_v50 }
  0x59   : > { %493 = vmatmul.mubr.f32.gmra.mxu0 %v186_v51  ;;  %613 = vmatmul.mubr.f32.gmra.mxu1 %v258_v52  ;;  %v234_v51 = vld [vmem:[%s1359_s29 + $0x1c8] sm:$0xff]  ;;  %v248_v52 = vld [vmem:[%s1359_s29 + $0x238] sm:$0xff] }
  0x5a   : > { %497 = vmatprep.mubr.f32.mxu0 %v190_v53  ;;  %617 = vmatprep.mubr.f32.mxu1 %v262_v54  ;;  %v238_v53 = vld [vmem:[%s1359_s29 + $0x1e8] sm:$0xff]  ;;  %v251_v54 = vld [vmem:[%s1359_s29 + $0x250] sm:$0xff] }
  0x5b   : > { %1038 = vmatpush3.msra.mxu1 %v305_v50  ;;  %v245_v50 = vld [vmem:[%s1359_s29 + $0x220] sm:$0xff] }
  0x5d   : > { %498 = vmatmul.mubr.f32.gmra.mxu0 %v189_v55  ;;  %618 = vmatmul.mubr.f32.gmra.mxu1 %v261_v56  ;;  %v237_v55 = vld [vmem:[%s1359_s29 + $0x1e0] sm:$0xff]  ;;  %v254_v56 = vld [vmem:[%s1359_s29 + $0x268] sm:$0xff] }
  0x5e   : > { %502 = vmatprep.mubr.f32.mxu0 %v193_v57  ;;  %622 = vmatprep.mubr.f32.mxu1 %v265_v58  ;;  %v241_v57 = vld [vmem:[%s1359_s29 + $0x200] sm:$0xff] }
  0x5f   : > { %v257_v58 = vld [vmem:[%s1359_s29 + $0x280] sm:$0xff] }
  0x61   : > { %503 = vmatmul.mubr.f32.gmra.mxu0 %v192_v59  ;;  %623 = vmatmul.mubr.f32.gmra.mxu1 %v264_v60  ;;  %v240_v59 = vld [vmem:[%s1359_s29 + $0x1f8] sm:$0xff] }
  0x62   : > { %507 = vmatprep.mubr.f32.mxu0 %v196_v61  ;;  %627 = vmatprep.mubr.f32.mxu1 %v268_v62  ;;  %v260_v60 = vld [vmem:[%s1359_s29 + $0x298] sm:$0xff]  ;;  %v263_v62 = vld [vmem:[%s1359_s29 + $0x2b0] sm:$0xff] }
  0x63   : > { %v244_v61 = vld [vmem:[%s1359_s29 + $0x218] sm:$0xff] }
  0x65   : > { %508 = vmatmul.mubr.f32.gmra.mxu0 %v195_v63  ;;  %628 = vmatmul.mubr.f32.gmra.mxu1 %v267_v0  ;;  %v243_v63 = vld [vmem:[%s1359_s29 + $0x210] sm:$0xff]  ;;  %v266_v0 = vld [vmem:[%s1359_s29 + $0x2c8] sm:$0xff] }
  0x66   : > { %512 = vmatprep.mubr.f32.mxu0 %v199_v1  ;;  %632 = vmatprep.mubr.f32.mxu1 %v271_v2  ;;  %v247_v1 = vld [vmem:[%s1359_s29 + $0x230] sm:$0xff]  ;;  %v269_v2 = vld [vmem:[%s1359_s29 + $0x2e0] sm:$0xff] }
  0x69   : > { %513 = vmatmul.mubr.f32.gmra.mxu0 %v198_v3  ;;  %633 = vmatmul.mubr.f32.gmra.mxu1 %v270_v4  ;;  %v246_v3 = vld [vmem:[%s1359_s29 + $0x228] sm:$0xff]  ;;  %v272_v4 = vld [vmem:[%s1359_s29 + $0x2f8] sm:$0xff] }
  0x6a   : > { %517 = vmatprep.mubr.f32.mxu0 %v202_v5  ;;  %1039 = vmatprep.mubr.msk.f32.mxu1 %vm316_vm0, %v179_v6 }
  0x6d   : > { %518 = vmatmul.mubr.f32.gmra.mxu0 %v201_v7  ;;  %1040 = vmatmul.mubr.msk.f32.vlgmr.msra.gmra.mxu1 %vm316_vm0, %v182_v8 }
  0x6e   : > { %522 = vmatprep.mubr.f32.mxu0 %v205_v9  ;;  %1042 = vmatprep.mubr.msk.f32.mxu1 %vm316_vm0, %v185_v10 }
  0x71   : > { %523 = vmatmul.mubr.f32.gmra.mxu0 %v204_v11  ;;  %1043 = vmatmul.mubr.msk.f32.gmra.mxu1 %vm316_vm0, %v188_v12 }
  0x72   : > { %527 = vmatprep.mubr.f32.mxu0 %v208_v13  ;;  %1045 = vmatprep.mubr.msk.f32.mxu1 %vm316_vm0, %v191_v14 }
  0x75   : > { %528 = vmatmul.mubr.f32.gmra.mxu0 %v207_v15  ;;  %1046 = vmatmul.mubr.msk.f32.gmra.mxu1 %vm316_vm0, %v194_v16 }
  0x76   : > { %532 = vmatprep.mubr.f32.mxu0 %v211_v17  ;;  %1048 = vmatprep.mubr.msk.f32.mxu1 %vm316_vm0, %v197_v18 }
  0x79   : > { %533 = vmatmul.mubr.f32.gmra.mxu0 %v210_v19  ;;  %1049 = vmatmul.mubr.msk.f32.gmra.mxu1 %vm316_vm0, %v200_v20 }
  0x7a   : > { %537 = vmatprep.mubr.f32.mxu0 %v214_v21  ;;  %1051 = vmatprep.mubr.msk.f32.mxu1 %vm316_vm0, %v203_v22 }
  0x7d   : > { %538 = vmatmul.mubr.f32.gmra.mxu0 %v213_v23  ;;  %1052 = vmatmul.mubr.msk.f32.gmra.mxu1 %vm316_vm0, %v206_v24 }
  0x7e   : > { %542 = vmatprep.mubr.f32.mxu0 %v217_v25  ;;  %1054 = vmatprep.mubr.msk.f32.mxu1 %vm316_vm0, %v209_v26 }
  0x81   : > { %543 = vmatmul.mubr.f32.gmra.mxu0 %v216_v27  ;;  %1055 = vmatmul.mubr.msk.f32.gmra.mxu1 %vm316_vm0, %v212_v28 }
  0x82   : > { %547 = vmatprep.mubr.f32.mxu0 %v220_v29  ;;  %1057 = vmatprep.mubr.msk.f32.mxu1 %vm316_vm0, %v215_v30 }
  0x85   : > { %548 = vmatmul.mubr.f32.gmra.mxu0 %v219_v31  ;;  %1058 = vmatmul.mubr.msk.f32.gmra.mxu1 %vm316_vm0, %v218_v32 }
  0x86   : > { %552 = vmatprep.mubr.f32.mxu0 %v223_v33  ;;  %1060 = vmatprep.mubr.msk.f32.mxu1 %vm316_vm0, %v221_v34 }
  0x89   : > { %553 = vmatmul.mubr.f32.gmra.mxu0 %v222_v35  ;;  %1061 = vmatmul.mubr.msk.f32.gmra.mxu1 %vm316_vm0, %v224_v36  ;;  %v1528_v35 = vld [vmem:[%s1644_s2] ss:$0 sm:$0xff] }
  0x8a   : > { %557 = vmatprep.mubr.f32.mxu0 %v226_v37  ;;  %1063 = vmatprep.mubr.msk.f32.mxu1 %vm316_vm0, %v227_v38 }
  0x8d   : > { %558 = vmatmul.mubr.f32.gmra.mxu0 %v225_v39  ;;  %1064 = vmatmul.mubr.msk.f32.gmra.mxu1 %vm316_vm0, %v230_v40 }
  0x8e   : > { %562 = vmatprep.mubr.f32.mxu0 %v229_v41  ;;  %1066 = vmatprep.mubr.msk.f32.mxu1 %vm316_vm0, %v233_v42 }
  0x91   : > { %563 = vmatmul.mubr.f32.gmra.mxu0 %v228_v43  ;;  %1067 = vmatmul.mubr.msk.f32.gmra.mxu1 %vm316_vm0, %v236_v44 }
  0x92   : > { %567 = vmatprep.mubr.f32.mxu0 %v232_v45  ;;  %1069 = vmatprep.mubr.msk.f32.mxu1 %vm316_vm0, %v239_v46 }
  0x95   : > { %568 = vmatmul.mubr.f32.gmra.mxu0 %v231_v47  ;;  %1070 = vmatmul.mubr.msk.f32.gmra.mxu1 %vm316_vm0, %v242_v48 }
  0x96   : > { %572 = vmatprep.mubr.f32.mxu0 %v235_v49  ;;  %1072 = vmatprep.mubr.msk.f32.mxu1 %vm316_vm0, %v245_v50 }
  0x99   : > { %573 = vmatmul.mubr.f32.gmra.mxu0 %v234_v51  ;;  %1073 = vmatmul.mubr.msk.f32.gmra.mxu1 %vm316_vm0, %v248_v52 }
  0x9a   : > { %577 = vmatprep.mubr.f32.mxu0 %v238_v53  ;;  %1075 = vmatprep.mubr.msk.f32.mxu1 %vm316_vm0, %v251_v54 }
  0x9d   : > { %578 = vmatmul.mubr.f32.gmra.mxu0 %v237_v55  ;;  %1076 = vmatmul.mubr.msk.f32.gmra.mxu1 %vm316_vm0, %v254_v56 }
  0x9e   : > { %582 = vmatprep.mubr.f32.mxu0 %v241_v57  ;;  %1078 = vmatprep.mubr.msk.f32.mxu1 %vm316_vm0, %v257_v58 }
  0xa1   : > { %583 = vmatmul.mubr.f32.gmra.mxu0 %v240_v59  ;;  %1079 = vmatmul.mubr.msk.f32.gmra.mxu1 %vm316_vm0, %v260_v60 }
  0xa2   : > { %587 = vmatprep.mubr.f32.mxu0 %v244_v61  ;;  %1081 = vmatprep.mubr.msk.f32.mxu1 %vm316_vm0, %v263_v62 }
  0xa5   : > { %588 = vmatmul.mubr.f32.gmra.mxu0 %v243_v63  ;;  %1082 = vmatmul.mubr.msk.f32.gmra.mxu1 %vm316_vm0, %v266_v0 }
  0xa6   : > { %592 = vmatprep.mubr.f32.mxu0 %v247_v1  ;;  %1084 = vmatprep.mubr.msk.f32.mxu1 %vm316_vm0, %v269_v2 }
  0xa9   : > { %593 = vmatmul.mubr.f32.gmra.mxu0 %v246_v3  ;;  %1085 = vmatmul.mubr.msk.f32.gmra.mxu1 %vm316_vm0, %v272_v4 }
 0x10d   : > { %v479_v5 = vpop.f32.mrf.mxu0  ;;  %v1508_v6 = vpop.f32.mrf.mxu1 }
 0x10e   : > { %v480_v41 = vadd.f32 %v1528_v35, %v479_v5 }
 0x10f   : > { %v481_v7 = vpop.f32.mrf.mxu0  ;;  %v601_v8 = vpop.f32.mrf.mxu1 }
 0x111   : > { %v484_v9 = vpop.f32.mrf.mxu0  ;;  %v1510_v10 = vpop.f32.mrf.mxu1 }
 0x112   : > { %v485_v38 = vadd.f32 %v1528_v35, %v484_v9 }
 0x113   : > { %v486_v11 = vpop.f32.mrf.mxu0  ;;  %v606_v12 = vpop.f32.mrf.mxu1 }
 0x115   : > { %v489_v13 = vpop.f32.mrf.mxu0  ;;  %v1512_v14 = vpop.f32.mrf.mxu1 }
 0x116   : > { %v490_v49 = vadd.f32 %v1528_v35, %v489_v13 }
 0x117   : > { %v491_v15 = vpop.f32.mrf.mxu0  ;;  %v611_v16 = vpop.f32.mrf.mxu1 }
 0x119   : > { %v494_v17 = vpop.f32.mrf.mxu0  ;;  %v1514_v18 = vpop.f32.mrf.mxu1 }
 0x11a   : > { %v495_v45 = vadd.f32 %v1528_v35, %v494_v17 }
 0x11b   : > { %v496_v19 = vpop.f32.mrf.mxu0  ;;  %v616_v20 = vpop.f32.mrf.mxu1 }
 0x11d   : > { %v499_v21 = vpop.f32.mrf.mxu0  ;;  %v1516_v22 = vpop.f32.mrf.mxu1 }
 0x11e   : > { %v500_v57 = vadd.f32 %v1528_v35, %v499_v21 }
 0x11f   : > { %v501_v23 = vpop.f32.mrf.mxu0  ;;  %v621_v24 = vpop.f32.mrf.mxu1 }
 0x121   : > { %v504_v25 = vpop.f32.mrf.mxu0  ;;  %v1518_v26 = vpop.f32.mrf.mxu1 }
 0x122   : > { %v505_v53 = vadd.f32 %v1528_v35, %v504_v25 }
 0x123   : > { %v506_v27 = vpop.f32.mrf.mxu0  ;;  %v626_v28 = vpop.f32.mrf.mxu1 }
 0x125   : > { %v509_v29 = vpop.f32.mrf.mxu0  ;;  %v1520_v30 = vpop.f32.mrf.mxu1 }
 0x126   : > { %v510_v1 = vadd.f32 %v1528_v35, %v509_v29 }
 0x127   : > { %v511_v31 = vpop.f32.mrf.mxu0  ;;  %v631_v32 = vpop.f32.mrf.mxu1 }
 0x129   : > { %v514_v33 = vpop.f32.mrf.mxu0  ;;  %v1522_v34 = vpop.f32.mrf.mxu1 }
 0x12a   : > { %v515_v61 = vadd.f32 %v1528_v35, %v514_v33 }
 0x12b   : > { %v516_v36 = vpop.f32.mrf.mxu0  ;;  %v636_v37 = vpop.f32.mrf.mxu1 }
 0x12d   : > { %v519_v39 = vpop.f32.mrf.mxu0  ;;  %v1041_v40 = vpop.f32.mrf.mxu1 }
 0x12e   : > { %v710_v42 = vadd.f32 %v1041_v40, %v485_v38  ;;  %v520_v11 = vadd.f32 %v1528_v35, %v519_v39 }
 0x12f   : > { %v521_v43 = vpop.f32.mrf.mxu0  ;;  %v704_v44 = vpop.f32.mrf.mxu1 }
 0x130   : > { %864 = vst.msk [vmem:[%s1534_s20 + $0x8] sm:$0xff] %vm316_vm0, %v710_v42  ;;  %v705_v46 = vadd.f32 %v704_v44, %v480_v41 }
 0x131   : > { %v524_v47 = vpop.f32.mrf.mxu0  ;;  %v1044_v48 = vpop.f32.mrf.mxu1 }
 0x132   : > { %863 = vst.msk [vmem:[%s1534_s20] sm:$0xff] %vm316_vm0, %v705_v46  ;;  %v720_v50 = vadd.f32 %v1044_v48, %v495_v45  ;;  %v525_v5 = vadd.f32 %v1528_v35, %v524_v47 }
 0x133   : > { %v526_v51 = vpop.f32.mrf.mxu0  ;;  %v714_v52 = vpop.f32.mrf.mxu1 }
 0x134   : > { %866 = vst.msk [vmem:[%s1534_s20 + $0x18] sm:$0xff] %vm316_vm0, %v720_v50  ;;  %v715_v54 = vadd.f32 %v714_v52, %v490_v49 }
 0x135   : > { %v529_v55 = vpop.f32.mrf.mxu0  ;;  %v1047_v56 = vpop.f32.mrf.mxu1 }
 0x136   : > { %865 = vst.msk [vmem:[%s1534_s20 + $0x10] sm:$0xff] %vm316_vm0, %v715_v54  ;;  %v730_v58 = vadd.f32 %v1047_v56, %v505_v53  ;;  %v530_v21 = vadd.f32 %v1528_v35, %v529_v55 }
 0x137   : > { %v531_v59 = vpop.f32.mrf.mxu0  ;;  %v724_v60 = vpop.f32.mrf.mxu1 }
 0x138   : > { %868 = vst.msk [vmem:[%s1534_s20 + $0x28] sm:$0xff] %vm316_vm0, %v730_v58  ;;  %v725_v62 = vadd.f32 %v724_v60, %v500_v57 }
 0x139   : > { %v534_v63 = vpop.f32.mrf.mxu0  ;;  %v1050_v0 = vpop.f32.mrf.mxu1 }
 0x13a   : > { %867 = vst.msk [vmem:[%s1534_s20 + $0x20] sm:$0xff] %vm316_vm0, %v725_v62  ;;  %v740_v2 = vadd.f32 %v1050_v0, %v515_v61  ;;  %v535_v16 = vadd.f32 %v1528_v35, %v534_v63 }
 0x13b   : > { %v536_v3 = vpop.f32.mrf.mxu0  ;;  %v734_v4 = vpop.f32.mrf.mxu1 }
 0x13c   : > { %870 = vst.msk [vmem:[%s1534_s20 + $0x38] sm:$0xff] %vm316_vm0, %v740_v2  ;;  %v735_v7 = vadd.f32 %v734_v4, %v510_v1 }
 0x13d   : > { %v539_v8 = vpop.f32.mrf.mxu0  ;;  %v1053_v9 = vpop.f32.mrf.mxu1 }
 0x13e   : > { %869 = vst.msk [vmem:[%s1534_s20 + $0x30] sm:$0xff] %vm316_vm0, %v735_v7  ;;  %v750_v12 = vadd.f32 %v1053_v9, %v525_v5  ;;  %v540_v32 = vadd.f32 %v1528_v35, %v539_v8  ;;  %v605_v7 = vadd.f32 %v1528_v35, %v1510_v10 }
 0x13f   : > { %v541_v13 = vpop.f32.mrf.mxu0  ;;  %v744_v15 = vpop.f32.mrf.mxu1 }
 0x140   : > { %872 = vst.msk [vmem:[%s1534_s20 + $0x48] sm:$0xff] %vm316_vm0, %v750_v12  ;;  %v745_v17 = vadd.f32 %v744_v15, %v520_v11  ;;  %v600_v12 = vadd.f32 %v1528_v35, %v1508_v6  ;;  %v610_v6 = vadd.f32 %v1528_v35, %v1512_v14 }
 0x141   : > { %v544_v19 = vpop.f32.mrf.mxu0  ;;  %v1056_v20 = vpop.f32.mrf.mxu1 }
 0x142   : > { %871 = vst.msk [vmem:[%s1534_s20 + $0x40] sm:$0xff] %vm316_vm0, %v745_v17  ;;  %v760_v23 = vadd.f32 %v1056_v20, %v535_v16  ;;  %v545_v27 = vadd.f32 %v1528_v35, %v544_v19  ;;  %v615_v19 = vadd.f32 %v1528_v35, %v1514_v18 }
 0x143   : > { %v546_v24 = vpop.f32.mrf.mxu0  ;;  %v754_v25 = vpop.f32.mrf.mxu1 }
 0x144   : > { %874 = vst.msk [vmem:[%s1534_s20 + $0x58] sm:$0xff] %vm316_vm0, %v760_v23  ;;  %v755_v28 = vadd.f32 %v754_v25, %v530_v21 }
 0x145   : > { %v549_v29 = vpop.f32.mrf.mxu0  ;;  %v1059_v31 = vpop.f32.mrf.mxu1 }
 0x146   : > { %873 = vst.msk [vmem:[%s1534_s20 + $0x50] sm:$0xff] %vm316_vm0, %v755_v28  ;;  %v770_v33 = vadd.f32 %v1059_v31, %v545_v27  ;;  %v550_v41 = vadd.f32 %v1528_v35, %v549_v29  ;;  %v625_v28 = vadd.f32 %v1528_v35, %v1518_v26 }
 0x147   : > { %v551_v36 = vpop.f32.mrf.mxu0  ;;  %v764_v37 = vpop.f32.mrf.mxu1 }
 0x148   : > { %876 = vst.msk [vmem:[%s1534_s20 + $0x68] sm:$0xff] %vm316_vm0, %v770_v33  ;;  %v765_v38 = vadd.f32 %v764_v37, %v540_v32  ;;  %v620_v33 = vadd.f32 %v1528_v35, %v1516_v22 }
 0x149   : > { %v554_v39 = vpop.f32.mrf.mxu0  ;;  %v1062_v40 = vpop.f32.mrf.mxu1 }
 0x14a   : > { %875 = vst.msk [vmem:[%s1534_s20 + $0x60] sm:$0xff] %vm316_vm0, %v765_v38  ;;  %v555_v42 = vadd.f32 %v1528_v35, %v554_v39  ;;  %v635_v39 = vadd.f32 %v1528_v35, %v1522_v34 }
 0x14b   : > { %v556_v43 = vpop.f32.mrf.mxu0  ;;  %v774_v44 = vpop.f32.mrf.mxu1 }
 0x14c   : > { %v780_v45 = vadd.f32 %v1062_v40, %v555_v42  ;;  %v775_v46 = vadd.f32 %v774_v44, %v550_v41  ;;  %v630_v43 = vadd.f32 %v1528_v35, %v1520_v30 }
 0x14d   : > { %v559_v47 = vpop.f32.mrf.mxu0  ;;  %v1065_v48 = vpop.f32.mrf.mxu1 }
 0x14e   : > { %878 = vst.msk [vmem:[%s1534_s20 + $0x78] sm:$0xff] %vm316_vm0, %v780_v45  ;;  %877 = vst.msk [vmem:[%s1534_s20 + $0x70] sm:$0xff] %vm316_vm0, %v775_v46  ;;  %v560_v49 = vadd.f32 %v1528_v35, %v559_v47 }
 0x14f   : > { %v561_v50 = vpop.f32.mrf.mxu0  ;;  %v784_v51 = vpop.f32.mrf.mxu1 }
 0x150   : > { %v785_v52 = vadd.f32 %v784_v51, %v560_v49 }
 0x151   : > { %v564_v53 = vpop.f32.mrf.mxu0  ;;  %v1068_v54 = vpop.f32.mrf.mxu1 }
 0x152   : > { %879 = vst.msk [vmem:[%s1534_s20 + $0x80] sm:$0xff] %vm316_vm0, %v785_v52  ;;  %v565_v55 = vadd.f32 %v1528_v35, %v564_v53 }
 0x153   : > { %v566_v56 = vpop.f32.mrf.mxu0  ;;  %v794_v57 = vpop.f32.mrf.mxu1 }
 0x154   : > { %v790_v58 = vadd.f32 %v1065_v48, %v565_v55 }
 0x155   : > { %v569_v59 = vpop.f32.mrf.mxu0  ;;  %v1071_v60 = vpop.f32.mrf.mxu1 }
 0x156   : > { %880 = vst.msk [vmem:[%s1534_s20 + $0x88] sm:$0xff] %vm316_vm0, %v790_v58  ;;  %v570_v61 = vadd.f32 %v1528_v35, %v569_v59 }
 0x157   : > { %v571_v62 = vpop.f32.mrf.mxu0  ;;  %v804_v63 = vpop.f32.mrf.mxu1 }
 0x158   : > { %v795_v0 = vadd.f32 %v794_v57, %v570_v61 }
 0x159   : > { %v574_v1 = vpop.f32.mrf.mxu0  ;;  %v1074_v2 = vpop.f32.mrf.mxu1 }
 0x15a   : > { %881 = vst.msk [vmem:[%s1534_s20 + $0x90] sm:$0xff] %vm316_vm0, %v795_v0  ;;  %v575_v3 = vadd.f32 %v1528_v35, %v574_v1 }
 0x15b   : > { %v576_v4 = vpop.f32.mrf.mxu0  ;;  %v814_v5 = vpop.f32.mrf.mxu1 }
 0x15c   : > { %v800_v8 = vadd.f32 %v1068_v54, %v575_v3 }
 0x15d   : > { %v579_v9 = vpop.f32.mrf.mxu0  ;;  %v1077_v11 = vpop.f32.mrf.mxu1 }
 0x15e   : > { %882 = vst.msk [vmem:[%s1534_s20 + $0x98] sm:$0xff] %vm316_vm0, %v800_v8  ;;  %v580_v13 = vadd.f32 %v1528_v35, %v579_v9  ;;  %v830_v15 = vadd.f32 %v1077_v11, %v605_v7 }
 0x15f   : > { %v581_v16 = vpop.f32.mrf.mxu0  ;;  %v824_v17 = vpop.f32.mrf.mxu1 }
 0x160   : > { %v805_v10 = vadd.f32 %v804_v63, %v580_v13  ;;  %888 = vst.msk [vmem:[%s1534_s20 + $0xc8] sm:$0xff] %vm316_vm0, %v830_v15  ;;  %v825_v20 = vadd.f32 %v824_v17, %v600_v12 }
 0x161   : > { %v584_v21 = vpop.f32.mrf.mxu0  ;;  %v1080_v23 = vpop.f32.mrf.mxu1 }
 0x162   : > { %883 = vst.msk [vmem:[%s1534_s20 + $0xa0] sm:$0xff] %vm316_vm0, %v805_v10  ;;  %887 = vst.msk [vmem:[%s1534_s20 + $0xc0] sm:$0xff] %vm316_vm0, %v825_v20  ;;  %v585_v24 = vadd.f32 %v1528_v35, %v584_v21  ;;  %v840_v25 = vadd.f32 %v1080_v23, %v615_v19 }
 0x163   : > { %v586_v27 = vpop.f32.mrf.mxu0  ;;  %v834_v18 = vpop.f32.mrf.mxu1 }
 0x164   : > { %v810_v29 = vadd.f32 %v1071_v60, %v585_v24  ;;  %890 = vst.msk [vmem:[%s1534_s20 + $0xd8] sm:$0xff] %vm316_vm0, %v840_v25  ;;  %v835_v31 = vadd.f32 %v834_v18, %v610_v6 }
 0x165   : > { %v589_v32 = vpop.f32.mrf.mxu0  ;;  %v1083_v14 = vpop.f32.mrf.mxu1 }
 0x166   : > { %884 = vst.msk [vmem:[%s1534_s20 + $0xa8] sm:$0xff] %vm316_vm0, %v810_v29  ;;  %889 = vst.msk [vmem:[%s1534_s20 + $0xd0] sm:$0xff] %vm316_vm0, %v835_v31  ;;  %v590_v36 = vadd.f32 %v1528_v35, %v589_v32  ;;  %v850_v37 = vadd.f32 %v1083_v14, %v625_v28 }
 0x167   : > { %v591_v38 = vpop.f32.mrf.mxu0  ;;  %v844_v26 = vpop.f32.mrf.mxu1 }
 0x168   : > { %v815_v40 = vadd.f32 %v814_v5, %v590_v36  ;;  %892 = vst.msk [vmem:[%s1534_s20 + $0xe8] sm:$0xff] %vm316_vm0, %v850_v37  ;;  %v845_v41 = vadd.f32 %v844_v26, %v620_v33 }
 0x169   : > { %v594_v22 = vpop.f32.mrf.mxu0  ;;  %v1086_v42 = vpop.f32.mrf.mxu1 }
 0x16a   : > { %885 = vst.msk [vmem:[%s1534_s20 + $0xb0] sm:$0xff] %vm316_vm0, %v815_v40  ;;  %891 = vst.msk [vmem:[%s1534_s20 + $0xe0] sm:$0xff] %vm316_vm0, %v845_v41  ;;  %v595_v44 = vadd.f32 %v1528_v35, %v594_v22  ;;  %v860_v45 = vadd.f32 %v1086_v42, %v635_v39 }
 0x16b   : > { %v596_v46 = vpop.f32.mrf.mxu0  ;;  %v854_v34 = vpop.f32.mrf.mxu1 }
 0x16c   : > { %v820_v47 = vadd.f32 %v1074_v2, %v595_v44  ;;  %894 = vst.msk [vmem:[%s1534_s20 + $0xf8] sm:$0xff] %vm316_vm0, %v860_v45  ;;  %v855_v48 = vadd.f32 %v854_v34, %v630_v43 }
 0x16e   : > { %886 = vst.msk [vmem:[%s1534_s20 + $0xb8] sm:$0xff] %vm316_vm0, %v820_v47  ;;  %893 = vst.msk [vmem:[%s1534_s20 + $0xf0] sm:$0xff] %vm316_vm0, %v855_v48 }
 0x16f PF: > { %s13_s12 = sadd.s32 1, %s1167_s12  }
 0x170   : > { %p10_p4 = scmp.ge.s32.totalorder %s13_s12, 4  }
 0x172   :  { %12 = sbr.rel (!%p10_p4) target bundleno = 1 (0x1), region = 62 }

// kernel: rfb_forward.15
= control target key start
LH: loop header
LB: loop body
LE: loop exit
PB: predicated region body
PF: predicated region fallthrough
CT: control target
= control target key end

     0   :  { %s802_s12 = smov 0   ;;  %s1126_s0 = inlined_call_operand.vmem [shape: f32[512,160], index: 0, kind: input, shape index: {}]   ;;  %s1127_s1 = inlined_call_operand.vmem [shape: f32[160,32], index: 1, kind: input, shape index: {}]   ;;  %s1128_s2 = inlined_call_operand.vmem [shape: f32[1,32], index: 2, kind: input, shape index: {}]   ;;  %s1129_s3 = inlined_call_operand.vmem [shape: f32[512,32], index: 3, kind: output, shape index: {}]  }
   0x1 LB: > { %s678_s13 = sadd.s32 4294967295, %s779_s12   ;;  %p682_p0 = scmp.ge.s32.totalorder %s779_s12, 1  ;;  %s779_s12 = sphi %s802_s12, %s13_s12  }
   0x2   : > { %p139_p1 = scmp.lt.s32.totalorder %s779_s12, 3 }
   0x4   : > { %p140_p2 = pnand %p682_p0, %p139_p1 }
   0x5   : > { %s683_s11 = sshll.u32 (!%p140_p2), %s678_s13, 5 }
   0x6   : > { %143 = sbr.rel (%p140_p2) target bundleno = 309 (0x135), region = 32  ;;  %p165_p3 = scmp.lt.s32.totalorder (!%p140_p2), %s683_s11, 63 }
   0xb   : > { %v256_v0 = vld [vmem:[%s1127_s1 + $0x78] sm:$0xff]  ;;  %v781_v1 = vmov 0.0   ;;  %v255_v2 = vld [vmem:[%s1127_s1 + $0x70] sm:$0xff]  ;;  %v254_v3 = vld [vmem:[%s1127_s1 + $0x68] sm:$0xff]  ;;  %s1131_s11 = smov (!%p165_p3, %s683_s11), 63  ;;  %vm268_vm0 = vcmask 261120  }
   0xc   : > { %365 = vmatprep.subr.mxu0 %v781_v1  ;;  %724 = vmatprep.subr.mxu1 %v781_v1  ;;  %v253_v4 = vld [vmem:[%s1127_s1 + $0x60] sm:$0xff]  ;;  %v252_v5 = vld [vmem:[%s1127_s1 + $0x58] sm:$0xff]  ;;  %v251_v6 = vld [vmem:[%s1127_s1 + $0x50] sm:$0xff]  ;;  %s723_s23 = sshll.u32 %s1131_s11, 4  ;;  %s687_s6 = sshll.u32 %s1131_s11, 3 }
   0xd   : > { %366 = vmatpush1.msra.mxu0 %v256_v0  ;;  %744 = vmatpush1.msra.mxu1 %v256_v0  ;;  %v250_v7 = vld [vmem:[%s1127_s1 + $0x48] sm:$0xff]  ;;  %v249_v8 = vld [vmem:[%s1127_s1 + $0x40] sm:$0xff]  ;;  %v248_v9 = vld [vmem:[%s1127_s1 + $0x38] sm:$0xff]  ;;  %s911_s30 = scalar_lea.vmem %s1126_s0, %s723_s23  ;;  %s1025_s14 = scalar_lea.vmem %s1129_s3, %s687_s6 }
   0xe   : > { %367 = vmatprep.subr.mxu0 %v781_v1  ;;  %725 = vmatprep.subr.mxu1 %v781_v1  ;;  %v247_v10 = vld [vmem:[%s1127_s1 + $0x30] sm:$0xff]  ;;  %v246_v11 = vld [vmem:[%s1127_s1 + $0x28] sm:$0xff]  ;;  %v245_v12 = vld [vmem:[%s1127_s1 + $0x20] sm:$0xff] }
   0xf   : > { %368 = vmatpush1.msra.mxu0 %v255_v2  ;;  %745 = vmatpush1.msra.mxu1 %v255_v2  ;;  %v244_v13 = vld [vmem:[%s1127_s1 + $0x18] sm:$0xff]  ;;  %v243_v14 = vld [vmem:[%s1127_s1 + $0x10] sm:$0xff]  ;;  %v242_v15 = vld [vmem:[%s1127_s1 + $0x8] sm:$0xff] }
  0x10   : > { %369 = vmatprep.subr.mxu0 %v781_v1  ;;  %726 = vmatprep.subr.mxu1 %v781_v1  ;;  %v241_v16 = vld [vmem:[%s1127_s1] sm:$0xff]  ;;  %v260_v17 = vld [vmem:[%s1127_s1 + $0x98] sm:$0xff]  ;;  %v259_v18 = vld [vmem:[%s1127_s1 + $0x90] sm:$0xff] }
  0x11   : > { %370 = vmatpush1.msra.mxu0 %v254_v3  ;;  %746 = vmatpush1.msra.mxu1 %v254_v3  ;;  %v258_v19 = vld [vmem:[%s1127_s1 + $0x88] sm:$0xff]  ;;  %v257_v20 = vld [vmem:[%s1127_s1 + $0x80] sm:$0xff]  ;;  %v180_v25 = vld [vmem:[%s911_s30 + $0x18] sm:$0xff] }
  0x12   : > { %371 = vmatprep.subr.mxu0 %v781_v1  ;;  %727 = vmatprep.subr.mxu1 %v781_v1  ;;  %v178_v21 = vld [vmem:[%s911_s30 + $0x8] sm:$0xff]  ;;  %v177_v23 = vld [vmem:[%s911_s30] sm:$0xff]  ;;  %v212_v26 = vld [vmem:[%s911_s30 + $0x118] sm:$0xff] }
  0x13   : > { %372 = vmatpush1.msra.mxu0 %v253_v4  ;;  %747 = vmatpush1.msra.mxu1 %v253_v4  ;;  %v210_v22 = vld [vmem:[%s911_s30 + $0x108] sm:$0xff]  ;;  %v209_v24 = vld [vmem:[%s911_s30 + $0x100] sm:$0xff]  ;;  %v179_v27 = vld [vmem:[%s911_s30 + $0x10] sm:$0xff] }
  0x14   : > { %373 = vmatprep.subr.mxu0 %v781_v1  ;;  %728 = vmatprep.subr.mxu1 %v781_v1  ;;  %v211_v28 = vld [vmem:[%s911_s30 + $0x110] sm:$0xff]  ;;  %v182_v29 = vld [vmem:[%s911_s30 + $0x28] sm:$0xff]  ;;  %v181_v31 = vld [vmem:[%s911_s30 + $0x20] sm:$0xff] }
  0x15   : > { %374 = vmatpush1.msra.mxu0 %v252_v5  ;;  %748 = vmatpush1.msra.mxu1 %v252_v5  ;;  %v214_v30 = vld [vmem:[%s911_s30 + $0x128] sm:$0xff]  ;;  %v213_v32 = vld [vmem:[%s911_s30 + $0x120] sm:$0xff]  ;;  %v184_v33 = vld [vmem:[%s911_s30 + $0x38] sm:$0xff] }
  0x16   : > { %375 = vmatprep.subr.mxu0 %v781_v1  ;;  %729 = vmatprep.subr.mxu1 %v781_v1  ;;  %v216_v34 = vld [vmem:[%s911_s30 + $0x138] sm:$0xff]  ;;  %v183_v35 = vld [vmem:[%s911_s30 + $0x30] sm:$0xff]  ;;  %v186_v37 = vld [vmem:[%s911_s30 + $0x48] sm:$0xff] }
  0x17   : > { %376 = vmatpush1.msra.mxu0 %v251_v6  ;;  %749 = vmatpush1.msra.mxu1 %v251_v6  ;;  %v215_v36 = vld [vmem:[%s911_s30 + $0x130] sm:$0xff]  ;;  %v218_v38 = vld [vmem:[%s911_s30 + $0x148] sm:$0xff]  ;;  %v185_v39 = vld [vmem:[%s911_s30 + $0x40] sm:$0xff] }
  0x18   : > { %377 = vmatprep.subr.mxu0 %v781_v1  ;;  %730 = vmatprep.subr.mxu1 %v781_v1  ;;  %v217_v40 = vld [vmem:[%s911_s30 + $0x140] sm:$0xff]  ;;  %v188_v41 = vld [vmem:[%s911_s30 + $0x58] sm:$0xff]  ;;  %v187_v43 = vld [vmem:[%s911_s30 + $0x50] sm:$0xff] }
  0x19   : > { %378 = vmatpush1.msra.mxu0 %v250_v7  ;;  %750 = vmatpush1.msra.mxu1 %v250_v7  ;;  %v220_v42 = vld [vmem:[%s911_s30 + $0x158] sm:$0xff]  ;;  %v219_v44 = vld [vmem:[%s911_s30 + $0x150] sm:$0xff]  ;;  %v190_v45 = vld [vmem:[%s911_s30 + $0x68] sm:$0xff] }
  0x1a   : > { %379 = vmatprep.subr.mxu0 %v781_v1  ;;  %731 = vmatprep.subr.mxu1 %v781_v1  ;;  %v222_v46 = vld [vmem:[%s911_s30 + $0x168] sm:$0xff]  ;;  %v189_v47 = vld [vmem:[%s911_s30 + $0x60] sm:$0xff]  ;;  %v192_v49 = vld [vmem:[%s911_s30 + $0x78] sm:$0xff] }
  0x1b   : > { %380 = vmatpush1.msra.mxu0 %v249_v8  ;;  %751 = vmatpush1.msra.mxu1 %v249_v8  ;;  %v221_v48 = vld [vmem:[%s911_s30 + $0x160] sm:$0xff]  ;;  %v224_v50 = vld [vmem:[%s911_s30 + $0x178] sm:$0xff]  ;;  %v191_v51 = vld [vmem:[%s911_s30 + $0x70] sm:$0xff] }
  0x1c   : > { %381 = vmatprep.subr.mxu0 %v781_v1  ;;  %732 = vmatprep.subr.mxu1 %v781_v1  ;;  %v223_v52 = vld [vmem:[%s911_s30 + $0x170] sm:$0xff]  ;;  %v194_v53 = vld [vmem:[%s911_s30 + $0x88] sm:$0xff]  ;;  %v193_v55 = vld [vmem:[%s911_s30 + $0x80] sm:$0xff] }
  0x1d   : > { %382 = vmatpush1.msra.mxu0 %v248_v9  ;;  %752 = vmatpush1.msra.mxu1 %v248_v9  ;;  %v226_v54 = vld [vmem:[%s911_s30 + $0x188] sm:$0xff]  ;;  %v225_v56 = vld [vmem:[%s911_s30 + $0x180] sm:$0xff]  ;;  %v196_v57 = vld [vmem:[%s911_s30 + $0x98] sm:$0xff] }
  0x1e   : > { %383 = vmatprep.subr.mxu0 %v781_v1  ;;  %733 = vmatprep.subr.mxu1 %v781_v1  ;;  %v228_v58 = vld [vmem:[%s911_s30 + $0x198] sm:$0xff]  ;;  %v195_v59 = vld [vmem:[%s911_s30 + $0x90] sm:$0xff]  ;;  %v198_v61 = vld [vmem:[%s911_s30 + $0xa8] sm:$0xff] }
  0x1f   : > { %384 = vmatpush1.msra.mxu0 %v247_v10  ;;  %753 = vmatpush1.msra.mxu1 %v247_v10  ;;  %v227_v60 = vld [vmem:[%s911_s30 + $0x190] sm:$0xff]  ;;  %v230_v62 = vld [vmem:[%s911_s30 + $0x1a8] sm:$0xff]  ;;  %v197_v63 = vld [vmem:[%s911_s30 + $0xa0] sm:$0xff] }
  0x20   : > { %385 = vmatprep.subr.mxu0 %v781_v1  ;;  %734 = vmatprep.subr.mxu1 %v781_v1  ;;  %v229_v0 = vld [vmem:[%s911_s30 + $0x1a0] sm:$0xff]  ;;  %v232_v2 = vld [vmem:[%s911_s30 + $0x1b8] sm:$0xff]  ;;  %v199_v3 = vld [vmem:[%s911_s30 + $0xb0] sm:$0xff] }
  0x21   : > { %386 = vmatpush1.msra.mxu0 %v246_v11  ;;  %754 = vmatpush1.msra.mxu1 %v246_v11  ;;  %v231_v4 = vld [vmem:[%s911_s30 + $0x1b0] sm:$0xff]  ;;  %v202_v5 = vld [vmem:[%s911_s30 + $0xc8] sm:$0xff]  ;;  %v201_v7 = vld [vmem:[%s911_s30 + $0xc0] sm:$0xff] }
  0x22   : > { %387 = vmatprep.subr.mxu0 %v781_v1  ;;  %735 = vmatprep.subr.mxu1 %v781_v1  ;;  %v234_v6 = vld [vmem:[%s911_s30 + $0x1c8] sm:$0xff]  ;;  %v233_v8 = vld [vmem:[%s911_s30 + $0x1c0] sm:$0xff]  ;;  %v204_v9 = vld [vmem:[%s911_s30 + $0xd8] sm:$0xff] }
  0x23   : > { %388 = vmatpush1.msra.mxu0 %v245_v12  ;;  %755 = vmatpush1.msra.mxu1 %v245_v12  ;;  %v236_v10 = vld [vmem:[%s911_s30 + $0x1d8] sm:$0xff]  ;;  %v203_v11 = vld [vmem:[%s911_s30 + $0xd0] sm:$0xff] }
  0x24   : > { %389 = vmatprep.subr.mxu0 %v781_v1  ;;  %736 = vmatprep.subr.mxu1 %v781_v1  ;;  %v235_v12 = vld [vmem:[%s911_s30 + $0x1d0] sm:$0xff] }
  0x25   : > { %390 = vmatpush1.msra.mxu0 %v244_v13  ;;  %756 = vmatpush1.msra.mxu1 %v244_v13  ;;  %v206_v13 = vld [vmem:[%s911_s30 + $0xe8] sm:$0xff] }
  0x26   : > { %391 = vmatprep.subr.mxu0 %v781_v1  ;;  %737 = vmatprep.subr.mxu1 %v781_v1 }
  0x27   : > { %392 = vmatpush1.msra.mxu0 %v243_v14  ;;  %757 = vmatpush1.msra.mxu1 %v243_v14  ;;  %v238_v14 = vld [vmem:[%s911_s30 + $0x1e8] sm:$0xff] }
  0x28   : > { %393 = vmatprep.subr.mxu0 %v781_v1  ;;  %738 = vmatprep.subr.mxu1 %v781_v1 }
  0x29   : > { %394 = vmatpush1.msra.mxu0 %v242_v15  ;;  %758 = vmatpush1.msra.mxu1 %v242_v15  ;;  %v205_v15 = vld [vmem:[%s911_s30 + $0xe0] sm:$0xff] }
  0x2a   : > { %395 = vmatprep.subr.mxu0 %v781_v1  ;;  %739 = vmatprep.subr.mxu1 %v781_v1 }
  0x2b   : > { %396 = vmatpush1.msra.mxu0 %v241_v16  ;;  %759 = vmatpush1.msra.mxu1 %v241_v16  ;;  %v237_v16 = vld [vmem:[%s911_s30 + $0x1e0] sm:$0xff] }
  0x2c   : > { %421 = vmatprep.subr.mxu0 %v781_v1  ;;  %740 = vmatprep.subr.mxu1 %v781_v1 }
  0x2d   : > { %422 = vmatpush2.msra.mxu0 %v260_v17  ;;  %760 = vmatpush2.msra.mxu1 %v260_v17  ;;  %v208_v17 = vld [vmem:[%s911_s30 + $0xf8] sm:$0xff] }
  0x2e   : > { %423 = vmatprep.subr.mxu0 %v781_v1  ;;  %741 = vmatprep.subr.mxu1 %v781_v1 }
  0x2f   : > { %424 = vmatpush2.msra.mxu0 %v259_v18  ;;  %761 = vmatpush2.msra.mxu1 %v259_v18  ;;  %v240_v18 = vld [vmem:[%s911_s30 + $0x1f8] sm:$0xff] }
  0x30   : > { %425 = vmatprep.subr.mxu0 %v781_v1  ;;  %742 = vmatprep.subr.mxu1 %v781_v1 }
  0x31   : > { %426 = vmatpush2.msra.mxu0 %v258_v19  ;;  %762 = vmatpush2.msra.mxu1 %v258_v19  ;;  %v207_v19 = vld [vmem:[%s911_s30 + $0xf0] sm:$0xff] }
  0x32   : > { %427 = vmatprep.subr.mxu0 %v781_v1  ;;  %743 = vmatprep.subr.mxu1 %v781_v1  ;;  %v200_v1 = vld [vmem:[%s911_s30 + $0xb8] sm:$0xff] }
  0x33   : > { %428 = vmatpush2.msra.mxu0 %v257_v20  ;;  %763 = vmatpush2.msra.mxu1 %v257_v20  ;;  %v239_v20 = vld [vmem:[%s911_s30 + $0x1f0] sm:$0xff] }
  0x34   : > { %689 = vmatprep.mubr.msk.f32.mxu0 %vm268_vm0, %v178_v21  ;;  %705 = vmatprep.mubr.msk.f32.mxu1 %vm268_vm0, %v210_v22  ;;  %v1020_v21 = vld [vmem:[%s1128_s2] ss:$0 sm:$0xff] }
  0x35   : > { %430 = vmatmul.mubr.f32.vlgmr.msra.gmra.mxu0 %v177_v23  ;;  %510 = vmatmul.mubr.f32.vlgmr.msra.gmra.mxu1 %v209_v24 }
  0x36   : > { %690 = vmatprep.mubr.msk.f32.mxu0 %vm268_vm0, %v180_v25  ;;  %706 = vmatprep.mubr.msk.f32.mxu1 %vm268_vm0, %v212_v26 }
  0x39   : > { %435 = vmatmul.mubr.f32.gmra.mxu0 %v179_v27  ;;  %515 = vmatmul.mubr.f32.gmra.mxu1 %v211_v28 }
  0x3a   : > { %691 = vmatprep.mubr.msk.f32.mxu0 %vm268_vm0, %v182_v29  ;;  %707 = vmatprep.mubr.msk.f32.mxu1 %vm268_vm0, %v214_v30 }
  0x3d   : > { %440 = vmatmul.mubr.f32.gmra.mxu0 %v181_v31  ;;  %520 = vmatmul.mubr.f32.gmra.mxu1 %v213_v32 }
  0x3e   : > { %692 = vmatprep.mubr.msk.f32.mxu0 %vm268_vm0, %v184_v33  ;;  %708 = vmatprep.mubr.msk.f32.mxu1 %vm268_vm0, %v216_v34 }
  0x41   : > { %445 = vmatmul.mubr.f32.gmra.mxu0 %v183_v35  ;;  %525 = vmatmul.mubr.f32.gmra.mxu1 %v215_v36 }
  0x42   : > { %693 = vmatprep.mubr.msk.f32.mxu0 %vm268_vm0, %v186_v37  ;;  %709 = vmatprep.mubr.msk.f32.mxu1 %vm268_vm0, %v218_v38 }
  0x45   : > { %450 = vmatmul.mubr.f32.gmra.mxu0 %v185_v39  ;;  %530 = vmatmul.mubr.f32.gmra.mxu1 %v217_v40 }
  0x46   : > { %694 = vmatprep.mubr.msk.f32.mxu0 %vm268_vm0, %v188_v41  ;;  %710 = vmatprep.mubr.msk.f32.mxu1 %vm268_vm0, %v220_v42 }
  0x49   : > { %455 = vmatmul.mubr.f32.gmra.mxu0 %v187_v43  ;;  %535 = vmatmul.mubr.f32.gmra.mxu1 %v219_v44 }
  0x4a   : > { %695 = vmatprep.mubr.msk.f32.mxu0 %vm268_vm0, %v190_v45  ;;  %711 = vmatprep.mubr.msk.f32.mxu1 %vm268_vm0, %v222_v46 }
  0x4d   : > { %460 = vmatmul.mubr.f32.gmra.mxu0 %v189_v47  ;;  %540 = vmatmul.mubr.f32.gmra.mxu1 %v221_v48 }
  0x4e   : > { %696 = vmatprep.mubr.msk.f32.mxu0 %vm268_vm0, %v192_v49  ;;  %712 = vmatprep.mubr.msk.f32.mxu1 %vm268_vm0, %v224_v50 }
  0x51   : > { %465 = vmatmul.mubr.f32.gmra.mxu0 %v191_v51  ;;  %545 = vmatmul.mubr.f32.gmra.mxu1 %v223_v52 }
  0x52   : > { %697 = vmatprep.mubr.msk.f32.mxu0 %vm268_vm0, %v194_v53  ;;  %713 = vmatprep.mubr.msk.f32.mxu1 %vm268_vm0, %v226_v54 }
  0x55   : > { %470 = vmatmul.mubr.f32.gmra.mxu0 %v193_v55  ;;  %550 = vmatmul.mubr.f32.gmra.mxu1 %v225_v56 }
  0x56   : > { %698 = vmatprep.mubr.msk.f32.mxu0 %vm268_vm0, %v196_v57  ;;  %714 = vmatprep.mubr.msk.f32.mxu1 %vm268_vm0, %v228_v58 }
  0x59   : > { %475 = vmatmul.mubr.f32.gmra.mxu0 %v195_v59  ;;  %555 = vmatmul.mubr.f32.gmra.mxu1 %v227_v60 }
  0x5a   : > { %699 = vmatprep.mubr.msk.f32.mxu0 %vm268_vm0, %v198_v61  ;;  %715 = vmatprep.mubr.msk.f32.mxu1 %vm268_vm0, %v230_v62 }
  0x5d   : > { %480 = vmatmul.mubr.f32.gmra.mxu0 %v197_v63  ;;  %560 = vmatmul.mubr.f32.gmra.mxu1 %v229_v0 }
  0x5e   : > { %700 = vmatprep.mubr.msk.f32.mxu0 %vm268_vm0, %v200_v1  ;;  %716 = vmatprep.mubr.msk.f32.mxu1 %vm268_vm0, %v232_v2 }
  0x61   : > { %485 = vmatmul.mubr.f32.gmra.mxu0 %v199_v3  ;;  %565 = vmatmul.mubr.f32.gmra.mxu1 %v231_v4 }
  0x62   : > { %701 = vmatprep.mubr.msk.f32.mxu0 %vm268_vm0, %v202_v5  ;;  %717 = vmatprep.mubr.msk.f32.mxu1 %vm268_vm0, %v234_v6 }
  0x65   : > { %490 = vmatmul.mubr.f32.gmra.mxu0 %v201_v7  ;;  %570 = vmatmul.mubr.f32.gmra.mxu1 %v233_v8 }
  0x66   : > { %702 = vmatprep.mubr.msk.f32.mxu0 %vm268_vm0, %v204_v9  ;;  %718 = vmatprep.mubr.msk.f32.mxu1 %vm268_vm0, %v236_v10 }
  0x69   : > { %495 = vmatmul.mubr.f32.gmra.mxu0 %v203_v11  ;;  %575 = vmatmul.mubr.f32.gmra.mxu1 %v235_v12 }
  0x6a   : > { %703 = vmatprep.mubr.msk.f32.mxu0 %vm268_vm0, %v206_v13  ;;  %719 = vmatprep.mubr.msk.f32.mxu1 %vm268_vm0, %v238_v14 }
  0x6d   : > { %500 = vmatmul.mubr.f32.gmra.mxu0 %v205_v15  ;;  %580 = vmatmul.mubr.f32.gmra.mxu1 %v237_v16 }
  0x6e   : > { %704 = vmatprep.mubr.msk.f32.mxu0 %vm268_vm0, %v208_v17  ;;  %720 = vmatprep.mubr.msk.f32.mxu1 %vm268_vm0, %v240_v18 }
  0x71   : > { %505 = vmatmul.mubr.f32.gmra.mxu0 %v207_v19  ;;  %585 = vmatmul.mubr.f32.gmra.mxu1 %v239_v20 }
  0xf5   : > { %v431_v22 = vpop.f32.mrf.mxu0  ;;  %v511_v23 = vpop.f32.mrf.mxu1 }
  0xf6   : > { %v432_v24 = vadd.f32 %v1020_v21, %v431_v22  ;;  %v512_v25 = vadd.f32 %v1020_v21, %v511_v23 }
  0xf7   : > { %v433_v26 = vpop.f32.mrf.mxu0  ;;  %v513_v27 = vpop.f32.mrf.mxu1 }
  0xf8   : > { %590 = vst.msk [vmem:[%s1025_s14] sm:$0xff] %vm268_vm0, %v432_v24  ;;  %606 = vst.msk [vmem:[%s1025_s14 + $0x80] sm:$0xff] %vm268_vm0, %v512_v25 }
  0xf9   : > { %v436_v28 = vpop.f32.mrf.mxu0  ;;  %v516_v29 = vpop.f32.mrf.mxu1 }
  0xfa   : > { %v437_v30 = vadd.f32 %v1020_v21, %v436_v28  ;;  %v517_v31 = vadd.f32 %v1020_v21, %v516_v29 }
  0xfb   : > { %v438_v32 = vpop.f32.mrf.mxu0  ;;  %v518_v33 = vpop.f32.mrf.mxu1 }
  0xfc   : > { %591 = vst.msk [vmem:[%s1025_s14 + $0x8] sm:$0xff] %vm268_vm0, %v437_v30  ;;  %607 = vst.msk [vmem:[%s1025_s14 + $0x88] sm:$0xff] %vm268_vm0, %v517_v31 }
  0xfd   : > { %v441_v34 = vpop.f32.mrf.mxu0  ;;  %v521_v35 = vpop.f32.mrf.mxu1 }
  0xfe   : > { %v442_v36 = vadd.f32 %v1020_v21, %v441_v34  ;;  %v522_v37 = vadd.f32 %v1020_v21, %v521_v35 }
  0xff   : > { %v443_v38 = vpop.f32.mrf.mxu0  ;;  %v523_v39 = vpop.f32.mrf.mxu1 }
 0x100   : > { %592 = vst.msk [vmem:[%s1025_s14 + $0x10] sm:$0xff] %vm268_vm0, %v442_v36  ;;  %608 = vst.msk [vmem:[%s1025_s14 + $0x90] sm:$0xff] %vm268_vm0, %v522_v37 }
 0x101   : > { %v446_v40 = vpop.f32.mrf.mxu0  ;;  %v526_v41 = vpop.f32.mrf.mxu1 }
 0x102   : > { %v447_v42 = vadd.f32 %v1020_v21, %v446_v40  ;;  %v527_v43 = vadd.f32 %v1020_v21, %v526_v41 }
 0x103   : > { %v448_v44 = vpop.f32.mrf.mxu0  ;;  %v528_v45 = vpop.f32.mrf.mxu1 }
 0x104   : > { %593 = vst.msk [vmem:[%s1025_s14 + $0x18] sm:$0xff] %vm268_vm0, %v447_v42  ;;  %609 = vst.msk [vmem:[%s1025_s14 + $0x98] sm:$0xff] %vm268_vm0, %v527_v43 }
 0x105   : > { %v451_v46 = vpop.f32.mrf.mxu0  ;;  %v531_v47 = vpop.f32.mrf.mxu1 }
 0x106   : > { %v452_v48 = vadd.f32 %v1020_v21, %v451_v46  ;;  %v532_v49 = vadd.f32 %v1020_v21, %v531_v47 }
 0x107   : > { %v453_v50 = vpop.f32.mrf.mxu0  ;;  %v533_v51 = vpop.f32.mrf.mxu1 }
 0x108   : > { %594 = vst.msk [vmem:[%s1025_s14 + $0x20] sm:$0xff] %vm268_vm0, %v452_v48  ;;  %610 = vst.msk [vmem:[%s1025_s14 + $0xa0] sm:$0xff] %vm268_vm0, %v532_v49 }
 0x109   : > { %v456_v52 = vpop.f32.mrf.mxu0  ;;  %v536_v53 = vpop.f32.mrf.mxu1 }
 0x10a   : > { %v457_v54 = vadd.f32 %v1020_v21, %v456_v52  ;;  %v537_v55 = vadd.f32 %v1020_v21, %v536_v53 }
 0x10b   : > { %v458_v56 = vpop.f32.mrf.mxu0  ;;  %v538_v57 = vpop.f32.mrf.mxu1 }
 0x10c   : > { %595 = vst.msk [vmem:[%s1025_s14 + $0x28] sm:$0xff] %vm268_vm0, %v457_v54  ;;  %611 = vst.msk [vmem:[%s1025_s14 + $0xa8] sm:$0xff] %vm268_vm0, %v537_v55 }
 0x10d   : > { %v461_v58 = vpop.f32.mrf.mxu0  ;;  %v541_v59 = vpop.f32.mrf.mxu1 }
 0x10e   : > { %v462_v60 = vadd.f32 %v1020_v21, %v461_v58  ;;  %v542_v61 = vadd.f32 %v1020_v21, %v541_v59 }
 0x10f   : > { %v463_v62 = vpop.f32.mrf.mxu0  ;;  %v543_v63 = vpop.f32.mrf.mxu1 }
 0x110   : > { %596 = vst.msk [vmem:[%s1025_s14 + $0x30] sm:$0xff] %vm268_vm0, %v462_v60  ;;  %612 = vst.msk [vmem:[%s1025_s14 + $0xb0] sm:$0xff] %vm268_vm0, %v542_v61 }
 0x111   : > { %v466_v0 = vpop.f32.mrf.mxu0  ;;  %v546_v1 = vpop.f32.mrf.mxu1 }
 0x112   : > { %v467_v2 = vadd.f32 %v1020_v21, %v466_v0  ;;  %v547_v3 = vadd.f32 %v1020_v21, %v546_v1 }
 0x113   : > { %v468_v4 = vpop.f32.mrf.mxu0  ;;  %v548_v5 = vpop.f32.mrf.mxu1 }
 0x114   : > { %597 = vst.msk [vmem:[%s1025_s14 + $0x38] sm:$0xff] %vm268_vm0, %v467_v2  ;;  %613 = vst.msk [vmem:[%s1025_s14 + $0xb8] sm:$0xff] %vm268_vm0, %v547_v3 }
 0x115   : > { %v471_v6 = vpop.f32.mrf.mxu0  ;;  %v551_v7 = vpop.f32.mrf.mxu1 }
 0x116   : > { %v472_v8 = vadd.f32 %v1020_v21, %v471_v6  ;;  %v552_v9 = vadd.f32 %v1020_v21, %v551_v7 }
 0x117   : > { %v473_v10 = vpop.f32.mrf.mxu0  ;;  %v553_v11 = vpop.f32.mrf.mxu1 }
 0x118   : > { %598 = vst.msk [vmem:[%s1025_s14 + $0x40] sm:$0xff] %vm268_vm0, %v472_v8  ;;  %614 = vst.msk [vmem:[%s1025_s14 + $0xc0] sm:$0xff] %vm268_vm0, %v552_v9 }
 0x119   : > { %v476_v12 = vpop.f32.mrf.mxu0  ;;  %v556_v13 = vpop.f32.mrf.mxu1 }
 0x11a   : > { %v477_v14 = vadd.f32 %v1020_v21, %v476_v12  ;;  %v557_v15 = vadd.f32 %v1020_v21, %v556_v13 }
 0x11b   : > { %v478_v16 = vpop.f32.mrf.mxu0  ;;  %v558_v17 = vpop.f32.mrf.mxu1 }
 0x11c   : > { %599 = vst.msk [vmem:[%s1025_s14 + $0x48] sm:$0xff] %vm268_vm0, %v477_v14  ;;  %615 = vst.msk [vmem:[%s1025_s14 + $0xc8] sm:$0xff] %vm268_vm0, %v557_v15 }
 0x11d   : > { %v481_v18 = vpop.f32.mrf.mxu0  ;;  %v561_v19 = vpop.f32.mrf.mxu1 }
 0x11e   : > { %v482_v20 = vadd.f32 %v1020_v21, %v481_v18  ;;  %v562_v22 = vadd.f32 %v1020_v21, %v561_v19 }
 0x11f   : > { %v483_v23 = vpop.f32.mrf.mxu0  ;;  %v563_v24 = vpop.f32.mrf.mxu1 }
 0x120   : > { %600 = vst.msk [vmem:[%s1025_s14 + $0x50] sm:$0xff] %vm268_vm0, %v482_v20  ;;  %616 = vst.msk [vmem:[%s1025_s14 + $0xd0] sm:$0xff] %vm268_vm0, %v562_v22 }
 0x121   : > { %v486_v25 = vpop.f32.mrf.mxu0  ;;  %v566_v26 = vpop.f32.mrf.mxu1 }
 0x122   : > { %v487_v27 = vadd.f32 %v1020_v21, %v486_v25  ;;  %v567_v28 = vadd.f32 %v1020_v21, %v566_v26 }
 0x123   : > { %v488_v29 = vpop.f32.mrf.mxu0  ;;  %v568_v30 = vpop.f32.mrf.mxu1 }
 0x124   : > { %601 = vst.msk [vmem:[%s1025_s14 + $0x58] sm:$0xff] %vm268_vm0, %v487_v27  ;;  %617 = vst.msk [vmem:[%s1025_s14 + $0xd8] sm:$0xff] %vm268_vm0, %v567_v28 }
 0x125   : > { %v491_v31 = vpop.f32.mrf.mxu0  ;;  %v571_v32 = vpop.f32.mrf.mxu1 }
 0x126   : > { %v492_v33 = vadd.f32 %v1020_v21, %v491_v31  ;;  %v572_v34 = vadd.f32 %v1020_v21, %v571_v32 }
 0x127   : > { %v493_v35 = vpop.f32.mrf.mxu0  ;;  %v573_v36 = vpop.f32.mrf.mxu1 }
 0x128   : > { %602 = vst.msk [vmem:[%s1025_s14 + $0x60] sm:$0xff] %vm268_vm0, %v492_v33  ;;  %618 = vst.msk [vmem:[%s1025_s14 + $0xe0] sm:$0xff] %vm268_vm0, %v572_v34 }
 0x129   : > { %v496_v37 = vpop.f32.mrf.mxu0  ;;  %v576_v38 = vpop.f32.mrf.mxu1 }
 0x12a   : > { %v497_v39 = vadd.f32 %v1020_v21, %v496_v37  ;;  %v577_v40 = vadd.f32 %v1020_v21, %v576_v38 }
 0x12b   : > { %v498_v41 = vpop.f32.mrf.mxu0  ;;  %v578_v42 = vpop.f32.mrf.mxu1 }
 0x12c   : > { %603 = vst.msk [vmem:[%s1025_s14 + $0x68] sm:$0xff] %vm268_vm0, %v497_v39  ;;  %619 = vst.msk [vmem:[%s1025_s14 + $0xe8] sm:$0xff] %vm268_vm0, %v577_v40 }
 0x12d   : > { %v501_v43 = vpop.f32.mrf.mxu0  ;;  %v581_v44 = vpop.f32.mrf.mxu1 }
 0x12e   : > { %v502_v45 = vadd.f32 %v1020_v21, %v501_v43  ;;  %v582_v46 = vadd.f32 %v1020_v21, %v581_v44 }
 0x12f   : > { %v503_v47 = vpop.f32.mrf.mxu0  ;;  %v583_v48 = vpop.f32.mrf.mxu1 }
 0x130   : > { %604 = vst.msk [vmem:[%s1025_s14 + $0x70] sm:$0xff] %vm268_vm0, %v502_v45  ;;  %620 = vst.msk [vmem:[%s1025_s14 + $0xf0] sm:$0xff] %vm268_vm0, %v582_v46 }
 0x131   : > { %v506_v49 = vpop.f32.mrf.mxu0  ;;  %v586_v50 = vpop.f32.mrf.mxu1 }
 0x132   : > { %v507_v51 = vadd.f32 %v1020_v21, %v506_v49  ;;  %v587_v52 = vadd.f32 %v1020_v21, %v586_v50 }
 0x133   : > { %v508_v53 = vpop.f32.mrf.mxu0  ;;  %v588_v54 = vpop.f32.mrf.mxu1 }
 0x134   : > { %605 = vst.msk [vmem:[%s1025_s14 + $0x78] sm:$0xff] %vm268_vm0, %v507_v51  ;;  %621 = vst.msk [vmem:[%s1025_s14 + $0xf8] sm:$0xff] %vm268_vm0, %v587_v52 }
 0x135 PF: > { %s13_s12 = sadd.s32 1, %s779_s12  }
 0x136   : > { %p10_p4 = scmp.ge.s32.totalorder %s13_s12, 4  }
 0x138   :  { %12 = sbr.rel (!%p10_p4) target bundleno = 1 (0x1), region = 62 }

// kernel: rfb_forward.18
= control target key start
LH: loop header
LB: loop body
LE: loop exit
PB: predicated region body
PF: predicated region fallthrough
CT: control target
= control target key end

     0   :  { %s827_s12 = smov 0   ;;  %s1191_s0 = inlined_call_operand.vmem [shape: f32[512,224], index: 0, kind: input, shape index: {}]   ;;  %s1192_s1 = inlined_call_operand.vmem [shape: f32[224,32], index: 1, kind: input, shape index: {}]   ;;  %s1193_s2 = inlined_call_operand.vmem [shape: f32[1,32], index: 2, kind: input, shape index: {}]   ;;  %s1194_s3 = inlined_call_operand.vmem [shape: f32[512,32], index: 3, kind: output, shape index: {}]  }
   0x1 LB: > { %s687_s13 = sadd.s32 4294967295, %s804_s12   ;;  %p691_p0 = scmp.ge.s32.totalorder %s804_s12, 1  ;;  %s804_s12 = sphi %s827_s12, %s13_s12  }
   0x2   : > { %p139_p1 = scmp.lt.s32.totalorder %s804_s12, 3 }
   0x4   : > { %p140_p2 = pnand %p691_p0, %p139_p1 }
   0x5   : > { %s692_s29 = sshll.u32 (!%p140_p2), %s687_s13, 5 }
   0x6   : > { %143 = sbr.rel (%p140_p2) target bundleno = 325 (0x145), region = 32  ;;  %p165_p3 = scmp.lt.s32.totalorder (!%p140_p2), %s692_s29, 63 }
   0xb   : > { %v256_v0 = vld [vmem:[%s1192_s1 + $0x78] sm:$0xff]  ;;  %v806_v1 = vmov 0.0   ;;  %v255_v2 = vld [vmem:[%s1192_s1 + $0x70] sm:$0xff]  ;;  %v254_v3 = vld [vmem:[%s1192_s1 + $0x68] sm:$0xff]  ;;  %s1196_s29 = smov (!%p165_p3, %s692_s29), 63  ;;  %vm276_vm0 = vcmask 785408  }
   0xc   : > { %373 = vmatprep.subr.mxu0 %v806_v1  ;;  %733 = vmatprep.subr.mxu1 %v806_v1  ;;  %v253_v4 = vld [vmem:[%s1192_s1 + $0x60] sm:$0xff]  ;;  %v252_v5 = vld [vmem:[%s1192_s1 + $0x58] sm:$0xff]  ;;  %v251_v6 = vld [vmem:[%s1192_s1 + $0x50] sm:$0xff]  ;;  %s732_s14 = sshll.u32 %s1196_s29, 4  ;;  %s696_s24 = sshll.u32 %s1196_s29, 3  ;;  %vm598_vm1 = vcmask 261120  }
   0xd   : > { %374 = vmatpush1.msra.mxu0 %v256_v0  ;;  %761 = vmatpush1.msra.mxu1 %v256_v0  ;;  %v250_v7 = vld [vmem:[%s1192_s1 + $0x48] sm:$0xff]  ;;  %v249_v8 = vld [vmem:[%s1192_s1 + $0x40] sm:$0xff]  ;;  %v248_v9 = vld [vmem:[%s1192_s1 + $0x38] sm:$0xff]  ;;  %s976_s21 = scalar_lea.vmem %s1191_s0, %s732_s14  ;;  %s1090_s30 = scalar_lea.vmem %s1194_s3, %s696_s24 }
   0xe   : > { %375 = vmatprep.subr.mxu0 %v806_v1  ;;  %734 = vmatprep.subr.mxu1 %v806_v1  ;;  %v247_v10 = vld [vmem:[%s1192_s1 + $0x30] sm:$0xff]  ;;  %v246_v11 = vld [vmem:[%s1192_s1 + $0x28] sm:$0xff]  ;;  %v245_v12 = vld [vmem:[%s1192_s1 + $0x20] sm:$0xff] }
   0xf   : > { %376 = vmatpush1.msra.mxu0 %v255_v2  ;;  %762 = vmatpush1.msra.mxu1 %v255_v2  ;;  %v244_v13 = vld [vmem:[%s1192_s1 + $0x18] sm:$0xff]  ;;  %v243_v14 = vld [vmem:[%s1192_s1 + $0x10] sm:$0xff]  ;;  %v242_v15 = vld [vmem:[%s1192_s1 + $0x8] sm:$0xff] }
  0x10   : > { %377 = vmatprep.subr.mxu0 %v806_v1  ;;  %735 = vmatprep.subr.mxu1 %v806_v1  ;;  %v241_v16 = vld [vmem:[%s1192_s1] sm:$0xff]  ;;  %v268_v17 = vld [vmem:[%s1192_s1 + $0xd8] sm:$0xff]  ;;  %v267_v18 = vld [vmem:[%s1192_s1 + $0xd0] sm:$0xff] }
  0x11   : > { %378 = vmatpush1.msra.mxu0 %v254_v3  ;;  %763 = vmatpush1.msra.mxu1 %v254_v3  ;;  %v266_v19 = vld [vmem:[%s1192_s1 + $0xc8] sm:$0xff]  ;;  %v265_v20 = vld [vmem:[%s1192_s1 + $0xc0] sm:$0xff]  ;;  %v264_v21 = vld [vmem:[%s1192_s1 + $0xb8] sm:$0xff] }
  0x12   : > { %379 = vmatprep.subr.mxu0 %v806_v1  ;;  %736 = vmatprep.subr.mxu1 %v806_v1  ;;  %v263_v22 = vld [vmem:[%s1192_s1 + $0xb0] sm:$0xff]  ;;  %v262_v23 = vld [vmem:[%s1192_s1 + $0xa8] sm:$0xff]  ;;  %v261_v24 = vld [vmem:[%s1192_s1 + $0xa0] sm:$0xff] }
  0x13   : > { %380 = vmatpush1.msra.mxu0 %v253_v4  ;;  %764 = vmatpush1.msra.mxu1 %v253_v4  ;;  %v260_v25 = vld [vmem:[%s1192_s1 + $0x98] sm:$0xff]  ;;  %v259_v26 = vld [vmem:[%s1192_s1 + $0x90] sm:$0xff]  ;;  %v258_v27 = vld [vmem:[%s1192_s1 + $0x88] sm:$0xff] }
  0x14   : > { %381 = vmatprep.subr.mxu0 %v806_v1  ;;  %737 = vmatprep.subr.mxu1 %v806_v1  ;;  %v257_v28 = vld [vmem:[%s1192_s1 + $0x80] sm:$0xff]  ;;  %v178_v29 = vld [vmem:[%s976_s21 + $0x8] sm:$0xff]  ;;  %v180_v33 = vld [vmem:[%s976_s21 + $0x18] sm:$0xff] }
  0x15   : > { %382 = vmatpush1.msra.mxu0 %v252_v5  ;;  %765 = vmatpush1.msra.mxu1 %v252_v5  ;;  %v210_v30 = vld [vmem:[%s976_s21 + $0x108] sm:$0xff]  ;;  %v177_v31 = vld [vmem:[%s976_s21] sm:$0xff]  ;;  %v212_v34 = vld [vmem:[%s976_s21 + $0x118] sm:$0xff] }
  0x16   : > { %383 = vmatprep.subr.mxu0 %v806_v1  ;;  %738 = vmatprep.subr.mxu1 %v806_v1  ;;  %v209_v32 = vld [vmem:[%s976_s21 + $0x100] sm:$0xff]  ;;  %v179_v35 = vld [vmem:[%s976_s21 + $0x10] sm:$0xff]  ;;  %v182_v37 = vld [vmem:[%s976_s21 + $0x28] sm:$0xff] }
  0x17   : > { %384 = vmatpush1.msra.mxu0 %v251_v6  ;;  %766 = vmatpush1.msra.mxu1 %v251_v6  ;;  %v211_v36 = vld [vmem:[%s976_s21 + $0x110] sm:$0xff]  ;;  %v214_v38 = vld [vmem:[%s976_s21 + $0x128] sm:$0xff]  ;;  %v181_v39 = vld [vmem:[%s976_s21 + $0x20] sm:$0xff] }
  0x18   : > { %385 = vmatprep.subr.mxu0 %v806_v1  ;;  %739 = vmatprep.subr.mxu1 %v806_v1  ;;  %v213_v40 = vld [vmem:[%s976_s21 + $0x120] sm:$0xff]  ;;  %v184_v41 = vld [vmem:[%s976_s21 + $0x38] sm:$0xff]  ;;  %v183_v43 = vld [vmem:[%s976_s21 + $0x30] sm:$0xff] }
  0x19   : > { %386 = vmatpush1.msra.mxu0 %v250_v7  ;;  %767 = vmatpush1.msra.mxu1 %v250_v7  ;;  %v216_v42 = vld [vmem:[%s976_s21 + $0x138] sm:$0xff]  ;;  %v215_v44 = vld [vmem:[%s976_s21 + $0x130] sm:$0xff]  ;;  %v186_v45 = vld [vmem:[%s976_s21 + $0x48] sm:$0xff] }
  0x1a   : > { %387 = vmatprep.subr.mxu0 %v806_v1  ;;  %740 = vmatprep.subr.mxu1 %v806_v1  ;;  %v218_v46 = vld [vmem:[%s976_s21 + $0x148] sm:$0xff]  ;;  %v185_v47 = vld [vmem:[%s976_s21 + $0x40] sm:$0xff]  ;;  %v188_v49 = vld [vmem:[%s976_s21 + $0x58] sm:$0xff] }
  0x1b   : > { %388 = vmatpush1.msra.mxu0 %v249_v8  ;;  %768 = vmatpush1.msra.mxu1 %v249_v8  ;;  %v217_v48 = vld [vmem:[%s976_s21 + $0x140] sm:$0xff]  ;;  %v220_v50 = vld [vmem:[%s976_s21 + $0x158] sm:$0xff]  ;;  %v187_v51 = vld [vmem:[%s976_s21 + $0x50] sm:$0xff] }
  0x1c   : > { %389 = vmatprep.subr.mxu0 %v806_v1  ;;  %741 = vmatprep.subr.mxu1 %v806_v1  ;;  %v219_v52 = vld [vmem:[%s976_s21 + $0x150] sm:$0xff]  ;;  %v190_v53 = vld [vmem:[%s976_s21 + $0x68] sm:$0xff]  ;;  %v189_v55 = vld [vmem:[%s976_s21 + $0x60] sm:$0xff] }
  0x1d   : > { %390 = vmatpush1.msra.mxu0 %v248_v9  ;;  %769 = vmatpush1.msra.mxu1 %v248_v9  ;;  %v222_v54 = vld [vmem:[%s976_s21 + $0x168] sm:$0xff]  ;;  %v221_v56 = vld [vmem:[%s976_s21 + $0x160] sm:$0xff]  ;;  %v192_v57 = vld [vmem:[%s976_s21 + $0x78] sm:$0xff] }
  0x1e   : > { %391 = vmatprep.subr.mxu0 %v806_v1  ;;  %742 = vmatprep.subr.mxu1 %v806_v1  ;;  %v224_v58 = vld [vmem:[%s976_s21 + $0x178] sm:$0xff]  ;;  %v191_v59 = vld [vmem:[%s976_s21 + $0x70] sm:$0xff]  ;;  %v194_v61 = vld [vmem:[%s976_s21 + $0x88] sm:$0xff] }
  0x1f   : > { %392 = vmatpush1.msra.mxu0 %v247_v10  ;;  %770 = vmatpush1.msra.mxu1 %v247_v10  ;;  %v223_v60 = vld [vmem:[%s976_s21 + $0x170] sm:$0xff]  ;;  %v226_v62 = vld [vmem:[%s976_s21 + $0x188] sm:$0xff]  ;;  %v193_v63 = vld [vmem:[%s976_s21 + $0x80] sm:$0xff] }
  0x20   : > { %393 = vmatprep.subr.mxu0 %v806_v1  ;;  %743 = vmatprep.subr.mxu1 %v806_v1  ;;  %v225_v0 = vld [vmem:[%s976_s21 + $0x180] sm:$0xff]  ;;  %v228_v2 = vld [vmem:[%s976_s21 + $0x198] sm:$0xff]  ;;  %v195_v3 = vld [vmem:[%s976_s21 + $0x90] sm:$0xff] }
  0x21   : > { %394 = vmatpush1.msra.mxu0 %v246_v11  ;;  %771 = vmatpush1.msra.mxu1 %v246_v11  ;;  %v227_v4 = vld [vmem:[%s976_s21 + $0x190] sm:$0xff]  ;;  %v198_v5 = vld [vmem:[%s976_s21 + $0xa8] sm:$0xff]  ;;  %v197_v7 = vld [vmem:[%s976_s21 + $0xa0] sm:$0xff] }
  0x22   : > { %395 = vmatprep.subr.mxu0 %v806_v1  ;;  %744 = vmatprep.subr.mxu1 %v806_v1  ;;  %v230_v6 = vld [vmem:[%s976_s21 + $0x1a8] sm:$0xff]  ;;  %v229_v8 = vld [vmem:[%s976_s21 + $0x1a0] sm:$0xff]  ;;  %v200_v9 = vld [vmem:[%s976_s21 + $0xb8] sm:$0xff] }
  0x23   : > { %396 = vmatpush1.msra.mxu0 %v245_v12  ;;  %772 = vmatpush1.msra.mxu1 %v245_v12  ;;  %v232_v10 = vld [vmem:[%s976_s21 + $0x1b8] sm:$0xff]  ;;  %v199_v11 = vld [vmem:[%s976_s21 + $0xb0] sm:$0xff] }
  0x24   : > { %397 = vmatprep.subr.mxu0 %v806_v1  ;;  %745 = vmatprep.subr.mxu1 %v806_v1  ;;  %v231_v12 = vld [vmem:[%s976_s21 + $0x1b0] sm:$0xff] }
  0x25   : > { %398 = vmatpush1.msra.mxu0 %v244_v13  ;;  %773 = vmatpush1.msra.mxu1 %v244_v13  ;;  %v202_v13 = vld [vmem:[%s976_s21 + $0xc8] sm:$0xff] }
  0x26   : > { %399 = vmatprep.subr.mxu0 %v806_v1  ;;  %746 = vmatprep.subr.mxu1 %v806_v1 }
  0x27   : > { %400 = vmatpush1.msra.mxu0 %v243_v14  ;;  %774 = vmatpush1.msra.mxu1 %v243_v14  ;;  %v234_v14 = vld [vmem:[%s976_s21 + $0x1c8] sm:$0xff] }
  0x28   : > { %401 = vmatprep.subr.mxu0 %v806_v1  ;;  %747 = vmatprep.subr.mxu1 %v806_v1 }
  0x29   : > { %402 = vmatpush1.msra.mxu0 %v242_v15  ;;  %775 = vmatpush1.msra.mxu1 %v242_v15  ;;  %v201_v15 = vld [vmem:[%s976_s21 + $0xc0] sm:$0xff] }
  0x2a   : > { %403 = vmatprep.subr.mxu0 %v806_v1  ;;  %748 = vmatprep.subr.mxu1 %v806_v1 }
  0x2b   : > { %404 = vmatpush1.msra.mxu0 %v241_v16  ;;  %776 = vmatpush1.msra.mxu1 %v241_v16  ;;  %v233_v16 = vld [vmem:[%s976_s21 + $0x1c0] sm:$0xff] }
  0x2c   : > { %413 = vmatprep.subr.mxu0 %v806_v1  ;;  %749 = vmatprep.subr.mxu1 %v806_v1 }
  0x2d   : > { %414 = vmatpush2.msra.mxu0 %v268_v17  ;;  %777 = vmatpush2.msra.mxu1 %v268_v17  ;;  %v204_v17 = vld [vmem:[%s976_s21 + $0xd8] sm:$0xff] }
  0x2e   : > { %415 = vmatprep.subr.mxu0 %v806_v1  ;;  %750 = vmatprep.subr.mxu1 %v806_v1 }
  0x2f   : > { %416 = vmatpush2.msra.mxu0 %v267_v18  ;;  %778 = vmatpush2.msra.mxu1 %v267_v18  ;;  %v236_v18 = vld [vmem:[%s976_s21 + $0x1d8] sm:$0xff] }
  0x30   : > { %417 = vmatprep.subr.mxu0 %v806_v1  ;;  %751 = vmatprep.subr.mxu1 %v806_v1 }
  0x31   : > { %418 = vmatpush2.msra.mxu0 %v266_v19  ;;  %779 = vmatpush2.msra.mxu1 %v266_v19  ;;  %v203_v19 = vld [vmem:[%s976_s21 + $0xd0] sm:$0xff] }
  0x32   : > { %419 = vmatprep.subr.mxu0 %v806_v1  ;;  %752 = vmatprep.subr.mxu1 %v806_v1 }
  0x33   : > { %420 = vmatpush2.msra.mxu0 %v265_v20  ;;  %780 = vmatpush2.msra.mxu1 %v265_v20  ;;  %v235_v20 = vld [vmem:[%s976_s21 + $0x1d0] sm:$0xff] }
  0x34   : > { %421 = vmatprep.subr.mxu0 %v806_v1  ;;  %753 = vmatprep.subr.mxu1 %v806_v1 }
  0x35   : > { %422 = vmatpush2.msra.mxu0 %v264_v21  ;;  %781 = vmatpush2.msra.mxu1 %v264_v21  ;;  %v206_v21 = vld [vmem:[%s976_s21 + $0xe8] sm:$0xff] }
  0x36   : > { %423 = vmatprep.subr.mxu0 %v806_v1  ;;  %754 = vmatprep.subr.mxu1 %v806_v1 }
  0x37   : > { %424 = vmatpush2.msra.mxu0 %v263_v22  ;;  %782 = vmatpush2.msra.mxu1 %v263_v22  ;;  %v238_v22 = vld [vmem:[%s976_s21 + $0x1e8] sm:$0xff] }
  0x38   : > { %425 = vmatprep.subr.mxu0 %v806_v1  ;;  %755 = vmatprep.subr.mxu1 %v806_v1 }
  0x39   : > { %426 = vmatpush2.msra.mxu0 %v262_v23  ;;  %783 = vmatpush2.msra.mxu1 %v262_v23  ;;  %v205_v23 = vld [vmem:[%s976_s21 + $0xe0] sm:$0xff] }
  0x3a   : > { %427 = vmatprep.subr.mxu0 %v806_v1  ;;  %756 = vmatprep.subr.mxu1 %v806_v1 }
  0x3b   : > { %428 = vmatpush2.msra.mxu0 %v261_v24  ;;  %784 = vmatpush2.msra.mxu1 %v261_v24  ;;  %v237_v24 = vld [vmem:[%s976_s21 + $0x1e0] sm:$0xff] }
  0x3c   : > { %429 = vmatprep.subr.mxu0 %v806_v1  ;;  %757 = vmatprep.subr.mxu1 %v806_v1 }
  0x3d   : > { %430 = vmatpush2.msra.mxu0 %v260_v25  ;;  %785 = vmatpush2.msra.mxu1 %v260_v25  ;;  %v208_v25 = vld [vmem:[%s976_s21 + $0xf8] sm:$0xff] }
  0x3e   : > { %431 = vmatprep.subr.mxu0 %v806_v1  ;;  %758 = vmatprep.subr.mxu1 %v806_v1 }
  0x3f   : > { %432 = vmatpush2.msra.mxu0 %v259_v26  ;;  %786 = vmatpush2.msra.mxu1 %v259_v26  ;;  %v240_v26 = vld [vmem:[%s976_s21 + $0x1f8] sm:$0xff] }
  0x40   : > { %433 = vmatprep.subr.mxu0 %v806_v1  ;;  %759 = vmatprep.subr.mxu1 %v806_v1 }
  0x41   : > { %434 = vmatpush2.msra.mxu0 %v258_v27  ;;  %787 = vmatpush2.msra.mxu1 %v258_v27  ;;  %v207_v27 = vld [vmem:[%s976_s21 + $0xf0] sm:$0xff] }
  0x42   : > { %435 = vmatprep.subr.mxu0 %v806_v1  ;;  %760 = vmatprep.subr.mxu1 %v806_v1  ;;  %v196_v1 = vld [vmem:[%s976_s21 + $0x98] sm:$0xff] }
  0x43   : > { %436 = vmatpush2.msra.mxu0 %v257_v28  ;;  %788 = vmatpush2.msra.mxu1 %v257_v28  ;;  %v239_v28 = vld [vmem:[%s976_s21 + $0x1f0] sm:$0xff] }
  0x44   : > { %698 = vmatprep.mubr.msk.f32.mxu0 %vm276_vm0, %v178_v29  ;;  %714 = vmatprep.mubr.msk.f32.mxu1 %vm276_vm0, %v210_v30  ;;  %v1085_v29 = vld [vmem:[%s1193_s2] ss:$0 sm:$0xff] }
  0x45   : > { %438 = vmatmul.mubr.f32.vlgmr.msra.gmra.mxu0 %v177_v31  ;;  %518 = vmatmul.mubr.f32.vlgmr.msra.gmra.mxu1 %v209_v32 }
  0x46   : > { %699 = vmatprep.mubr.msk.f32.mxu0 %vm276_vm0, %v180_v33  ;;  %715 = vmatprep.mubr.msk.f32.mxu1 %vm276_vm0, %v212_v34 }
  0x49   : > { %443 = vmatmul.mubr.f32.gmra.mxu0 %v179_v35  ;;  %523 = vmatmul.mubr.f32.gmra.mxu1 %v211_v36 }
  0x4a   : > { %700 = vmatprep.mubr.msk.f32.mxu0 %vm276_vm0, %v182_v37  ;;  %716 = vmatprep.mubr.msk.f32.mxu1 %vm276_vm0, %v214_v38 }
  0x4d   : > { %448 = vmatmul.mubr.f32.gmra.mxu0 %v181_v39  ;;  %528 = vmatmul.mubr.f32.gmra.mxu1 %v213_v40 }
  0x4e   : > { %701 = vmatprep.mubr.msk.f32.mxu0 %vm276_vm0, %v184_v41  ;;  %717 = vmatprep.mubr.msk.f32.mxu1 %vm276_vm0, %v216_v42 }
  0x51   : > { %453 = vmatmul.mubr.f32.gmra.mxu0 %v183_v43  ;;  %533 = vmatmul.mubr.f32.gmra.mxu1 %v215_v44 }
  0x52   : > { %702 = vmatprep.mubr.msk.f32.mxu0 %vm276_vm0, %v186_v45  ;;  %718 = vmatprep.mubr.msk.f32.mxu1 %vm276_vm0, %v218_v46 }
  0x55   : > { %458 = vmatmul.mubr.f32.gmra.mxu0 %v185_v47  ;;  %538 = vmatmul.mubr.f32.gmra.mxu1 %v217_v48 }
  0x56   : > { %703 = vmatprep.mubr.msk.f32.mxu0 %vm276_vm0, %v188_v49  ;;  %719 = vmatprep.mubr.msk.f32.mxu1 %vm276_vm0, %v220_v50 }
  0x59   : > { %463 = vmatmul.mubr.f32.gmra.mxu0 %v187_v51  ;;  %543 = vmatmul.mubr.f32.gmra.mxu1 %v219_v52 }
  0x5a   : > { %704 = vmatprep.mubr.msk.f32.mxu0 %vm276_vm0, %v190_v53  ;;  %720 = vmatprep.mubr.msk.f32.mxu1 %vm276_vm0, %v222_v54 }
  0x5d   : > { %468 = vmatmul.mubr.f32.gmra.mxu0 %v189_v55  ;;  %548 = vmatmul.mubr.f32.gmra.mxu1 %v221_v56 }
  0x5e   : > { %705 = vmatprep.mubr.msk.f32.mxu0 %vm276_vm0, %v192_v57  ;;  %721 = vmatprep.mubr.msk.f32.mxu1 %vm276_vm0, %v224_v58 }
  0x61   : > { %473 = vmatmul.mubr.f32.gmra.mxu0 %v191_v59  ;;  %553 = vmatmul.mubr.f32.gmra.mxu1 %v223_v60 }
  0x62   : > { %706 = vmatprep.mubr.msk.f32.mxu0 %vm276_vm0, %v194_v61  ;;  %722 = vmatprep.mubr.msk.f32.mxu1 %vm276_vm0, %v226_v62 }
  0x65   : > { %478 = vmatmul.mubr.f32.gmra.mxu0 %v193_v63  ;;  %558 = vmatmul.mubr.f32.gmra.mxu1 %v225_v0 }
  0x66   : > { %707 = vmatprep.mubr.msk.f32.mxu0 %vm276_vm0, %v196_v1  ;;  %723 = vmatprep.mubr.msk.f32.mxu1 %vm276_vm0, %v228_v2 }
  0x69   : > { %483 = vmatmul.mubr.f32.gmra.mxu0 %v195_v3  ;;  %563 = vmatmul.mubr.f32.gmra.mxu1 %v227_v4 }
  0x6a   : > { %708 = vmatprep.mubr.msk.f32.mxu0 %vm276_vm0, %v198_v5  ;;  %724 = vmatprep.mubr.msk.f32.mxu1 %vm276_vm0, %v230_v6 }
  0x6d   : > { %488 = vmatmul.mubr.f32.gmra.mxu0 %v197_v7  ;;  %568 = vmatmul.mubr.f32.gmra.mxu1 %v229_v8 }
  0x6e   : > { %709 = vmatprep.mubr.msk.f32.mxu0 %vm276_vm0, %v200_v9  ;;  %725 = vmatprep.mubr.msk.f32.mxu1 %vm276_vm0, %v232_v10 }
  0x71   : > { %493 = vmatmul.mubr.f32.gmra.mxu0 %v199_v11  ;;  %573 = vmatmul.mubr.f32.gmra.mxu1 %v231_v12 }
  0x72   : > { %710 = vmatprep.mubr.msk.f32.mxu0 %vm276_vm0, %v202_v13  ;;  %726 = vmatprep.mubr.msk.f32.mxu1 %vm276_vm0, %v234_v14 }
  0x75   : > { %498 = vmatmul.mubr.f32.gmra.mxu0 %v201_v15  ;;  %578 = vmatmul.mubr.f32.gmra.mxu1 %v233_v16 }
  0x76   : > { %711 = vmatprep.mubr.msk.f32.mxu0 %vm276_vm0, %v204_v17  ;;  %727 = vmatprep.mubr.msk.f32.mxu1 %vm276_vm0, %v236_v18 }
  0x79   : > { %503 = vmatmul.mubr.f32.gmra.mxu0 %v203_v19  ;;  %583 = vmatmul.mubr.f32.gmra.mxu1 %v235_v20 }
  0x7a   : > { %712 = vmatprep.mubr.msk.f32.mxu0 %vm276_vm0, %v206_v21  ;;  %728 = vmatprep.mubr.msk.f32.mxu1 %vm276_vm0, %v238_v22 }
  0x7d   : > { %508 = vmatmul.mubr.f32.gmra.mxu0 %v205_v23  ;;  %588 = vmatmul.mubr.f32.gmra.mxu1 %v237_v24 }
  0x7e   : > { %713 = vmatprep.mubr.msk.f32.mxu0 %vm276_vm0, %v208_v25  ;;  %729 = vmatprep.mubr.msk.f32.mxu1 %vm276_vm0, %v240_v26 }
  0x81   : > { %513 = vmatmul.mubr.f32.gmra.mxu0 %v207_v27  ;;  %593 = vmatmul.mubr.f32.gmra.mxu1 %v239_v28 }
 0x105   : > { %v439_v30 = vpop.f32.mrf.mxu0  ;;  %v519_v31 = vpop.f32.mrf.mxu1 }
 0x106   : > { %v440_v32 = vadd.f32 %v1085_v29, %v439_v30  ;;  %v520_v33 = vadd.f32 %v1085_v29, %v519_v31 }
 0x107   : > { %v441_v34 = vpop.f32.mrf.mxu0  ;;  %v521_v35 = vpop.f32.mrf.mxu1 }
 0x108   : > { %599 = vst.msk [vmem:[%s1090_s30] sm:$0xff] %vm598_vm1, %v440_v32  ;;  %615 = vst.msk [vmem:[%s1090_s30 + $0x80] sm:$0xff] %vm598_vm1, %v520_v33 }
 0x109   : > { %v444_v36 = vpop.f32.mrf.mxu0  ;;  %v524_v37 = vpop.f32.mrf.mxu1 }
 0x10a   : > { %v445_v38 = vadd.f32 %v1085_v29, %v444_v36  ;;  %v525_v39 = vadd.f32 %v1085_v29, %v524_v37 }
 0x10b   : > { %v446_v40 = vpop.f32.mrf.mxu0  ;;  %v526_v41 = vpop.f32.mrf.mxu1 }
 0x10c   : > { %600 = vst.msk [vmem:[%s1090_s30 + $0x8] sm:$0xff] %vm598_vm1, %v445_v38  ;;  %616 = vst.msk [vmem:[%s1090_s30 + $0x88] sm:$0xff] %vm598_vm1, %v525_v39 }
 0x10d   : > { %v449_v42 = vpop.f32.mrf.mxu0  ;;  %v529_v43 = vpop.f32.mrf.mxu1 }
 0x10e   : > { %v450_v44 = vadd.f32 %v1085_v29, %v449_v42  ;;  %v530_v45 = vadd.f32 %v1085_v29, %v529_v43 }
 0x10f   : > { %v451_v46 = vpop.f32.mrf.mxu0  ;;  %v531_v47 = vpop.f32.mrf.mxu1 }
 0x110   : > { %601 = vst.msk [vmem:[%s1090_s30 + $0x10] sm:$0xff] %vm598_vm1, %v450_v44  ;;  %617 = vst.msk [vmem:[%s1090_s30 + $0x90] sm:$0xff] %vm598_vm1, %v530_v45 }
 0x111   : > { %v454_v48 = vpop.f32.mrf.mxu0  ;;  %v534_v49 = vpop.f32.mrf.mxu1 }
 0x112   : > { %v455_v50 = vadd.f32 %v1085_v29, %v454_v48  ;;  %v535_v51 = vadd.f32 %v1085_v29, %v534_v49 }
 0x113   : > { %v456_v52 = vpop.f32.mrf.mxu0  ;;  %v536_v53 = vpop.f32.mrf.mxu1 }
 0x114   : > { %602 = vst.msk [vmem:[%s1090_s30 + $0x18] sm:$0xff] %vm598_vm1, %v455_v50  ;;  %618 = vst.msk [vmem:[%s1090_s30 + $0x98] sm:$0xff] %vm598_vm1, %v535_v51 }
 0x115   : > { %v459_v54 = vpop.f32.mrf.mxu0  ;;  %v539_v55 = vpop.f32.mrf.mxu1 }
 0x116   : > { %v460_v56 = vadd.f32 %v1085_v29, %v459_v54  ;;  %v540_v57 = vadd.f32 %v1085_v29, %v539_v55 }
 0x117   : > { %v461_v58 = vpop.f32.mrf.mxu0  ;;  %v541_v59 = vpop.f32.mrf.mxu1 }
 0x118   : > { %603 = vst.msk [vmem:[%s1090_s30 + $0x20] sm:$0xff] %vm598_vm1, %v460_v56  ;;  %619 = vst.msk [vmem:[%s1090_s30 + $0xa0] sm:$0xff] %vm598_vm1, %v540_v57 }
 0x119   : > { %v464_v60 = vpop.f32.mrf.mxu0  ;;  %v544_v61 = vpop.f32.mrf.mxu1 }
 0x11a   : > { %v465_v62 = vadd.f32 %v1085_v29, %v464_v60  ;;  %v545_v63 = vadd.f32 %v1085_v29, %v544_v61 }
 0x11b   : > { %v466_v0 = vpop.f32.mrf.mxu0  ;;  %v546_v1 = vpop.f32.mrf.mxu1 }
 0x11c   : > { %604 = vst.msk [vmem:[%s1090_s30 + $0x28] sm:$0xff] %vm598_vm1, %v465_v62  ;;  %620 = vst.msk [vmem:[%s1090_s30 + $0xa8] sm:$0xff] %vm598_vm1, %v545_v63 }
 0x11d   : > { %v469_v2 = vpop.f32.mrf.mxu0  ;;  %v549_v3 = vpop.f32.mrf.mxu1 }
 0x11e   : > { %v470_v4 = vadd.f32 %v1085_v29, %v469_v2  ;;  %v550_v5 = vadd.f32 %v1085_v29, %v549_v3 }
 0x11f   : > { %v471_v6 = vpop.f32.mrf.mxu0  ;;  %v551_v7 = vpop.f32.mrf.mxu1 }
 0x120   : > { %605 = vst.msk [vmem:[%s1090_s30 + $0x30] sm:$0xff] %vm598_vm1, %v470_v4  ;;  %621 = vst.msk [vmem:[%s1090_s30 + $0xb0] sm:$0xff] %vm598_vm1, %v550_v5 }
 0x121   : > { %v474_v8 = vpop.f32.mrf.mxu0  ;;  %v554_v9 = vpop.f32.mrf.mxu1 }
 0x122   : > { %v475_v10 = vadd.f32 %v1085_v29, %v474_v8  ;;  %v555_v11 = vadd.f32 %v1085_v29, %v554_v9 }
 0x123   : > { %v476_v12 = vpop.f32.mrf.mxu0  ;;  %v556_v13 = vpop.f32.mrf.mxu1 }
 0x124   : > { %606 = vst.msk [vmem:[%s1090_s30 + $0x38] sm:$0xff] %vm598_vm1, %v475_v10  ;;  %622 = vst.msk [vmem:[%s1090_s30 + $0xb8] sm:$0xff] %vm598_vm1, %v555_v11 }
 0x125   : > { %v479_v14 = vpop.f32.mrf.mxu0  ;;  %v559_v15 = vpop.f32.mrf.mxu1 }
 0x126   : > { %v480_v16 = vadd.f32 %v1085_v29, %v479_v14  ;;  %v560_v17 = vadd.f32 %v1085_v29, %v559_v15 }
 0x127   : > { %v481_v18 = vpop.f32.mrf.mxu0  ;;  %v561_v19 = vpop.f32.mrf.mxu1 }
 0x128   : > { %607 = vst.msk [vmem:[%s1090_s30 + $0x40] sm:$0xff] %vm598_vm1, %v480_v16  ;;  %623 = vst.msk [vmem:[%s1090_s30 + $0xc0] sm:$0xff] %vm598_vm1, %v560_v17 }
 0x129   : > { %v484_v20 = vpop.f32.mrf.mxu0  ;;  %v564_v21 = vpop.f32.mrf.mxu1 }
 0x12a   : > { %v485_v22 = vadd.f32 %v1085_v29, %v484_v20  ;;  %v565_v23 = vadd.f32 %v1085_v29, %v564_v21 }
 0x12b   : > { %v486_v24 = vpop.f32.mrf.mxu0  ;;  %v566_v25 = vpop.f32.mrf.mxu1 }
 0x12c   : > { %608 = vst.msk [vmem:[%s1090_s30 + $0x48] sm:$0xff] %vm598_vm1, %v485_v22  ;;  %624 = vst.msk [vmem:[%s1090_s30 + $0xc8] sm:$0xff] %vm598_vm1, %v565_v23 }
 0x12d   : > { %v489_v26 = vpop.f32.mrf.mxu0  ;;  %v569_v27 = vpop.f32.mrf.mxu1 }
 0x12e   : > { %v490_v28 = vadd.f32 %v1085_v29, %v489_v26  ;;  %v570_v30 = vadd.f32 %v1085_v29, %v569_v27 }
 0x12f   : > { %v491_v31 = vpop.f32.mrf.mxu0  ;;  %v571_v32 = vpop.f32.mrf.mxu1 }
 0x130   : > { %609 = vst.msk [vmem:[%s1090_s30 + $0x50] sm:$0xff] %vm598_vm1, %v490_v28  ;;  %625 = vst.msk [vmem:[%s1090_s30 + $0xd0] sm:$0xff] %vm598_vm1, %v570_v30 }
 0x131   : > { %v494_v33 = vpop.f32.mrf.mxu0  ;;  %v574_v34 = vpop.f32.mrf.mxu1 }
 0x132   : > { %v495_v35 = vadd.f32 %v1085_v29, %v494_v33  ;;  %v575_v36 = vadd.f32 %v1085_v29, %v574_v34 }
 0x133   : > { %v496_v37 = vpop.f32.mrf.mxu0  ;;  %v576_v38 = vpop.f32.mrf.mxu1 }
 0x134   : > { %610 = vst.msk [vmem:[%s1090_s30 + $0x58] sm:$0xff] %vm598_vm1, %v495_v35  ;;  %626 = vst.msk [vmem:[%s1090_s30 + $0xd8] sm:$0xff] %vm598_vm1, %v575_v36 }
 0x135   : > { %v499_v39 = vpop.f32.mrf.mxu0  ;;  %v579_v40 = vpop.f32.mrf.mxu1 }
 0x136   : > { %v500_v41 = vadd.f32 %v1085_v29, %v499_v39  ;;  %v580_v42 = vadd.f32 %v1085_v29, %v579_v40 }
 0x137   : > { %v501_v43 = vpop.f32.mrf.mxu0  ;;  %v581_v44 = vpop.f32.mrf.mxu1 }
 0x138   : > { %611 = vst.msk [vmem:[%s1090_s30 + $0x60] sm:$0xff] %vm598_vm1, %v500_v41  ;;  %627 = vst.msk [vmem:[%s1090_s30 + $0xe0] sm:$0xff] %vm598_vm1, %v580_v42 }
 0x139   : > { %v504_v45 = vpop.f32.mrf.mxu0  ;;  %v584_v46 = vpop.f32.mrf.mxu1 }
 0x13a   : > { %v505_v47 = vadd.f32 %v1085_v29, %v504_v45  ;;  %v585_v48 = vadd.f32 %v1085_v29, %v584_v46 }
 0x13b   : > { %v506_v49 = vpop.f32.mrf.mxu0  ;;  %v586_v50 = vpop.f32.mrf.mxu1 }
 0x13c   : > { %612 = vst.msk [vmem:[%s1090_s30 + $0x68] sm:$0xff] %vm598_vm1, %v505_v47  ;;  %628 = vst.msk [vmem:[%s1090_s30 + $0xe8] sm:$0xff] %vm598_vm1, %v585_v48 }
 0x13d   : > { %v509_v51 = vpop.f32.mrf.mxu0  ;;  %v589_v52 = vpop.f32.mrf.mxu1 }
 0x13e   : > { %v510_v53 = vadd.f32 %v1085_v29, %v509_v51  ;;  %v590_v54 = vadd.f32 %v1085_v29, %v589_v52 }
 0x13f   : > { %v511_v55 = vpop.f32.mrf.mxu0  ;;  %v591_v56 = vpop.f32.mrf.mxu1 }
 0x140   : > { %613 = vst.msk [vmem:[%s1090_s30 + $0x70] sm:$0xff] %vm598_vm1, %v510_v53  ;;  %629 = vst.msk [vmem:[%s1090_s30 + $0xf0] sm:$0xff] %vm598_vm1, %v590_v54 }
 0x141   : > { %v514_v57 = vpop.f32.mrf.mxu0  ;;  %v594_v58 = vpop.f32.mrf.mxu1 }
 0x142   : > { %v515_v59 = vadd.f32 %v1085_v29, %v514_v57  ;;  %v595_v60 = vadd.f32 %v1085_v29, %v594_v58 }
 0x143   : > { %v516_v61 = vpop.f32.mrf.mxu0  ;;  %v596_v62 = vpop.f32.mrf.mxu1 }
 0x144   : > { %614 = vst.msk [vmem:[%s1090_s30 + $0x78] sm:$0xff] %vm598_vm1, %v515_v59  ;;  %630 = vst.msk [vmem:[%s1090_s30 + $0xf8] sm:$0xff] %vm598_vm1, %v595_v60 }
 0x145 PF: > { %s13_s12 = sadd.s32 1, %s804_s12  }
 0x146   : > { %p10_p4 = scmp.ge.s32.totalorder %s13_s12, 4  }
 0x148   :  { %12 = sbr.rel (!%p10_p4) target bundleno = 1 (0x1), region = 62 }

// kernel: rfb_forward.21
= control target key start
LH: loop header
LB: loop body
LE: loop exit
PB: predicated region body
PF: predicated region fallthrough
CT: control target
= control target key end

     0   :  { %9 = vsyncpa [#allocation3], 0  ;;  %s3637_s0 = inlined_call_operand.vmem [shape: f32[512,1152], index: 0, kind: input, shape index: {}]   ;;  %s3638_s1 = inlined_call_operand.vmem [shape: f32[512,32], index: 1, kind: input, shape index: {}]   ;;  %s3639_s2 = inlined_call_operand.vmem [shape: f32[1152,32], index: 2, kind: input, shape index: {}]   ;;  %s3640_s3 = inlined_call_operand.vmem [shape: f32[1,32], index: 3, kind: input, shape index: {}]   ;;  %s3641_s4 = inlined_call_operand.hbm [shape: f32[512,32], index: 4, kind: output, shape index: {}]  }
   0x1   :  { %11 = vsyncpa [#allocation3 + $0x1], 0  ;;  %s2315_s15 = smov 0   ;;  %s2317_s16 = smov 0  }
   0x2   :  { %s2319_s17 = smov 0   ;;  %s2321_s18 = smov 0  }
   0x3 LB: > { %s2336_s19 = sadd.s32 4294967295, %s2284_s18   ;;  %s2005_s20 = sadd.s32 4294967294, %s2284_s18   ;;  %s2284_s18 = sphi %s2321_s18, %s3669_s18   ;;  %s2280_s17 = sphi %s2319_s17, %s3668_s17   ;;  %s2276_s16 = sphi %s2317_s16, %s3667_s16   ;;  %s2272_s15 = sphi %s2315_s15, %s3666_s15  }
   0x4   : > { %s2340_s21 = sadd.s32 1, %s2284_s18   ;;  %s118_s22 = sadd.s32 1, %s2280_s17 }
   0x5   : > { %s115_s23 = ssub.s32 %s2284_s18, %s2340_s21  ;;  %p128_p0 = scmp.ne.s32.totalorder %s2280_s17, %s2276_s16 }
   0x6   : > { %p116_p1 = scmp.eq.s32.totalorder %s115_s23, 0  ;;  %p129_p2 = scmp.eq.s32.totalorder %s2336_s19, 1 }
   0x7   : > { %p134_p3 = scmp.ne.s32.totalorder %s2276_s16, %s2272_s15  ;;  %p135_p4 = scmp.eq.s32.totalorder %s2005_s20, 1 }
   0x8   : > { %s2351_s24 = scalar_select %p116_p1, %s2280_s17, %s118_s22  }
   0x9   : > { %p2353_p5 = por %p129_p2, %p128_p0  ;;  %p2357_p6 = por %p135_p4, %p134_p3 }
   0xa   : > { %p2008_p7 = scmp.ge.s32.totalorder %s2284_s18, 1  ;;  %p178_p8 = scmp.lt.s32.totalorder %s2284_s18, 3 }
   0xc   : > { %p179_p9 = pnand %p2008_p7, %p178_p8 }
   0xe   : > { %182 = sbr.rel (%p179_p9) target bundleno = 584 (0x248), region = 36 }
  0x13   : > { %v527_v0 = vld [vmem:[%s3639_s2 + $0x78] sm:$0xff]  ;;  %v2286_v2 = vmov 0.0   ;;  %v526_v3 = vld [vmem:[%s3639_s2 + $0x70] sm:$0xff]  ;;  %v525_v5 = vld [vmem:[%s3639_s2 + $0x68] sm:$0xff]  ;;  %s2010_s8 = sshll.u32 %s2336_s19, 5  ;;  %s207_s23 = sand.u32 1, %s2276_s16  }
  0x14   : > { %v559_v1 = vld [vmem:[%s3639_s2 + $0x178] sm:$0xff]  ;;  %663 = vmatprep.subr.mxu0 %v2286_v2  ;;  %888 = vmatprep.subr.mxu1 %v2286_v2  ;;  %v558_v4 = vld [vmem:[%s3639_s2 + $0x170] sm:$0xff]  ;;  %v557_v6 = vld [vmem:[%s3639_s2 + $0x168] sm:$0xff]  ;;  %p211_p10 = scmp.lt.s32.totalorder %s2010_s8, 63  ;;  %vm1884_vm0 = vcmask 261120   ;;  %s2020_s28 = sshll.u32 %s2336_s19, 12 }
  0x15   : > { %664 = vmatpush1.msra.mxu0 %v527_v0  ;;  %889 = vmatpush1.msra.mxu1 %v559_v1  ;;  %v524_v7 = vld [vmem:[%s3639_s2 + $0x60] sm:$0xff]  ;;  %v523_v9 = vld [vmem:[%s3639_s2 + $0x58] sm:$0xff]  ;;  %v522_v11 = vld [vmem:[%s3639_s2 + $0x50] sm:$0xff]  ;;  %s3583_s6 = scalar_lea.hbm %s3641_s4, %s2020_s28  ;;  %s3597_s19 = scalar_lea.sflag [#allocation3], %s207_s23 }
  0x16   : > { %665 = vmatprep.subr.mxu0 %v2286_v2  ;;  %890 = vmatprep.subr.mxu1 %v2286_v2  ;;  %v556_v8 = vld [vmem:[%s3639_s2 + $0x160] sm:$0xff]  ;;  %v555_v10 = vld [vmem:[%s3639_s2 + $0x158] sm:$0xff]  ;;  %v554_v12 = vld [vmem:[%s3639_s2 + $0x150] sm:$0xff]  ;;  %s3671_s8 = smov (!%p211_p10, %s2010_s8), 63  ;;  %s2287_s10 = smov [#allocation2]  }
  0x17   : > { %666 = vmatpush1.msra.mxu0 %v526_v3  ;;  %891 = vmatpush1.msra.mxu1 %v558_v4  ;;  %v521_v13 = vld [vmem:[%s3639_s2 + $0x48] sm:$0xff]  ;;  %v520_v15 = vld [vmem:[%s3639_s2 + $0x40] sm:$0xff]  ;;  %v519_v17 = vld [vmem:[%s3639_s2 + $0x38] sm:$0xff]  ;;  %s2181_s13 = smul.u32 72, %s3671_s8  ;;  %s2228_s11 = sshll.u32 %s2287_s10, 4  ;;  %s2229_s11 = int_to_ptr.vmem [resolvable:$false] %s2228_s11 }
  0x18   : > { %667 = vmatprep.subr.mxu0 %v2286_v2  ;;  %892 = vmatprep.subr.mxu1 %v2286_v2  ;;  %v553_v14 = vld [vmem:[%s3639_s2 + $0x148] sm:$0xff]  ;;  %v552_v16 = vld [vmem:[%s3639_s2 + $0x140] sm:$0xff]  ;;  %v551_v18 = vld [vmem:[%s3639_s2 + $0x138] sm:$0xff]  ;;  %s2230_s12 = scalar_lea.vmem %s2229_s11, 8192 }
  0x19   : > { %668 = vmatpush1.msra.mxu0 %v525_v5  ;;  %893 = vmatpush1.msra.mxu1 %v557_v6  ;;  %v518_v19 = vld [vmem:[%s3639_s2 + $0x30] sm:$0xff]  ;;  %v517_v21 = vld [vmem:[%s3639_s2 + $0x28] sm:$0xff]  ;;  %v516_v23 = vld [vmem:[%s3639_s2 + $0x20] sm:$0xff]  ;;  %s2608_s7 = scalar_lea.vmem %s3637_s0, %s2181_s13 }
  0x1a   : > { %669 = vmatprep.subr.mxu0 %v2286_v2  ;;  %894 = vmatprep.subr.mxu1 %v2286_v2  ;;  %v550_v20 = vld [vmem:[%s3639_s2 + $0x130] sm:$0xff]  ;;  %v549_v22 = vld [vmem:[%s3639_s2 + $0x128] sm:$0xff]  ;;  %v548_v24 = vld [vmem:[%s3639_s2 + $0x120] sm:$0xff] }
  0x1b   : > { %670 = vmatpush1.msra.mxu0 %v524_v7  ;;  %895 = vmatpush1.msra.mxu1 %v556_v8  ;;  %v515_v25 = vld [vmem:[%s3639_s2 + $0x18] sm:$0xff]  ;;  %v514_v27 = vld [vmem:[%s3639_s2 + $0x10] sm:$0xff]  ;;  %v513_v29 = vld [vmem:[%s3639_s2 + $0x8] sm:$0xff] }
  0x1c   : > { %671 = vmatprep.subr.mxu0 %v2286_v2  ;;  %896 = vmatprep.subr.mxu1 %v2286_v2  ;;  %v547_v26 = vld [vmem:[%s3639_s2 + $0x118] sm:$0xff]  ;;  %v546_v28 = vld [vmem:[%s3639_s2 + $0x110] sm:$0xff]  ;;  %v545_v30 = vld [vmem:[%s3639_s2 + $0x108] sm:$0xff] }
  0x1d   : > { %672 = vmatpush1.msra.mxu0 %v523_v9  ;;  %897 = vmatpush1.msra.mxu1 %v555_v10  ;;  %v512_v31 = vld [vmem:[%s3639_s2] sm:$0xff]  ;;  %v543_v33 = vld [vmem:[%s3639_s2 + $0xf8] sm:$0xff]  ;;  %v542_v35 = vld [vmem:[%s3639_s2 + $0xf0] sm:$0xff] }
  0x1e   : > { %673 = vmatprep.subr.mxu0 %v2286_v2  ;;  %898 = vmatprep.subr.mxu1 %v2286_v2  ;;  %v544_v32 = vld [vmem:[%s3639_s2 + $0x100] sm:$0xff]  ;;  %v575_v34 = vld [vmem:[%s3639_s2 + $0x1f8] sm:$0xff]  ;;  %v574_v36 = vld [vmem:[%s3639_s2 + $0x1f0] sm:$0xff] }
  0x1f   : > { %674 = vmatpush1.msra.mxu0 %v522_v11  ;;  %899 = vmatpush1.msra.mxu1 %v554_v12  ;;  %v541_v37 = vld [vmem:[%s3639_s2 + $0xe8] sm:$0xff]  ;;  %v540_v39 = vld [vmem:[%s3639_s2 + $0xe0] sm:$0xff]  ;;  %v539_v41 = vld [vmem:[%s3639_s2 + $0xd8] sm:$0xff] }
  0x20   : > { %675 = vmatprep.subr.mxu0 %v2286_v2  ;;  %900 = vmatprep.subr.mxu1 %v2286_v2  ;;  %v573_v38 = vld [vmem:[%s3639_s2 + $0x1e8] sm:$0xff]  ;;  %v572_v40 = vld [vmem:[%s3639_s2 + $0x1e0] sm:$0xff]  ;;  %v571_v42 = vld [vmem:[%s3639_s2 + $0x1d8] sm:$0xff] }
  0x21   : > { %676 = vmatpush1.msra.mxu0 %v521_v13  ;;  %901 = vmatpush1.msra.mxu1 %v553_v14  ;;  %v538_v43 = vld [vmem:[%s3639_s2 + $0xd0] sm:$0xff]  ;;  %v537_v45 = vld [vmem:[%s3639_s2 + $0xc8] sm:$0xff]  ;;  %v536_v47 = vld [vmem:[%s3639_s2 + $0xc0] sm:$0xff] }
  0x22   : > { %677 = vmatprep.subr.mxu0 %v2286_v2  ;;  %902 = vmatprep.subr.mxu1 %v2286_v2  ;;  %v570_v44 = vld [vmem:[%s3639_s2 + $0x1d0] sm:$0xff]  ;;  %v569_v46 = vld [vmem:[%s3639_s2 + $0x1c8] sm:$0xff]  ;;  %v568_v48 = vld [vmem:[%s3639_s2 + $0x1c0] sm:$0xff] }
  0x23   : > { %678 = vmatpush1.msra.mxu0 %v520_v15  ;;  %903 = vmatpush1.msra.mxu1 %v552_v16  ;;  %v535_v49 = vld [vmem:[%s3639_s2 + $0xb8] sm:$0xff]  ;;  %v534_v51 = vld [vmem:[%s3639_s2 + $0xb0] sm:$0xff]  ;;  %v533_v53 = vld [vmem:[%s3639_s2 + $0xa8] sm:$0xff] }
  0x24   : > { %679 = vmatprep.subr.mxu0 %v2286_v2  ;;  %904 = vmatprep.subr.mxu1 %v2286_v2  ;;  %v567_v50 = vld [vmem:[%s3639_s2 + $0x1b8] sm:$0xff]  ;;  %v566_v52 = vld [vmem:[%s3639_s2 + $0x1b0] sm:$0xff]  ;;  %v565_v54 = vld [vmem:[%s3639_s2 + $0x1a8] sm:$0xff] }
  0x25   : > { %680 = vmatpush1.msra.mxu0 %v519_v17  ;;  %905 = vmatpush1.msra.mxu1 %v551_v18  ;;  %v532_v55 = vld [vmem:[%s3639_s2 + $0xa0] sm:$0xff]  ;;  %v531_v57 = vld [vmem:[%s3639_s2 + $0x98] sm:$0xff]  ;;  %v530_v59 = vld [vmem:[%s3639_s2 + $0x90] sm:$0xff] }
  0x26   : > { %681 = vmatprep.subr.mxu0 %v2286_v2  ;;  %906 = vmatprep.subr.mxu1 %v2286_v2  ;;  %v564_v56 = vld [vmem:[%s3639_s2 + $0x1a0] sm:$0xff]  ;;  %v563_v58 = vld [vmem:[%s3639_s2 + $0x198] sm:$0xff]  ;;  %v562_v60 = vld [vmem:[%s3639_s2 + $0x190] sm:$0xff] }
  0x27   : > { %682 = vmatpush1.msra.mxu0 %v518_v19  ;;  %907 = vmatpush1.msra.mxu1 %v550_v20  ;;  %v529_v61 = vld [vmem:[%s3639_s2 + $0x88] sm:$0xff]  ;;  %v528_v63 = vld [vmem:[%s3639_s2 + $0x80] sm:$0xff]  ;;  %v227_v3 = vld [vmem:[%s2608_s7 + $0x18] sm:$0xff] }
  0x28   : > { %683 = vmatprep.subr.mxu0 %v2286_v2  ;;  %908 = vmatprep.subr.mxu1 %v2286_v2  ;;  %v561_v62 = vld [vmem:[%s3639_s2 + $0x188] sm:$0xff]  ;;  %v560_v1 = vld [vmem:[%s3639_s2 + $0x180] sm:$0xff]  ;;  %v226_v5 = vld [vmem:[%s2608_s7 + $0x10] sm:$0xff] }
  0x29   : > { %684 = vmatpush1.msra.mxu0 %v517_v21  ;;  %909 = vmatpush1.msra.mxu1 %v549_v22  ;;  %v225_v0 = vld [vmem:[%s2608_s7 + $0x8] sm:$0xff]  ;;  %v224_v4 = vld [vmem:[%s2608_s7] sm:$0xff]  ;;  %v591_v6 = vld [vmem:[%s3639_s2 + $0x278] sm:$0xff] }
  0x2a   : > { %685 = vmatprep.subr.mxu0 %v2286_v2  ;;  %910 = vmatprep.subr.mxu1 %v2286_v2  ;;  %v623_v7 = vld [vmem:[%s3639_s2 + $0x378] sm:$0xff]  ;;  %v234_v8 = vld [vmem:[%s2608_s7 + $0x50] sm:$0xff]  ;;  %v236_v9 = vld [vmem:[%s2608_s7 + $0x60] sm:$0xff] }
  0x2b   : > { %686 = vmatpush1.msra.mxu0 %v516_v23  ;;  %911 = vmatpush1.msra.mxu1 %v548_v24  ;;  %v233_v10 = vld [vmem:[%s2608_s7 + $0x48] sm:$0xff]  ;;  %v235_v11 = vld [vmem:[%s2608_s7 + $0x58] sm:$0xff]  ;;  %v590_v12 = vld [vmem:[%s3639_s2 + $0x270] sm:$0xff] }
  0x2c   : > { %687 = vmatprep.subr.mxu0 %v2286_v2  ;;  %912 = vmatprep.subr.mxu1 %v2286_v2  ;;  %v622_v13 = vld [vmem:[%s3639_s2 + $0x370] sm:$0xff]  ;;  %v243_v14 = vld [vmem:[%s2608_s7 + $0x98] sm:$0xff]  ;;  %v245_v15 = vld [vmem:[%s2608_s7 + $0xa8] sm:$0xff] }
  0x2d   : > { %688 = vmatpush1.msra.mxu0 %v515_v25  ;;  %913 = vmatpush1.msra.mxu1 %v547_v26  ;;  %v242_v16 = vld [vmem:[%s2608_s7 + $0x90] sm:$0xff]  ;;  %v244_v17 = vld [vmem:[%s2608_s7 + $0xa0] sm:$0xff]  ;;  %v589_v18 = vld [vmem:[%s3639_s2 + $0x268] sm:$0xff] }
  0x2e   : > { %689 = vmatprep.subr.mxu0 %v2286_v2  ;;  %914 = vmatprep.subr.mxu1 %v2286_v2  ;;  %v621_v19 = vld [vmem:[%s3639_s2 + $0x368] sm:$0xff]  ;;  %v252_v20 = vld [vmem:[%s2608_s7 + $0xe0] sm:$0xff]  ;;  %v254_v21 = vld [vmem:[%s2608_s7 + $0xf0] sm:$0xff] }
  0x2f   : > { %690 = vmatpush1.msra.mxu0 %v514_v27  ;;  %915 = vmatpush1.msra.mxu1 %v546_v28  ;;  %v251_v22 = vld [vmem:[%s2608_s7 + $0xd8] sm:$0xff]  ;;  %v253_v23 = vld [vmem:[%s2608_s7 + $0xe8] sm:$0xff]  ;;  %v588_v24 = vld [vmem:[%s3639_s2 + $0x260] sm:$0xff] }
  0x30   : > { %691 = vmatprep.subr.mxu0 %v2286_v2  ;;  %916 = vmatprep.subr.mxu1 %v2286_v2  ;;  %v620_v25 = vld [vmem:[%s3639_s2 + $0x360] sm:$0xff]  ;;  %v261_v26 = vld [vmem:[%s2608_s7 + $0x128] sm:$0xff]  ;;  %v263_v27 = vld [vmem:[%s2608_s7 + $0x138] sm:$0xff] }
  0x31   : > { %692 = vmatpush1.msra.mxu0 %v513_v29  ;;  %917 = vmatpush1.msra.mxu1 %v545_v30  ;;  %v260_v28 = vld [vmem:[%s2608_s7 + $0x120] sm:$0xff]  ;;  %v262_v29 = vld [vmem:[%s2608_s7 + $0x130] sm:$0xff]  ;;  %v587_v30 = vld [vmem:[%s3639_s2 + $0x258] sm:$0xff] }
  0x32   : > { %693 = vmatprep.subr.mxu0 %v2286_v2  ;;  %918 = vmatprep.subr.mxu1 %v2286_v2 }
  0x33   : > { %694 = vmatpush1.msra.mxu0 %v512_v31  ;;  %919 = vmatpush1.msra.mxu1 %v544_v32  ;;  %v619_v31 = vld [vmem:[%s3639_s2 + $0x358] sm:$0xff]  ;;  %v270_v32 = vld [vmem:[%s2608_s7 + $0x170] sm:$0xff] }
  0x34   : > { %695 = vmatprep.subr.mxu0 %v2286_v2  ;;  %920 = vmatprep.subr.mxu1 %v2286_v2 }
  0x35   : > { %696 = vmatpush2.msra.mxu0 %v543_v33  ;;  %921 = vmatpush2.msra.mxu1 %v575_v34  ;;  %v272_v33 = vld [vmem:[%s2608_s7 + $0x180] sm:$0xff]  ;;  %v269_v34 = vld [vmem:[%s2608_s7 + $0x168] sm:$0xff] }
  0x36   : > { %697 = vmatprep.subr.mxu0 %v2286_v2  ;;  %922 = vmatprep.subr.mxu1 %v2286_v2 }
  0x37   : > { %698 = vmatpush2.msra.mxu0 %v542_v35  ;;  %923 = vmatpush2.msra.mxu1 %v574_v36  ;;  %v271_v35 = vld [vmem:[%s2608_s7 + $0x178] sm:$0xff]  ;;  %v586_v36 = vld [vmem:[%s3639_s2 + $0x250] sm:$0xff] }
  0x38   : > { %699 = vmatprep.subr.mxu0 %v2286_v2  ;;  %924 = vmatprep.subr.mxu1 %v2286_v2 }
  0x39   : > { %700 = vmatpush2.msra.mxu0 %v541_v37  ;;  %925 = vmatpush2.msra.mxu1 %v573_v38  ;;  %v618_v37 = vld [vmem:[%s3639_s2 + $0x350] sm:$0xff]  ;;  %v279_v38 = vld [vmem:[%s2608_s7 + $0x1b8] sm:$0xff] }
  0x3a   : > { %701 = vmatprep.subr.mxu0 %v2286_v2  ;;  %926 = vmatprep.subr.mxu1 %v2286_v2 }
  0x3b   : > { %702 = vmatpush2.msra.mxu0 %v540_v39  ;;  %927 = vmatpush2.msra.mxu1 %v572_v40  ;;  %v281_v39 = vld [vmem:[%s2608_s7 + $0x1c8] sm:$0xff]  ;;  %v278_v40 = vld [vmem:[%s2608_s7 + $0x1b0] sm:$0xff] }
  0x3c   : > { %703 = vmatprep.subr.mxu0 %v2286_v2  ;;  %928 = vmatprep.subr.mxu1 %v2286_v2 }
  0x3d   : > { %704 = vmatpush2.msra.mxu0 %v539_v41  ;;  %929 = vmatpush2.msra.mxu1 %v571_v42  ;;  %v280_v41 = vld [vmem:[%s2608_s7 + $0x1c0] sm:$0xff]  ;;  %v585_v42 = vld [vmem:[%s3639_s2 + $0x248] sm:$0xff] }
  0x3e   : > { %705 = vmatprep.subr.mxu0 %v2286_v2  ;;  %930 = vmatprep.subr.mxu1 %v2286_v2 }
  0x3f   : > { %706 = vmatpush2.msra.mxu0 %v538_v43  ;;  %931 = vmatpush2.msra.mxu1 %v570_v44  ;;  %v617_v43 = vld [vmem:[%s3639_s2 + $0x348] sm:$0xff]  ;;  %v288_v44 = vld [vmem:[%s2608_s7 + $0x200] sm:$0xff] }
  0x40   : > { %707 = vmatprep.subr.mxu0 %v2286_v2  ;;  %932 = vmatprep.subr.mxu1 %v2286_v2 }
  0x41   : > { %708 = vmatpush2.msra.mxu0 %v537_v45  ;;  %933 = vmatpush2.msra.mxu1 %v569_v46  ;;  %v290_v45 = vld [vmem:[%s2608_s7 + $0x210] sm:$0xff]  ;;  %v287_v46 = vld [vmem:[%s2608_s7 + $0x1f8] sm:$0xff] }
  0x42   : > { %709 = vmatprep.subr.mxu0 %v2286_v2  ;;  %934 = vmatprep.subr.mxu1 %v2286_v2 }
  0x43   : > { %710 = vmatpush2.msra.mxu0 %v536_v47  ;;  %935 = vmatpush2.msra.mxu1 %v568_v48  ;;  %v289_v47 = vld [vmem:[%s2608_s7 + $0x208] sm:$0xff]  ;;  %v584_v48 = vld [vmem:[%s3639_s2 + $0x240] sm:$0xff] }
  0x44   : > { %711 = vmatprep.subr.mxu0 %v2286_v2  ;;  %936 = vmatprep.subr.mxu1 %v2286_v2 }
  0x45   : > { %712 = vmatpush2.msra.mxu0 %v535_v49  ;;  %937 = vmatpush2.msra.mxu1 %v567_v50  ;;  %v616_v49 = vld [vmem:[%s3639_s2 + $0x340] sm:$0xff]  ;;  %v297_v50 = vld [vmem:[%s2608_s7 + $0x248] sm:$0xff] }
  0x46   : > { %713 = vmatprep.subr.mxu0 %v2286_v2  ;;  %938 = vmatprep.subr.mxu1 %v2286_v2 }
  0x47   : > { %714 = vmatpush2.msra.mxu0 %v534_v51  ;;  %939 = vmatpush2.msra.mxu1 %v566_v52  ;;  %v299_v51 = vld [vmem:[%s2608_s7 + $0x258] sm:$0xff]  ;;  %v296_v52 = vld [vmem:[%s2608_s7 + $0x240] sm:$0xff] }
  0x48   : > { %715 = vmatprep.subr.mxu0 %v2286_v2  ;;  %940 = vmatprep.subr.mxu1 %v2286_v2 }
  0x49   : > { %716 = vmatpush2.msra.mxu0 %v533_v53  ;;  %941 = vmatpush2.msra.mxu1 %v565_v54  ;;  %v298_v53 = vld [vmem:[%s2608_s7 + $0x250] sm:$0xff]  ;;  %v583_v54 = vld [vmem:[%s3639_s2 + $0x238] sm:$0xff] }
  0x4a   : > { %717 = vmatprep.subr.mxu0 %v2286_v2  ;;  %942 = vmatprep.subr.mxu1 %v2286_v2 }
  0x4b   : > { %718 = vmatpush2.msra.mxu0 %v532_v55  ;;  %943 = vmatpush2.msra.mxu1 %v564_v56  ;;  %v615_v55 = vld [vmem:[%s3639_s2 + $0x338] sm:$0xff]  ;;  %v306_v56 = vld [vmem:[%s2608_s7 + $0x290] sm:$0xff] }
  0x4c   : > { %719 = vmatprep.subr.mxu0 %v2286_v2  ;;  %944 = vmatprep.subr.mxu1 %v2286_v2 }
  0x4d   : > { %720 = vmatpush2.msra.mxu0 %v531_v57  ;;  %945 = vmatpush2.msra.mxu1 %v563_v58  ;;  %v308_v57 = vld [vmem:[%s2608_s7 + $0x2a0] sm:$0xff]  ;;  %v305_v58 = vld [vmem:[%s2608_s7 + $0x288] sm:$0xff] }
  0x4e   : > { %721 = vmatprep.subr.mxu0 %v2286_v2  ;;  %946 = vmatprep.subr.mxu1 %v2286_v2 }
  0x4f   : > { %722 = vmatpush2.msra.mxu0 %v530_v59  ;;  %947 = vmatpush2.msra.mxu1 %v562_v60  ;;  %v307_v59 = vld [vmem:[%s2608_s7 + $0x298] sm:$0xff]  ;;  %v582_v60 = vld [vmem:[%s3639_s2 + $0x230] sm:$0xff] }
  0x50   : > { %723 = vmatprep.subr.mxu0 %v2286_v2  ;;  %948 = vmatprep.subr.mxu1 %v2286_v2 }
  0x51   : > { %724 = vmatpush2.msra.mxu0 %v529_v61  ;;  %949 = vmatpush2.msra.mxu1 %v561_v62  ;;  %v614_v61 = vld [vmem:[%s3639_s2 + $0x330] sm:$0xff]  ;;  %v315_v62 = vld [vmem:[%s2608_s7 + $0x2d8] sm:$0xff] }
  0x52   : > { %725 = vmatprep.subr.mxu0 %v2286_v2  ;;  %950 = vmatprep.subr.mxu1 %v2286_v2 }
  0x53   : > { %726 = vmatpush2.msra.mxu0 %v528_v63  ;;  %727 = vmatprep.mubr.f32.mxu0 %v225_v0  ;;  %v317_v63 = vld [vmem:[%s2608_s7 + $0x2e8] sm:$0xff]  ;;  %v314_v0 = vld [vmem:[%s2608_s7 + $0x2d0] sm:$0xff] }
  0x54   : > { %951 = vmatpush2.msra.mxu1 %v560_v1  ;;  %952 = vmatprep.mubr.f32.mxu1 %v227_v3  ;;  %v316_v1 = vld [vmem:[%s2608_s7 + $0x2e0] sm:$0xff]  ;;  %v581_v3 = vld [vmem:[%s3639_s2 + $0x228] sm:$0xff] }
  0x55   : > { %728 = vmatmul.mubr.f32.vlgmr.msra.gmra.mxu0 %v224_v4  ;;  %953 = vmatmul.mubr.f32.vlgmr.msra.gmra.mxu1 %v226_v5  ;;  %v613_v4 = vld [vmem:[%s3639_s2 + $0x328] sm:$0xff]  ;;  %v324_v5 = vld [vmem:[%s2608_s7 + $0x320] sm:$0xff] }
  0x56   : > { %1113 = vmatprep.subr.mxu0 %v2286_v2  ;;  %1338 = vmatprep.subr.mxu1 %v2286_v2 }
  0x57   : > { %1114 = vmatpush1.msra.mxu0 %v591_v6  ;;  %1339 = vmatpush1.msra.mxu1 %v623_v7  ;;  %v326_v6 = vld [vmem:[%s2608_s7 + $0x330] sm:$0xff]  ;;  %v323_v7 = vld [vmem:[%s2608_s7 + $0x318] sm:$0xff] }
  0x58   : > { %732 = vmatprep.mubr.f32.mxu0 %v234_v8  ;;  %957 = vmatprep.mubr.f32.mxu1 %v236_v9  ;;  %v325_v8 = vld [vmem:[%s2608_s7 + $0x328] sm:$0xff]  ;;  %v580_v9 = vld [vmem:[%s3639_s2 + $0x220] sm:$0xff] }
  0x59   : > { %733 = vmatmul.mubr.f32.gmra.mxu0 %v233_v10  ;;  %958 = vmatmul.mubr.f32.gmra.mxu1 %v235_v11  ;;  %v612_v10 = vld [vmem:[%s3639_s2 + $0x320] sm:$0xff]  ;;  %v333_v11 = vld [vmem:[%s2608_s7 + $0x368] sm:$0xff] }
  0x5a   : > { %1115 = vmatprep.subr.mxu0 %v2286_v2  ;;  %1340 = vmatprep.subr.mxu1 %v2286_v2 }
  0x5b   : > { %1116 = vmatpush1.msra.mxu0 %v590_v12  ;;  %1341 = vmatpush1.msra.mxu1 %v622_v13  ;;  %v335_v12 = vld [vmem:[%s2608_s7 + $0x378] sm:$0xff]  ;;  %v332_v13 = vld [vmem:[%s2608_s7 + $0x360] sm:$0xff] }
  0x5c   : > { %737 = vmatprep.mubr.f32.mxu0 %v243_v14  ;;  %962 = vmatprep.mubr.f32.mxu1 %v245_v15  ;;  %v334_v14 = vld [vmem:[%s2608_s7 + $0x370] sm:$0xff]  ;;  %v579_v15 = vld [vmem:[%s3639_s2 + $0x218] sm:$0xff] }
  0x5d   : > { %738 = vmatmul.mubr.f32.gmra.mxu0 %v242_v16  ;;  %963 = vmatmul.mubr.f32.gmra.mxu1 %v244_v17  ;;  %v611_v16 = vld [vmem:[%s3639_s2 + $0x318] sm:$0xff]  ;;  %v342_v17 = vld [vmem:[%s2608_s7 + $0x3b0] sm:$0xff] }
  0x5e   : > { %1117 = vmatprep.subr.mxu0 %v2286_v2  ;;  %1342 = vmatprep.subr.mxu1 %v2286_v2 }
  0x5f   : > { %1118 = vmatpush1.msra.mxu0 %v589_v18  ;;  %1343 = vmatpush1.msra.mxu1 %v621_v19  ;;  %v344_v18 = vld [vmem:[%s2608_s7 + $0x3c0] sm:$0xff]  ;;  %v341_v19 = vld [vmem:[%s2608_s7 + $0x3a8] sm:$0xff] }
  0x60   : > { %742 = vmatprep.mubr.f32.mxu0 %v252_v20  ;;  %967 = vmatprep.mubr.f32.mxu1 %v254_v21  ;;  %v343_v20 = vld [vmem:[%s2608_s7 + $0x3b8] sm:$0xff]  ;;  %v578_v21 = vld [vmem:[%s3639_s2 + $0x210] sm:$0xff] }
  0x61   : > { %743 = vmatmul.mubr.f32.gmra.mxu0 %v251_v22  ;;  %968 = vmatmul.mubr.f32.gmra.mxu1 %v253_v23  ;;  %v610_v22 = vld [vmem:[%s3639_s2 + $0x310] sm:$0xff]  ;;  %v351_v23 = vld [vmem:[%s2608_s7 + $0x3f8] sm:$0xff] }
  0x62   : > { %1119 = vmatprep.subr.mxu0 %v2286_v2  ;;  %1344 = vmatprep.subr.mxu1 %v2286_v2 }
  0x63   : > { %1120 = vmatpush1.msra.mxu0 %v588_v24  ;;  %1345 = vmatpush1.msra.mxu1 %v620_v25  ;;  %v353_v24 = vld [vmem:[%s2608_s7 + $0x408] sm:$0xff]  ;;  %v350_v25 = vld [vmem:[%s2608_s7 + $0x3f0] sm:$0xff] }
  0x64   : > { %747 = vmatprep.mubr.f32.mxu0 %v261_v26  ;;  %972 = vmatprep.mubr.f32.mxu1 %v263_v27  ;;  %v352_v26 = vld [vmem:[%s2608_s7 + $0x400] sm:$0xff]  ;;  %v577_v27 = vld [vmem:[%s3639_s2 + $0x208] sm:$0xff] }
  0x65   : > { %748 = vmatmul.mubr.f32.gmra.mxu0 %v260_v28  ;;  %973 = vmatmul.mubr.f32.gmra.mxu1 %v262_v29  ;;  %v609_v28 = vld [vmem:[%s3639_s2 + $0x308] sm:$0xff]  ;;  %v360_v29 = vld [vmem:[%s2608_s7 + $0x440] sm:$0xff] }
  0x66   : > { %1121 = vmatprep.subr.mxu0 %v2286_v2  ;;  %1346 = vmatprep.subr.mxu1 %v2286_v2 }
  0x67   : > { %1122 = vmatpush1.msra.mxu0 %v587_v30  ;;  %1347 = vmatpush1.msra.mxu1 %v619_v31  ;;  %v362_v30 = vld [vmem:[%s2608_s7 + $0x450] sm:$0xff]  ;;  %v359_v31 = vld [vmem:[%s2608_s7 + $0x438] sm:$0xff] }
  0x68   : > { %752 = vmatprep.mubr.f32.mxu0 %v270_v32  ;;  %977 = vmatprep.mubr.f32.mxu1 %v272_v33  ;;  %v361_v32 = vld [vmem:[%s2608_s7 + $0x448] sm:$0xff]  ;;  %v576_v33 = vld [vmem:[%s3639_s2 + $0x200] sm:$0xff] }
  0x69   : > { %753 = vmatmul.mubr.f32.gmra.mxu0 %v269_v34  ;;  %978 = vmatmul.mubr.f32.gmra.mxu1 %v271_v35  ;;  %v608_v34 = vld [vmem:[%s3639_s2 + $0x300] sm:$0xff]  ;;  %v369_v35 = vld [vmem:[%s2608_s7 + $0x488] sm:$0xff] }
  0x6a   : > { %1123 = vmatprep.subr.mxu0 %v2286_v2  ;;  %1348 = vmatprep.subr.mxu1 %v2286_v2 }
  0x6b   : > { %1124 = vmatpush1.msra.mxu0 %v586_v36  ;;  %1349 = vmatpush1.msra.mxu1 %v618_v37  ;;  %v371_v36 = vld [vmem:[%s2608_s7 + $0x498] sm:$0xff]  ;;  %v368_v37 = vld [vmem:[%s2608_s7 + $0x480] sm:$0xff] }
  0x6c   : > { %757 = vmatprep.mubr.f32.mxu0 %v279_v38  ;;  %982 = vmatprep.mubr.f32.mxu1 %v281_v39  ;;  %v370_v38 = vld [vmem:[%s2608_s7 + $0x490] sm:$0xff]  ;;  %v607_v39 = vld [vmem:[%s3639_s2 + $0x2f8] sm:$0xff] }
  0x6d   : > { %758 = vmatmul.mubr.f32.gmra.mxu0 %v278_v40  ;;  %983 = vmatmul.mubr.f32.gmra.mxu1 %v280_v41  ;;  %v639_v40 = vld [vmem:[%s3639_s2 + $0x3f8] sm:$0xff]  ;;  %v378_v41 = vld [vmem:[%s2608_s7 + $0x4d0] sm:$0xff] }
  0x6e   : > { %1125 = vmatprep.subr.mxu0 %v2286_v2  ;;  %1350 = vmatprep.subr.mxu1 %v2286_v2 }
  0x6f   : > { %1126 = vmatpush1.msra.mxu0 %v585_v42  ;;  %1351 = vmatpush1.msra.mxu1 %v617_v43  ;;  %v380_v42 = vld [vmem:[%s2608_s7 + $0x4e0] sm:$0xff]  ;;  %v377_v43 = vld [vmem:[%s2608_s7 + $0x4c8] sm:$0xff] }
  0x70   : > { %762 = vmatprep.mubr.f32.mxu0 %v288_v44  ;;  %987 = vmatprep.mubr.f32.mxu1 %v290_v45  ;;  %v379_v44 = vld [vmem:[%s2608_s7 + $0x4d8] sm:$0xff]  ;;  %v606_v45 = vld [vmem:[%s3639_s2 + $0x2f0] sm:$0xff] }
  0x71   : > { %763 = vmatmul.mubr.f32.gmra.mxu0 %v287_v46  ;;  %988 = vmatmul.mubr.f32.gmra.mxu1 %v289_v47  ;;  %v638_v46 = vld [vmem:[%s3639_s2 + $0x3f0] sm:$0xff]  ;;  %v387_v47 = vld [vmem:[%s2608_s7 + $0x518] sm:$0xff] }
  0x72   : > { %1127 = vmatprep.subr.mxu0 %v2286_v2  ;;  %1352 = vmatprep.subr.mxu1 %v2286_v2 }
  0x73   : > { %1128 = vmatpush1.msra.mxu0 %v584_v48  ;;  %1353 = vmatpush1.msra.mxu1 %v616_v49  ;;  %v389_v48 = vld [vmem:[%s2608_s7 + $0x528] sm:$0xff]  ;;  %v386_v49 = vld [vmem:[%s2608_s7 + $0x510] sm:$0xff] }
  0x74   : > { %767 = vmatprep.mubr.f32.mxu0 %v297_v50  ;;  %992 = vmatprep.mubr.f32.mxu1 %v299_v51  ;;  %v388_v50 = vld [vmem:[%s2608_s7 + $0x520] sm:$0xff]  ;;  %v605_v51 = vld [vmem:[%s3639_s2 + $0x2e8] sm:$0xff] }
  0x75   : > { %768 = vmatmul.mubr.f32.gmra.mxu0 %v296_v52  ;;  %993 = vmatmul.mubr.f32.gmra.mxu1 %v298_v53  ;;  %v637_v52 = vld [vmem:[%s3639_s2 + $0x3e8] sm:$0xff]  ;;  %v396_v53 = vld [vmem:[%s2608_s7 + $0x560] sm:$0xff] }
  0x76   : > { %1129 = vmatprep.subr.mxu0 %v2286_v2  ;;  %1354 = vmatprep.subr.mxu1 %v2286_v2 }
  0x77   : > { %1130 = vmatpush1.msra.mxu0 %v583_v54  ;;  %1355 = vmatpush1.msra.mxu1 %v615_v55  ;;  %v398_v54 = vld [vmem:[%s2608_s7 + $0x570] sm:$0xff]  ;;  %v395_v55 = vld [vmem:[%s2608_s7 + $0x558] sm:$0xff] }
  0x78   : > { %772 = vmatprep.mubr.f32.mxu0 %v306_v56  ;;  %997 = vmatprep.mubr.f32.mxu1 %v308_v57  ;;  %v397_v56 = vld [vmem:[%s2608_s7 + $0x568] sm:$0xff]  ;;  %v604_v57 = vld [vmem:[%s3639_s2 + $0x2e0] sm:$0xff] }
  0x79   : > { %773 = vmatmul.mubr.f32.gmra.mxu0 %v305_v58  ;;  %998 = vmatmul.mubr.f32.gmra.mxu1 %v307_v59  ;;  %v636_v58 = vld [vmem:[%s3639_s2 + $0x3e0] sm:$0xff]  ;;  %v405_v59 = vld [vmem:[%s2608_s7 + $0x5a8] sm:$0xff] }
  0x7a   : > { %1131 = vmatprep.subr.mxu0 %v2286_v2  ;;  %1356 = vmatprep.subr.mxu1 %v2286_v2 }
  0x7b   : > { %1132 = vmatpush1.msra.mxu0 %v582_v60  ;;  %1357 = vmatpush1.msra.mxu1 %v614_v61  ;;  %v407_v60 = vld [vmem:[%s2608_s7 + $0x5b8] sm:$0xff]  ;;  %v404_v61 = vld [vmem:[%s2608_s7 + $0x5a0] sm:$0xff] }
  0x7c   : > { %777 = vmatprep.mubr.f32.mxu0 %v315_v62  ;;  %1002 = vmatprep.mubr.f32.mxu1 %v317_v63  ;;  %v406_v62 = vld [vmem:[%s2608_s7 + $0x5b0] sm:$0xff]  ;;  %v603_v63 = vld [vmem:[%s3639_s2 + $0x2d8] sm:$0xff] }
  0x7d   : > { %778 = vmatmul.mubr.f32.gmra.mxu0 %v314_v0  ;;  %1003 = vmatmul.mubr.f32.gmra.mxu1 %v316_v1  ;;  %v635_v0 = vld [vmem:[%s3639_s2 + $0x3d8] sm:$0xff]  ;;  %v414_v1 = vld [vmem:[%s2608_s7 + $0x5f0] sm:$0xff] }
  0x7e   : > { %1133 = vmatprep.subr.mxu0 %v2286_v2  ;;  %1358 = vmatprep.subr.mxu1 %v2286_v2 }
  0x7f   : > { %1134 = vmatpush1.msra.mxu0 %v581_v3  ;;  %1359 = vmatpush1.msra.mxu1 %v613_v4  ;;  %v416_v3 = vld [vmem:[%s2608_s7 + $0x600] sm:$0xff]  ;;  %v413_v4 = vld [vmem:[%s2608_s7 + $0x5e8] sm:$0xff] }
  0x80   : > { %782 = vmatprep.mubr.f32.mxu0 %v324_v5  ;;  %1007 = vmatprep.mubr.f32.mxu1 %v326_v6  ;;  %v415_v5 = vld [vmem:[%s2608_s7 + $0x5f8] sm:$0xff]  ;;  %v602_v6 = vld [vmem:[%s3639_s2 + $0x2d0] sm:$0xff] }
  0x81   : > { %783 = vmatmul.mubr.f32.gmra.mxu0 %v323_v7  ;;  %1008 = vmatmul.mubr.f32.gmra.mxu1 %v325_v8  ;;  %v634_v7 = vld [vmem:[%s3639_s2 + $0x3d0] sm:$0xff]  ;;  %v423_v8 = vld [vmem:[%s2608_s7 + $0x638] sm:$0xff] }
  0x82   : > { %1135 = vmatprep.subr.mxu0 %v2286_v2  ;;  %1360 = vmatprep.subr.mxu1 %v2286_v2 }
  0x83   : > { %1136 = vmatpush1.msra.mxu0 %v580_v9  ;;  %1361 = vmatpush1.msra.mxu1 %v612_v10  ;;  %v425_v9 = vld [vmem:[%s2608_s7 + $0x648] sm:$0xff]  ;;  %v422_v10 = vld [vmem:[%s2608_s7 + $0x630] sm:$0xff] }
  0x84   : > { %787 = vmatprep.mubr.f32.mxu0 %v333_v11  ;;  %1012 = vmatprep.mubr.f32.mxu1 %v335_v12  ;;  %v424_v11 = vld [vmem:[%s2608_s7 + $0x640] sm:$0xff]  ;;  %v601_v12 = vld [vmem:[%s3639_s2 + $0x2c8] sm:$0xff] }
  0x85   : > { %788 = vmatmul.mubr.f32.gmra.mxu0 %v332_v13  ;;  %1013 = vmatmul.mubr.f32.gmra.mxu1 %v334_v14  ;;  %v633_v13 = vld [vmem:[%s3639_s2 + $0x3c8] sm:$0xff]  ;;  %v432_v14 = vld [vmem:[%s2608_s7 + $0x680] sm:$0xff] }
  0x86   : > { %1137 = vmatprep.subr.mxu0 %v2286_v2  ;;  %1362 = vmatprep.subr.mxu1 %v2286_v2 }
  0x87   : > { %1138 = vmatpush1.msra.mxu0 %v579_v15  ;;  %1363 = vmatpush1.msra.mxu1 %v611_v16  ;;  %v434_v15 = vld [vmem:[%s2608_s7 + $0x690] sm:$0xff]  ;;  %v431_v16 = vld [vmem:[%s2608_s7 + $0x678] sm:$0xff] }
  0x88   : > { %792 = vmatprep.mubr.f32.mxu0 %v342_v17  ;;  %1017 = vmatprep.mubr.f32.mxu1 %v344_v18  ;;  %v433_v17 = vld [vmem:[%s2608_s7 + $0x688] sm:$0xff]  ;;  %v600_v18 = vld [vmem:[%s3639_s2 + $0x2c0] sm:$0xff] }
  0x89   : > { %793 = vmatmul.mubr.f32.gmra.mxu0 %v341_v19  ;;  %1018 = vmatmul.mubr.f32.gmra.mxu1 %v343_v20  ;;  %v632_v19 = vld [vmem:[%s3639_s2 + $0x3c0] sm:$0xff]  ;;  %v441_v20 = vld [vmem:[%s2608_s7 + $0x6c8] sm:$0xff] }
  0x8a   : > { %1139 = vmatprep.subr.mxu0 %v2286_v2  ;;  %1364 = vmatprep.subr.mxu1 %v2286_v2 }
  0x8b   : > { %1140 = vmatpush1.msra.mxu0 %v578_v21  ;;  %1365 = vmatpush1.msra.mxu1 %v610_v22  ;;  %v443_v21 = vld [vmem:[%s2608_s7 + $0x6d8] sm:$0xff]  ;;  %v440_v22 = vld [vmem:[%s2608_s7 + $0x6c0] sm:$0xff] }
  0x8c   : > { %797 = vmatprep.mubr.f32.mxu0 %v351_v23  ;;  %1022 = vmatprep.mubr.f32.mxu1 %v353_v24  ;;  %v442_v23 = vld [vmem:[%s2608_s7 + $0x6d0] sm:$0xff]  ;;  %v599_v24 = vld [vmem:[%s3639_s2 + $0x2b8] sm:$0xff] }
  0x8d   : > { %798 = vmatmul.mubr.f32.gmra.mxu0 %v350_v25  ;;  %1023 = vmatmul.mubr.f32.gmra.mxu1 %v352_v26  ;;  %v631_v25 = vld [vmem:[%s3639_s2 + $0x3b8] sm:$0xff]  ;;  %v450_v26 = vld [vmem:[%s2608_s7 + $0x710] sm:$0xff] }
  0x8e   : > { %1141 = vmatprep.subr.mxu0 %v2286_v2  ;;  %1366 = vmatprep.subr.mxu1 %v2286_v2 }
  0x8f   : > { %1142 = vmatpush1.msra.mxu0 %v577_v27  ;;  %1367 = vmatpush1.msra.mxu1 %v609_v28  ;;  %v452_v27 = vld [vmem:[%s2608_s7 + $0x720] sm:$0xff]  ;;  %v449_v28 = vld [vmem:[%s2608_s7 + $0x708] sm:$0xff] }
  0x90   : > { %802 = vmatprep.mubr.f32.mxu0 %v360_v29  ;;  %1027 = vmatprep.mubr.f32.mxu1 %v362_v30  ;;  %v451_v29 = vld [vmem:[%s2608_s7 + $0x718] sm:$0xff]  ;;  %v598_v30 = vld [vmem:[%s3639_s2 + $0x2b0] sm:$0xff] }
  0x91   : > { %803 = vmatmul.mubr.f32.gmra.mxu0 %v359_v31  ;;  %1028 = vmatmul.mubr.f32.gmra.mxu1 %v361_v32  ;;  %v630_v31 = vld [vmem:[%s3639_s2 + $0x3b0] sm:$0xff]  ;;  %v459_v32 = vld [vmem:[%s2608_s7 + $0x758] sm:$0xff] }
  0x92   : > { %1143 = vmatprep.subr.mxu0 %v2286_v2  ;;  %1368 = vmatprep.subr.mxu1 %v2286_v2 }
  0x93   : > { %1144 = vmatpush1.msra.mxu0 %v576_v33  ;;  %1369 = vmatpush1.msra.mxu1 %v608_v34  ;;  %v461_v33 = vld [vmem:[%s2608_s7 + $0x768] sm:$0xff]  ;;  %v458_v34 = vld [vmem:[%s2608_s7 + $0x750] sm:$0xff] }
  0x94   : > { %807 = vmatprep.mubr.f32.mxu0 %v369_v35  ;;  %1032 = vmatprep.mubr.f32.mxu1 %v371_v36  ;;  %v460_v35 = vld [vmem:[%s2608_s7 + $0x760] sm:$0xff]  ;;  %v597_v36 = vld [vmem:[%s3639_s2 + $0x2a8] sm:$0xff] }
  0x95   : > { %808 = vmatmul.mubr.f32.gmra.mxu0 %v368_v37  ;;  %1033 = vmatmul.mubr.f32.gmra.mxu1 %v370_v38  ;;  %v629_v37 = vld [vmem:[%s3639_s2 + $0x3a8] sm:$0xff]  ;;  %v468_v38 = vld [vmem:[%s2608_s7 + $0x7a0] sm:$0xff] }
  0x96   : > { %1145 = vmatprep.subr.mxu0 %v2286_v2  ;;  %1370 = vmatprep.subr.mxu1 %v2286_v2 }
  0x97   : > { %1146 = vmatpush2.msra.mxu0 %v607_v39  ;;  %1371 = vmatpush2.msra.mxu1 %v639_v40  ;;  %v470_v39 = vld [vmem:[%s2608_s7 + $0x7b0] sm:$0xff]  ;;  %v467_v40 = vld [vmem:[%s2608_s7 + $0x798] sm:$0xff] }
  0x98   : > { %812 = vmatprep.mubr.f32.mxu0 %v378_v41  ;;  %1037 = vmatprep.mubr.f32.mxu1 %v380_v42  ;;  %v469_v41 = vld [vmem:[%s2608_s7 + $0x7a8] sm:$0xff]  ;;  %v596_v42 = vld [vmem:[%s3639_s2 + $0x2a0] sm:$0xff] }
  0x99   : > { %813 = vmatmul.mubr.f32.gmra.mxu0 %v377_v43  ;;  %1038 = vmatmul.mubr.f32.gmra.mxu1 %v379_v44  ;;  %v628_v43 = vld [vmem:[%s3639_s2 + $0x3a0] sm:$0xff]  ;;  %v477_v44 = vld [vmem:[%s2608_s7 + $0x7e8] sm:$0xff] }
  0x9a   : > { %1147 = vmatprep.subr.mxu0 %v2286_v2  ;;  %1372 = vmatprep.subr.mxu1 %v2286_v2 }
  0x9b   : > { %1148 = vmatpush2.msra.mxu0 %v606_v45  ;;  %1373 = vmatpush2.msra.mxu1 %v638_v46  ;;  %v479_v45 = vld [vmem:[%s2608_s7 + $0x7f8] sm:$0xff]  ;;  %v476_v46 = vld [vmem:[%s2608_s7 + $0x7e0] sm:$0xff] }
  0x9c   : > { %817 = vmatprep.mubr.f32.mxu0 %v387_v47  ;;  %1042 = vmatprep.mubr.f32.mxu1 %v389_v48  ;;  %v478_v47 = vld [vmem:[%s2608_s7 + $0x7f0] sm:$0xff]  ;;  %v595_v48 = vld [vmem:[%s3639_s2 + $0x298] sm:$0xff] }
  0x9d   : > { %818 = vmatmul.mubr.f32.gmra.mxu0 %v386_v49  ;;  %1043 = vmatmul.mubr.f32.gmra.mxu1 %v388_v50  ;;  %v627_v49 = vld [vmem:[%s3639_s2 + $0x398] sm:$0xff]  ;;  %v486_v50 = vld [vmem:[%s2608_s7 + $0x830] sm:$0xff] }
  0x9e   : > { %1149 = vmatprep.subr.mxu0 %v2286_v2  ;;  %1374 = vmatprep.subr.mxu1 %v2286_v2 }
  0x9f   : > { %1150 = vmatpush2.msra.mxu0 %v605_v51  ;;  %1375 = vmatpush2.msra.mxu1 %v637_v52  ;;  %v488_v51 = vld [vmem:[%s2608_s7 + $0x840] sm:$0xff]  ;;  %v485_v52 = vld [vmem:[%s2608_s7 + $0x828] sm:$0xff] }
  0xa0   : > { %822 = vmatprep.mubr.f32.mxu0 %v396_v53  ;;  %1047 = vmatprep.mubr.f32.mxu1 %v398_v54  ;;  %v487_v53 = vld [vmem:[%s2608_s7 + $0x838] sm:$0xff]  ;;  %v594_v54 = vld [vmem:[%s3639_s2 + $0x290] sm:$0xff] }
  0xa1   : > { %823 = vmatmul.mubr.f32.gmra.mxu0 %v395_v55  ;;  %1048 = vmatmul.mubr.f32.gmra.mxu1 %v397_v56  ;;  %v626_v55 = vld [vmem:[%s3639_s2 + $0x390] sm:$0xff]  ;;  %v495_v56 = vld [vmem:[%s2608_s7 + $0x878] sm:$0xff] }
  0xa2   : > { %1151 = vmatprep.subr.mxu0 %v2286_v2  ;;  %1376 = vmatprep.subr.mxu1 %v2286_v2 }
  0xa3   : > { %1152 = vmatpush2.msra.mxu0 %v604_v57  ;;  %1377 = vmatpush2.msra.mxu1 %v636_v58  ;;  %v497_v57 = vld [vmem:[%s2608_s7 + $0x888] sm:$0xff]  ;;  %v494_v58 = vld [vmem:[%s2608_s7 + $0x870] sm:$0xff] }
  0xa4   : > { %827 = vmatprep.mubr.f32.mxu0 %v405_v59  ;;  %1052 = vmatprep.mubr.f32.mxu1 %v407_v60  ;;  %v496_v59 = vld [vmem:[%s2608_s7 + $0x880] sm:$0xff]  ;;  %v593_v60 = vld [vmem:[%s3639_s2 + $0x288] sm:$0xff] }
  0xa5   : > { %828 = vmatmul.mubr.f32.gmra.mxu0 %v404_v61  ;;  %1053 = vmatmul.mubr.f32.gmra.mxu1 %v406_v62  ;;  %v625_v61 = vld [vmem:[%s3639_s2 + $0x388] sm:$0xff]  ;;  %v504_v62 = vld [vmem:[%s2608_s7 + $0x8c0] sm:$0xff] }
  0xa6   : > { %1153 = vmatprep.subr.mxu0 %v2286_v2  ;;  %1378 = vmatprep.subr.mxu1 %v2286_v2 }
  0xa7   : > { %1154 = vmatpush2.msra.mxu0 %v603_v63  ;;  %1379 = vmatpush2.msra.mxu1 %v635_v0  ;;  %v506_v63 = vld [vmem:[%s2608_s7 + $0x8d0] sm:$0xff]  ;;  %v503_v0 = vld [vmem:[%s2608_s7 + $0x8b8] sm:$0xff] }
  0xa8   : > { %832 = vmatprep.mubr.f32.mxu0 %v414_v1  ;;  %1057 = vmatprep.mubr.f32.mxu1 %v416_v3  ;;  %v505_v1 = vld [vmem:[%s2608_s7 + $0x8c8] sm:$0xff]  ;;  %v592_v3 = vld [vmem:[%s3639_s2 + $0x280] sm:$0xff] }
  0xa9   : > { %833 = vmatmul.mubr.f32.gmra.mxu0 %v413_v4  ;;  %1058 = vmatmul.mubr.f32.gmra.mxu1 %v415_v5  ;;  %v624_v4 = vld [vmem:[%s3639_s2 + $0x380] sm:$0xff]  ;;  %v229_v5 = vld [vmem:[%s2608_s7 + $0x28] sm:$0xff] }
  0xaa   : > { %1155 = vmatprep.subr.mxu0 %v2286_v2  ;;  %1380 = vmatprep.subr.mxu1 %v2286_v2 }
  0xab   : > { %1156 = vmatpush2.msra.mxu0 %v602_v6  ;;  %1381 = vmatpush2.msra.mxu1 %v634_v7  ;;  %v231_v6 = vld [vmem:[%s2608_s7 + $0x38] sm:$0xff]  ;;  %v228_v7 = vld [vmem:[%s2608_s7 + $0x20] sm:$0xff] }
  0xac   : > { %837 = vmatprep.mubr.f32.mxu0 %v423_v8  ;;  %1062 = vmatprep.mubr.f32.mxu1 %v425_v9  ;;  %v230_v8 = vld [vmem:[%s2608_s7 + $0x30] sm:$0xff]  ;;  %v655_v9 = vld [vmem:[%s3639_s2 + $0x478] sm:$0xff] }
  0xad   : > { %838 = vmatmul.mubr.f32.gmra.mxu0 %v422_v10  ;;  %1063 = vmatmul.mubr.f32.gmra.mxu1 %v424_v11  ;;  %v238_v10 = vld [vmem:[%s2608_s7 + $0x70] sm:$0xff]  ;;  %v240_v11 = vld [vmem:[%s2608_s7 + $0x80] sm:$0xff] }
  0xae   : > { %1157 = vmatprep.subr.mxu0 %v2286_v2  ;;  %1382 = vmatprep.subr.mxu1 %v2286_v2 }
  0xaf   : > { %1158 = vmatpush2.msra.mxu0 %v601_v12  ;;  %1383 = vmatpush2.msra.mxu1 %v633_v13  ;;  %v239_v12 = vld [vmem:[%s2608_s7 + $0x78] sm:$0xff] }
  0xb0   : > { %842 = vmatprep.mubr.f32.mxu0 %v432_v14  ;;  %1067 = vmatprep.mubr.f32.mxu1 %v434_v15  ;;  %v247_v13 = vld [vmem:[%s2608_s7 + $0xb8] sm:$0xff]  ;;  %v249_v14 = vld [vmem:[%s2608_s7 + $0xc8] sm:$0xff]  ;;  %v654_v15 = vld [vmem:[%s3639_s2 + $0x470] sm:$0xff] }
  0xb1   : > { %843 = vmatmul.mubr.f32.gmra.mxu0 %v431_v16  ;;  %1068 = vmatmul.mubr.f32.gmra.mxu1 %v433_v17  ;;  %v246_v16 = vld [vmem:[%s2608_s7 + $0xb0] sm:$0xff]  ;;  %v248_v17 = vld [vmem:[%s2608_s7 + $0xc0] sm:$0xff] }
  0xb2   : > { %1159 = vmatprep.subr.mxu0 %v2286_v2  ;;  %1384 = vmatprep.subr.mxu1 %v2286_v2 }
  0xb3   : > { %1160 = vmatpush2.msra.mxu0 %v600_v18  ;;  %1385 = vmatpush2.msra.mxu1 %v632_v19  ;;  %v256_v18 = vld [vmem:[%s2608_s7 + $0x100] sm:$0xff]  ;;  %v258_v19 = vld [vmem:[%s2608_s7 + $0x110] sm:$0xff] }
  0xb4   : > { %847 = vmatprep.mubr.f32.mxu0 %v441_v20  ;;  %1072 = vmatprep.mubr.f32.mxu1 %v443_v21  ;;  %v653_v20 = vld [vmem:[%s3639_s2 + $0x468] sm:$0xff]  ;;  %v255_v21 = vld [vmem:[%s2608_s7 + $0xf8] sm:$0xff] }
  0xb5   : > { %848 = vmatmul.mubr.f32.gmra.mxu0 %v440_v22  ;;  %1073 = vmatmul.mubr.f32.gmra.mxu1 %v442_v23  ;;  %v257_v22 = vld [vmem:[%s2608_s7 + $0x108] sm:$0xff] }
  0xb6   : > { %1161 = vmatprep.subr.mxu0 %v2286_v2  ;;  %1386 = vmatprep.subr.mxu1 %v2286_v2  ;;  %v265_v23 = vld [vmem:[%s2608_s7 + $0x148] sm:$0xff] }
  0xb7   : > { %1162 = vmatpush2.msra.mxu0 %v599_v24  ;;  %1387 = vmatpush2.msra.mxu1 %v631_v25  ;;  %v267_v24 = vld [vmem:[%s2608_s7 + $0x158] sm:$0xff]  ;;  %v652_v25 = vld [vmem:[%s3639_s2 + $0x460] sm:$0xff] }
  0xb8   : > { %852 = vmatprep.mubr.f32.mxu0 %v450_v26  ;;  %1077 = vmatprep.mubr.f32.mxu1 %v452_v27  ;;  %v264_v26 = vld [vmem:[%s2608_s7 + $0x140] sm:$0xff]  ;;  %v266_v27 = vld [vmem:[%s2608_s7 + $0x150] sm:$0xff] }
  0xb9   : > { %853 = vmatmul.mubr.f32.gmra.mxu0 %v449_v28  ;;  %1078 = vmatmul.mubr.f32.gmra.mxu1 %v451_v29  ;;  %v274_v28 = vld [vmem:[%s2608_s7 + $0x190] sm:$0xff]  ;;  %v276_v29 = vld [vmem:[%s2608_s7 + $0x1a0] sm:$0xff] }
  0xba   : > { %1163 = vmatprep.subr.mxu0 %v2286_v2  ;;  %1388 = vmatprep.subr.mxu1 %v2286_v2 }
  0xbb   : > { %1164 = vmatpush2.msra.mxu0 %v598_v30  ;;  %1389 = vmatpush2.msra.mxu1 %v630_v31  ;;  %v651_v30 = vld [vmem:[%s3639_s2 + $0x458] sm:$0xff]  ;;  %v273_v31 = vld [vmem:[%s2608_s7 + $0x188] sm:$0xff] }
  0xbc   : > { %857 = vmatprep.mubr.f32.mxu0 %v459_v32  ;;  %1082 = vmatprep.mubr.f32.mxu1 %v461_v33  ;;  %v275_v32 = vld [vmem:[%s2608_s7 + $0x198] sm:$0xff] }
  0xbd   : > { %858 = vmatmul.mubr.f32.gmra.mxu0 %v458_v34  ;;  %1083 = vmatmul.mubr.f32.gmra.mxu1 %v460_v35  ;;  %v283_v33 = vld [vmem:[%s2608_s7 + $0x1d8] sm:$0xff]  ;;  %v285_v34 = vld [vmem:[%s2608_s7 + $0x1e8] sm:$0xff]  ;;  %v650_v35 = vld [vmem:[%s3639_s2 + $0x450] sm:$0xff] }
  0xbe   : > { %1165 = vmatprep.subr.mxu0 %v2286_v2  ;;  %1390 = vmatprep.subr.mxu1 %v2286_v2 }
  0xbf   : > { %1166 = vmatpush2.msra.mxu0 %v597_v36  ;;  %1391 = vmatpush2.msra.mxu1 %v629_v37  ;;  %v282_v36 = vld [vmem:[%s2608_s7 + $0x1d0] sm:$0xff]  ;;  %v284_v37 = vld [vmem:[%s2608_s7 + $0x1e0] sm:$0xff] }
  0xc0   : > { %862 = vmatprep.mubr.f32.mxu0 %v468_v38  ;;  %1087 = vmatprep.mubr.f32.mxu1 %v470_v39  ;;  %v292_v38 = vld [vmem:[%s2608_s7 + $0x220] sm:$0xff]  ;;  %v294_v39 = vld [vmem:[%s2608_s7 + $0x230] sm:$0xff] }
  0xc1   : > { %863 = vmatmul.mubr.f32.gmra.mxu0 %v467_v40  ;;  %1088 = vmatmul.mubr.f32.gmra.mxu1 %v469_v41  ;;  %v649_v40 = vld [vmem:[%s3639_s2 + $0x448] sm:$0xff]  ;;  %v291_v41 = vld [vmem:[%s2608_s7 + $0x218] sm:$0xff] }
  0xc2   : > { %1167 = vmatprep.subr.mxu0 %v2286_v2  ;;  %1392 = vmatprep.subr.mxu1 %v2286_v2 }
  0xc3   : > { %1168 = vmatpush2.msra.mxu0 %v596_v42  ;;  %1393 = vmatpush2.msra.mxu1 %v628_v43  ;;  %v293_v42 = vld [vmem:[%s2608_s7 + $0x228] sm:$0xff] }
  0xc4   : > { %867 = vmatprep.mubr.f32.mxu0 %v477_v44  ;;  %1092 = vmatprep.mubr.f32.mxu1 %v479_v45  ;;  %v301_v43 = vld [vmem:[%s2608_s7 + $0x268] sm:$0xff]  ;;  %v303_v44 = vld [vmem:[%s2608_s7 + $0x278] sm:$0xff]  ;;  %v648_v45 = vld [vmem:[%s3639_s2 + $0x440] sm:$0xff] }
  0xc5   : > { %868 = vmatmul.mubr.f32.gmra.mxu0 %v476_v46  ;;  %1093 = vmatmul.mubr.f32.gmra.mxu1 %v478_v47  ;;  %v300_v46 = vld [vmem:[%s2608_s7 + $0x260] sm:$0xff]  ;;  %v302_v47 = vld [vmem:[%s2608_s7 + $0x270] sm:$0xff] }
  0xc6   : > { %1169 = vmatprep.subr.mxu0 %v2286_v2  ;;  %1394 = vmatprep.subr.mxu1 %v2286_v2 }
  0xc7   : > { %1170 = vmatpush2.msra.mxu0 %v595_v48  ;;  %1395 = vmatpush2.msra.mxu1 %v627_v49  ;;  %v310_v48 = vld [vmem:[%s2608_s7 + $0x2b0] sm:$0xff]  ;;  %v312_v49 = vld [vmem:[%s2608_s7 + $0x2c0] sm:$0xff] }
  0xc8   : > { %872 = vmatprep.mubr.f32.mxu0 %v486_v50  ;;  %1097 = vmatprep.mubr.f32.mxu1 %v488_v51  ;;  %v647_v50 = vld [vmem:[%s3639_s2 + $0x438] sm:$0xff]  ;;  %v309_v51 = vld [vmem:[%s2608_s7 + $0x2a8] sm:$0xff] }
  0xc9   : > { %873 = vmatmul.mubr.f32.gmra.mxu0 %v485_v52  ;;  %1098 = vmatmul.mubr.f32.gmra.mxu1 %v487_v53  ;;  %v311_v52 = vld [vmem:[%s2608_s7 + $0x2b8] sm:$0xff] }
  0xca   : > { %1171 = vmatprep.subr.mxu0 %v2286_v2  ;;  %1396 = vmatprep.subr.mxu1 %v2286_v2  ;;  %v319_v53 = vld [vmem:[%s2608_s7 + $0x2f8] sm:$0xff] }
  0xcb   : > { %1172 = vmatpush2.msra.mxu0 %v594_v54  ;;  %1397 = vmatpush2.msra.mxu1 %v626_v55  ;;  %v321_v54 = vld [vmem:[%s2608_s7 + $0x308] sm:$0xff]  ;;  %v646_v55 = vld [vmem:[%s3639_s2 + $0x430] sm:$0xff] }
  0xcc   : > { %877 = vmatprep.mubr.f32.mxu0 %v495_v56  ;;  %1102 = vmatprep.mubr.f32.mxu1 %v497_v57  ;;  %v318_v56 = vld [vmem:[%s2608_s7 + $0x2f0] sm:$0xff]  ;;  %v320_v57 = vld [vmem:[%s2608_s7 + $0x300] sm:$0xff] }
  0xcd   : > { %878 = vmatmul.mubr.f32.gmra.mxu0 %v494_v58  ;;  %1103 = vmatmul.mubr.f32.gmra.mxu1 %v496_v59  ;;  %v328_v58 = vld [vmem:[%s2608_s7 + $0x340] sm:$0xff]  ;;  %v330_v59 = vld [vmem:[%s2608_s7 + $0x350] sm:$0xff] }
  0xce   : > { %1173 = vmatprep.subr.mxu0 %v2286_v2  ;;  %1398 = vmatprep.subr.mxu1 %v2286_v2 }
  0xcf   : > { %1174 = vmatpush2.msra.mxu0 %v593_v60  ;;  %1399 = vmatpush2.msra.mxu1 %v625_v61  ;;  %v645_v60 = vld [vmem:[%s3639_s2 + $0x428] sm:$0xff]  ;;  %v327_v61 = vld [vmem:[%s2608_s7 + $0x338] sm:$0xff] }
  0xd0   : > { %882 = vmatprep.mubr.f32.mxu0 %v504_v62  ;;  %1107 = vmatprep.mubr.f32.mxu1 %v506_v63  ;;  %v329_v62 = vld [vmem:[%s2608_s7 + $0x348] sm:$0xff] }
  0xd1   : > { %883 = vmatmul.mubr.f32.gmra.mxu0 %v503_v0  ;;  %1108 = vmatmul.mubr.f32.gmra.mxu1 %v505_v1  ;;  %v337_v63 = vld [vmem:[%s2608_s7 + $0x388] sm:$0xff]  ;;  %v339_v0 = vld [vmem:[%s2608_s7 + $0x398] sm:$0xff]  ;;  %v644_v1 = vld [vmem:[%s3639_s2 + $0x420] sm:$0xff] }
  0xd2   : > { %1175 = vmatprep.subr.mxu0 %v2286_v2  ;;  %1400 = vmatprep.subr.mxu1 %v2286_v2  ;;  %v237_v2 = vld [vmem:[%s2608_s7 + $0x68] sm:$0xff] }
  0xd3   : > { %1176 = vmatpush2.msra.mxu0 %v592_v3  ;;  %1401 = vmatpush2.msra.mxu1 %v624_v4  ;;  %v336_v3 = vld [vmem:[%s2608_s7 + $0x380] sm:$0xff]  ;;  %v338_v4 = vld [vmem:[%s2608_s7 + $0x390] sm:$0xff] }
  0xd4   : > { %1177 = vmatprep.mubr.f32.mxu0 %v229_v5  ;;  %1402 = vmatprep.mubr.f32.mxu1 %v231_v6  ;;  %v346_v5 = vld [vmem:[%s2608_s7 + $0x3d0] sm:$0xff]  ;;  %v348_v6 = vld [vmem:[%s2608_s7 + $0x3e0] sm:$0xff] }
  0xd5   : > { %1178 = vmatmul.mubr.f32.vlgmr.msra.gmra.mxu0 %v228_v7  ;;  %1403 = vmatmul.mubr.f32.vlgmr.msra.gmra.mxu1 %v230_v8  ;;  %v643_v7 = vld [vmem:[%s3639_s2 + $0x418] sm:$0xff]  ;;  %v345_v8 = vld [vmem:[%s2608_s7 + $0x3c8] sm:$0xff] }
  0xd6   : > { %2069 = vmatprep.subr.mxu0 %v655_v9  ;;  %2149 = vmatprep.subr.mxu1 %v655_v9 }
  0xd7   : > { %2070 = vmatpush3.msra.mxu0 %v655_v9  ;;  %2165 = vmatpush3.msra.mxu1 %v655_v9  ;;  %v347_v9 = vld [vmem:[%s2608_s7 + $0x3d8] sm:$0xff] }
  0xd8   : > { %1182 = vmatprep.mubr.f32.mxu0 %v238_v10  ;;  %1407 = vmatprep.mubr.f32.mxu1 %v240_v11  ;;  %v355_v10 = vld [vmem:[%s2608_s7 + $0x418] sm:$0xff]  ;;  %v357_v11 = vld [vmem:[%s2608_s7 + $0x428] sm:$0xff] }
  0xd9   : > { %1183 = vmatmul.mubr.f32.gmra.mxu0 %v237_v2  ;;  %1408 = vmatmul.mubr.f32.gmra.mxu1 %v239_v12  ;;  %v642_v2 = vld [vmem:[%s3639_s2 + $0x410] sm:$0xff] }
  0xda   : > { %1187 = vmatprep.mubr.f32.mxu0 %v247_v13  ;;  %1412 = vmatprep.mubr.f32.mxu1 %v249_v14  ;;  %v354_v12 = vld [vmem:[%s2608_s7 + $0x410] sm:$0xff]  ;;  %v356_v13 = vld [vmem:[%s2608_s7 + $0x420] sm:$0xff] }
  0xdb   : > { %2071 = vmatprep.subr.mxu0 %v654_v15  ;;  %2150 = vmatprep.subr.mxu1 %v654_v15  ;;  %v364_v14 = vld [vmem:[%s2608_s7 + $0x460] sm:$0xff] }
  0xdc   : > { %2072 = vmatpush3.msra.mxu0 %v654_v15  ;;  %2166 = vmatpush3.msra.mxu1 %v654_v15  ;;  %v366_v15 = vld [vmem:[%s2608_s7 + $0x470] sm:$0xff] }
  0xdd   : > { %1188 = vmatmul.mubr.f32.gmra.mxu0 %v246_v16  ;;  %1413 = vmatmul.mubr.f32.gmra.mxu1 %v248_v17  ;;  %v641_v16 = vld [vmem:[%s3639_s2 + $0x408] sm:$0xff]  ;;  %v363_v17 = vld [vmem:[%s2608_s7 + $0x458] sm:$0xff] }
  0xde   : > { %1192 = vmatprep.mubr.f32.mxu0 %v256_v18  ;;  %1417 = vmatprep.mubr.f32.mxu1 %v258_v19  ;;  %v365_v18 = vld [vmem:[%s2608_s7 + $0x468] sm:$0xff] }
  0xdf   : > { %2073 = vmatprep.subr.mxu0 %v653_v20  ;;  %2151 = vmatprep.subr.mxu1 %v653_v20  ;;  %v373_v19 = vld [vmem:[%s2608_s7 + $0x4a8] sm:$0xff] }
  0xe0   : > { %2074 = vmatpush3.msra.mxu0 %v653_v20  ;;  %2167 = vmatpush3.msra.mxu1 %v653_v20  ;;  %v375_v20 = vld [vmem:[%s2608_s7 + $0x4b8] sm:$0xff] }
  0xe1   : > { %1193 = vmatmul.mubr.f32.gmra.mxu0 %v255_v21  ;;  %1418 = vmatmul.mubr.f32.gmra.mxu1 %v257_v22  ;;  %v640_v21 = vld [vmem:[%s3639_s2 + $0x400] sm:$0xff] }
  0xe2   : > { %1197 = vmatprep.mubr.f32.mxu0 %v265_v23  ;;  %1422 = vmatprep.mubr.f32.mxu1 %v267_v24  ;;  %v372_v22 = vld [vmem:[%s2608_s7 + $0x4a0] sm:$0xff]  ;;  %v374_v23 = vld [vmem:[%s2608_s7 + $0x4b0] sm:$0xff] }
  0xe3   : > { %2075 = vmatprep.subr.mxu0 %v652_v25  ;;  %2152 = vmatprep.subr.mxu1 %v652_v25  ;;  %v3131_v24 = vld [vmem:[%s3640_s3] ss:$0 sm:$0xff] }
  0xe4   : > { %2076 = vmatpush3.msra.mxu0 %v652_v25  ;;  %2168 = vmatpush3.msra.mxu1 %v652_v25  ;;  %v382_v25 = vld [vmem:[%s2608_s7 + $0x4f0] sm:$0xff] }
  0xe5   : > { %1198 = vmatmul.mubr.f32.gmra.mxu0 %v264_v26  ;;  %1423 = vmatmul.mubr.f32.gmra.mxu1 %v266_v27  ;;  %v384_v26 = vld [vmem:[%s2608_s7 + $0x500] sm:$0xff] }
  0xe6   : > { %1202 = vmatprep.mubr.f32.mxu0 %v274_v28  ;;  %1427 = vmatprep.mubr.f32.mxu1 %v276_v29 }
  0xe7   : > { %2077 = vmatprep.subr.mxu0 %v651_v30  ;;  %2153 = vmatprep.subr.mxu1 %v651_v30 }
  0xe8   : > { %2078 = vmatpush3.msra.mxu0 %v651_v30  ;;  %2169 = vmatpush3.msra.mxu1 %v651_v30  ;;  %v381_v30 = vld [vmem:[%s2608_s7 + $0x4e8] sm:$0xff] }
  0xe9   : > { %1203 = vmatmul.mubr.f32.gmra.mxu0 %v273_v31  ;;  %1428 = vmatmul.mubr.f32.gmra.mxu1 %v275_v32  ;;  %v383_v31 = vld [vmem:[%s2608_s7 + $0x4f8] sm:$0xff] }
  0xea   : > { %1207 = vmatprep.mubr.f32.mxu0 %v283_v33  ;;  %1432 = vmatprep.mubr.f32.mxu1 %v285_v34  ;;  %v391_v34 = vld [vmem:[%s2608_s7 + $0x538] sm:$0xff] }
  0xeb   : > { %2079 = vmatprep.subr.mxu0 %v650_v35  ;;  %2154 = vmatprep.subr.mxu1 %v650_v35 }
  0xec   : > { %2080 = vmatpush3.msra.mxu0 %v650_v35  ;;  %2170 = vmatpush3.msra.mxu1 %v650_v35  ;;  %v393_v35 = vld [vmem:[%s2608_s7 + $0x548] sm:$0xff] }
  0xed   : > { %1208 = vmatmul.mubr.f32.gmra.mxu0 %v282_v36  ;;  %1433 = vmatmul.mubr.f32.gmra.mxu1 %v284_v37 }
  0xee   : > { %1212 = vmatprep.mubr.f32.mxu0 %v292_v38  ;;  %1437 = vmatprep.mubr.f32.mxu1 %v294_v39 }
  0xef   : > { %2081 = vmatprep.subr.mxu0 %v649_v40  ;;  %2155 = vmatprep.subr.mxu1 %v649_v40 }
  0xf0   : > { %2082 = vmatpush3.msra.mxu0 %v649_v40  ;;  %2171 = vmatpush3.msra.mxu1 %v649_v40  ;;  %v390_v40 = vld [vmem:[%s2608_s7 + $0x530] sm:$0xff] }
  0xf1   : > { %1213 = vmatmul.mubr.f32.gmra.mxu0 %v291_v41  ;;  %1438 = vmatmul.mubr.f32.gmra.mxu1 %v293_v42  ;;  %v392_v41 = vld [vmem:[%s2608_s7 + $0x540] sm:$0xff] }
  0xf2   : > { %1217 = vmatprep.mubr.f32.mxu0 %v301_v43  ;;  %1442 = vmatprep.mubr.f32.mxu1 %v303_v44  ;;  %v400_v44 = vld [vmem:[%s2608_s7 + $0x580] sm:$0xff] }
  0xf3   : > { %2083 = vmatprep.subr.mxu0 %v648_v45  ;;  %2156 = vmatprep.subr.mxu1 %v648_v45 }
  0xf4   : > { %2084 = vmatpush3.msra.mxu0 %v648_v45  ;;  %2172 = vmatpush3.msra.mxu1 %v648_v45  ;;  %v402_v45 = vld [vmem:[%s2608_s7 + $0x590] sm:$0xff] }
  0xf5   : > { %1218 = vmatmul.mubr.f32.gmra.mxu0 %v300_v46  ;;  %1443 = vmatmul.mubr.f32.gmra.mxu1 %v302_v47 }
  0xf6   : > { %1222 = vmatprep.mubr.f32.mxu0 %v310_v48  ;;  %1447 = vmatprep.mubr.f32.mxu1 %v312_v49 }
  0xf7   : > { %2085 = vmatprep.subr.mxu0 %v647_v50  ;;  %2157 = vmatprep.subr.mxu1 %v647_v50 }
  0xf8   : > { %2086 = vmatpush3.msra.mxu0 %v647_v50  ;;  %2173 = vmatpush3.msra.mxu1 %v647_v50  ;;  %v399_v50 = vld [vmem:[%s2608_s7 + $0x578] sm:$0xff] }
  0xf9   : > { %1223 = vmatmul.mubr.f32.gmra.mxu0 %v309_v51  ;;  %1448 = vmatmul.mubr.f32.gmra.mxu1 %v311_v52  ;;  %v401_v51 = vld [vmem:[%s2608_s7 + $0x588] sm:$0xff] }
  0xfa   : > { %1227 = vmatprep.mubr.f32.mxu0 %v319_v53  ;;  %1452 = vmatprep.mubr.f32.mxu1 %v321_v54  ;;  %v409_v54 = vld [vmem:[%s2608_s7 + $0x5c8] sm:$0xff] }
  0xfb   : > { %2087 = vmatprep.subr.mxu0 %v646_v55  ;;  %2158 = vmatprep.subr.mxu1 %v646_v55 }
  0xfc   : > { %2088 = vmatpush3.msra.mxu0 %v646_v55  ;;  %2174 = vmatpush3.msra.mxu1 %v646_v55  ;;  %v411_v55 = vld [vmem:[%s2608_s7 + $0x5d8] sm:$0xff] }
  0xfd   : > { %1228 = vmatmul.mubr.f32.gmra.mxu0 %v318_v56  ;;  %1453 = vmatmul.mubr.f32.gmra.mxu1 %v320_v57 }
  0xfe   : > { %1232 = vmatprep.mubr.f32.mxu0 %v328_v58  ;;  %1457 = vmatprep.mubr.f32.mxu1 %v330_v59 }
  0xff   : > { %2089 = vmatprep.subr.mxu0 %v645_v60  ;;  %2159 = vmatprep.subr.mxu1 %v645_v60 }
 0x100   : > { %2090 = vmatpush3.msra.mxu0 %v645_v60  ;;  %2175 = vmatpush3.msra.mxu1 %v645_v60  ;;  %v408_v60 = vld [vmem:[%s2608_s7 + $0x5c0] sm:$0xff] }
 0x101   : > { %1233 = vmatmul.mubr.f32.gmra.mxu0 %v327_v61  ;;  %1458 = vmatmul.mubr.f32.gmra.mxu1 %v329_v62  ;;  %v410_v61 = vld [vmem:[%s2608_s7 + $0x5d0] sm:$0xff] }
 0x102   : > { %1237 = vmatprep.mubr.f32.mxu0 %v337_v63  ;;  %1462 = vmatprep.mubr.f32.mxu1 %v339_v0  ;;  %v418_v0 = vld [vmem:[%s2608_s7 + $0x610] sm:$0xff] }
 0x103   : > { %2091 = vmatprep.subr.mxu0 %v644_v1  ;;  %2160 = vmatprep.subr.mxu1 %v644_v1 }
 0x104   : > { %2092 = vmatpush3.msra.mxu0 %v644_v1  ;;  %2176 = vmatpush3.msra.mxu1 %v644_v1  ;;  %v420_v1 = vld [vmem:[%s2608_s7 + $0x620] sm:$0xff] }
 0x105   : > { %1238 = vmatmul.mubr.f32.gmra.mxu0 %v336_v3  ;;  %1463 = vmatmul.mubr.f32.gmra.mxu1 %v338_v4 }
 0x106   : > { %1242 = vmatprep.mubr.f32.mxu0 %v346_v5  ;;  %1467 = vmatprep.mubr.f32.mxu1 %v348_v6 }
 0x107   : > { %2093 = vmatprep.subr.mxu0 %v643_v7  ;;  %2161 = vmatprep.subr.mxu1 %v643_v7 }
 0x108   : > { %2094 = vmatpush3.msra.mxu0 %v643_v7  ;;  %2177 = vmatpush3.msra.mxu1 %v643_v7  ;;  %v417_v7 = vld [vmem:[%s2608_s7 + $0x608] sm:$0xff] }
 0x109   : > { %1243 = vmatmul.mubr.f32.gmra.mxu0 %v345_v8  ;;  %1468 = vmatmul.mubr.f32.gmra.mxu1 %v347_v9  ;;  %v419_v8 = vld [vmem:[%s2608_s7 + $0x618] sm:$0xff] }
 0x10a   : > { %1247 = vmatprep.mubr.f32.mxu0 %v355_v10  ;;  %1472 = vmatprep.mubr.f32.mxu1 %v357_v11  ;;  %v427_v11 = vld [vmem:[%s2608_s7 + $0x658] sm:$0xff] }
 0x10b   : > { %2095 = vmatprep.subr.mxu0 %v642_v2  ;;  %2162 = vmatprep.subr.mxu1 %v642_v2 }
 0x10c   : > { %2096 = vmatpush3.msra.mxu0 %v642_v2  ;;  %2178 = vmatpush3.msra.mxu1 %v642_v2  ;;  %v429_v2 = vld [vmem:[%s2608_s7 + $0x668] sm:$0xff] }
 0x10d   : > { %1248 = vmatmul.mubr.f32.gmra.mxu0 %v354_v12  ;;  %1473 = vmatmul.mubr.f32.gmra.mxu1 %v356_v13 }
 0x10e   : > { %1252 = vmatprep.mubr.f32.mxu0 %v364_v14  ;;  %1477 = vmatprep.mubr.f32.mxu1 %v366_v15 }
 0x10f   : > { %2097 = vmatprep.subr.mxu0 %v641_v16  ;;  %2163 = vmatprep.subr.mxu1 %v641_v16 }
 0x110   : > { %2098 = vmatpush3.msra.mxu0 %v641_v16  ;;  %2179 = vmatpush3.msra.mxu1 %v641_v16  ;;  %v426_v16 = vld [vmem:[%s2608_s7 + $0x650] sm:$0xff] }
 0x111   : > { %1253 = vmatmul.mubr.f32.gmra.mxu0 %v363_v17  ;;  %1478 = vmatmul.mubr.f32.gmra.mxu1 %v365_v18  ;;  %v428_v17 = vld [vmem:[%s2608_s7 + $0x660] sm:$0xff] }
 0x112   : > { %1257 = vmatprep.mubr.f32.mxu0 %v373_v19  ;;  %1482 = vmatprep.mubr.f32.mxu1 %v375_v20  ;;  %v436_v20 = vld [vmem:[%s2608_s7 + $0x6a0] sm:$0xff] }
 0x113   : > { %2099 = vmatprep.subr.mxu0 %v640_v21  ;;  %2164 = vmatprep.subr.mxu1 %v640_v21 }
 0x114   : > { %2100 = vmatpush3.msra.mxu0 %v640_v21  ;;  %2180 = vmatpush3.msra.mxu1 %v640_v21  ;;  %v438_v21 = vld [vmem:[%s2608_s7 + $0x6b0] sm:$0xff] }
 0x115   : > { %v729_v27 = vpop.f32.mrf.mxu0  ;;  %v954_v28 = vpop.f32.mrf.mxu1  ;;  %1258 = vmatmul.mubr.f32.gmra.mxu0 %v372_v22  ;;  %1483 = vmatmul.mubr.f32.gmra.mxu1 %v374_v23 }
 0x116   : > { %v730_v29 = vadd.f32 %v3131_v24, %v729_v27  ;;  %1262 = vmatprep.mubr.f32.mxu0 %v382_v25  ;;  %1487 = vmatprep.mubr.f32.mxu1 %v384_v26  ;;  %v435_v27 = vld [vmem:[%s2608_s7 + $0x698] sm:$0xff] }
 0x117   : > { %v731_v32 = vpop.f32.mrf.mxu0  ;;  %v956_v33 = vpop.f32.mrf.mxu1 }
 0x118   : > { %v3140_v36 = vadd.f32 %v954_v28, %v730_v29  ;;  %v437_v28 = vld [vmem:[%s2608_s7 + $0x6a8] sm:$0xff]  ;;  %v447_v32 = vld [vmem:[%s2608_s7 + $0x6f8] sm:$0xff] }
 0x119   : > { %v734_v37 = vpop.f32.mrf.mxu0  ;;  %v959_v38 = vpop.f32.mrf.mxu1  ;;  %1263 = vmatmul.mubr.f32.gmra.mxu0 %v381_v30  ;;  %1488 = vmatmul.mubr.f32.gmra.mxu1 %v383_v31  ;;  %v445_v31 = vld [vmem:[%s2608_s7 + $0x6e8] sm:$0xff] }
 0x11a   : > { %v735_v39 = vadd.f32 %v3131_v24, %v734_v37  ;;  %1267 = vmatprep.mubr.f32.mxu0 %v391_v34  ;;  %1492 = vmatprep.mubr.f32.mxu1 %v393_v35 }
 0x11b   : > { %v736_v42 = vpop.f32.mrf.mxu0  ;;  %v961_v43 = vpop.f32.mrf.mxu1 }
 0x11c   : > { %v3147_v46 = vadd.f32 %v959_v38, %v735_v39  ;;  %v444_v38 = vld [vmem:[%s2608_s7 + $0x6e0] sm:$0xff]  ;;  %v446_v39 = vld [vmem:[%s2608_s7 + $0x6f0] sm:$0xff] }
 0x11d   : > { %v739_v47 = vpop.f32.mrf.mxu0  ;;  %v964_v48 = vpop.f32.mrf.mxu1  ;;  %1268 = vmatmul.mubr.f32.gmra.mxu0 %v390_v40  ;;  %1493 = vmatmul.mubr.f32.gmra.mxu1 %v392_v41  ;;  %v454_v42 = vld [vmem:[%s2608_s7 + $0x730] sm:$0xff]  ;;  %v456_v43 = vld [vmem:[%s2608_s7 + $0x740] sm:$0xff] }
 0x11e   : > { %v740_v49 = vadd.f32 %v3131_v24, %v739_v47  ;;  %1272 = vmatprep.mubr.f32.mxu0 %v400_v44  ;;  %1497 = vmatprep.mubr.f32.mxu1 %v402_v45 }
 0x11f   : > { %v741_v52 = vpop.f32.mrf.mxu0  ;;  %v966_v53 = vpop.f32.mrf.mxu1 }
 0x120   : > { %v3154_v56 = vadd.f32 %v964_v48, %v740_v49  ;;  %v453_v49 = vld [vmem:[%s2608_s7 + $0x728] sm:$0xff]  ;;  %v463_v53 = vld [vmem:[%s2608_s7 + $0x778] sm:$0xff] }
 0x121   : > { %v744_v57 = vpop.f32.mrf.mxu0  ;;  %v969_v58 = vpop.f32.mrf.mxu1  ;;  %1273 = vmatmul.mubr.f32.gmra.mxu0 %v399_v50  ;;  %1498 = vmatmul.mubr.f32.gmra.mxu1 %v401_v51  ;;  %v455_v50 = vld [vmem:[%s2608_s7 + $0x738] sm:$0xff] }
 0x122   : > { %v745_v59 = vadd.f32 %v3131_v24, %v744_v57  ;;  %1277 = vmatprep.mubr.f32.mxu0 %v409_v54  ;;  %1502 = vmatprep.mubr.f32.mxu1 %v411_v55  ;;  %v465_v54 = vld [vmem:[%s2608_s7 + $0x788] sm:$0xff] }
 0x123   : > { %v746_v62 = vpop.f32.mrf.mxu0  ;;  %v971_v63 = vpop.f32.mrf.mxu1 }
 0x124   : > { %v3161_v3 = vadd.f32 %v969_v58, %v745_v59 }
 0x125   : > { %v749_v4 = vpop.f32.mrf.mxu0  ;;  %v974_v5 = vpop.f32.mrf.mxu1  ;;  %1278 = vmatmul.mubr.f32.gmra.mxu0 %v408_v60  ;;  %1503 = vmatmul.mubr.f32.gmra.mxu1 %v410_v61  ;;  %v462_v60 = vld [vmem:[%s2608_s7 + $0x770] sm:$0xff]  ;;  %v464_v61 = vld [vmem:[%s2608_s7 + $0x780] sm:$0xff] }
 0x126   : > { %v750_v6 = vadd.f32 %v3131_v24, %v749_v4  ;;  %1282 = vmatprep.mubr.f32.mxu0 %v418_v0  ;;  %1507 = vmatprep.mubr.f32.mxu1 %v420_v1  ;;  %v472_v0 = vld [vmem:[%s2608_s7 + $0x7c0] sm:$0xff]  ;;  %v474_v1 = vld [vmem:[%s2608_s7 + $0x7d0] sm:$0xff] }
 0x127   : > { %v751_v9 = vpop.f32.mrf.mxu0  ;;  %v976_v10 = vpop.f32.mrf.mxu1 }
 0x128   : > { %v3168_v12 = vadd.f32 %v974_v5, %v750_v6  ;;  %v473_v9 = vld [vmem:[%s2608_s7 + $0x7c8] sm:$0xff] }
 0x129   : > { %v754_v13 = vpop.f32.mrf.mxu0  ;;  %v979_v14 = vpop.f32.mrf.mxu1  ;;  %1283 = vmatmul.mubr.f32.gmra.mxu0 %v417_v7  ;;  %1508 = vmatmul.mubr.f32.gmra.mxu1 %v419_v8  ;;  %v471_v8 = vld [vmem:[%s2608_s7 + $0x7b8] sm:$0xff] }
 0x12a   : > { %v755_v15 = vadd.f32 %v3131_v24, %v754_v13  ;;  %1287 = vmatprep.mubr.f32.mxu0 %v427_v11  ;;  %1512 = vmatprep.mubr.f32.mxu1 %v429_v2  ;;  %v481_v2 = vld [vmem:[%s2608_s7 + $0x808] sm:$0xff]  ;;  %v483_v13 = vld [vmem:[%s2608_s7 + $0x818] sm:$0xff] }
 0x12b   : > { %v756_v18 = vpop.f32.mrf.mxu0  ;;  %v981_v19 = vpop.f32.mrf.mxu1 }
 0x12c   : > { %v3175_v22 = vadd.f32 %v979_v14, %v755_v15  ;;  %v480_v18 = vld [vmem:[%s2608_s7 + $0x800] sm:$0xff]  ;;  %v482_v19 = vld [vmem:[%s2608_s7 + $0x810] sm:$0xff] }
 0x12d   : > { %v759_v23 = vpop.f32.mrf.mxu0  ;;  %v984_v25 = vpop.f32.mrf.mxu1  ;;  %1288 = vmatmul.mubr.f32.gmra.mxu0 %v426_v16  ;;  %1513 = vmatmul.mubr.f32.gmra.mxu1 %v428_v17 }
 0x12e   : > { %v760_v26 = vadd.f32 %v3131_v24, %v759_v23  ;;  %1292 = vmatprep.mubr.f32.mxu0 %v436_v20  ;;  %1517 = vmatprep.mubr.f32.mxu1 %v438_v21  ;;  %v490_v23 = vld [vmem:[%s2608_s7 + $0x850] sm:$0xff] }
 0x12f   : > { %v761_v29 = vpop.f32.mrf.mxu0  ;;  %v986_v30 = vpop.f32.mrf.mxu1 }
 0x130   : > { %v3182_v33 = vadd.f32 %v984_v25, %v760_v26  ;;  %v492_v25 = vld [vmem:[%s2608_s7 + $0x860] sm:$0xff]  ;;  %v489_v30 = vld [vmem:[%s2608_s7 + $0x848] sm:$0xff] }
 0x131   : > { %v764_v34 = vpop.f32.mrf.mxu0  ;;  %v989_v35 = vpop.f32.mrf.mxu1  ;;  %1293 = vmatmul.mubr.f32.gmra.mxu0 %v435_v27  ;;  %1518 = vmatmul.mubr.f32.gmra.mxu1 %v437_v28 }
 0x132   : > { %v765_v37 = vadd.f32 %v3131_v24, %v764_v34  ;;  %1297 = vmatprep.mubr.f32.mxu0 %v445_v31  ;;  %1522 = vmatprep.mubr.f32.mxu1 %v447_v32  ;;  %v491_v31 = vld [vmem:[%s2608_s7 + $0x858] sm:$0xff] }
 0x133   : > { %v766_v40 = vpop.f32.mrf.mxu0  ;;  %v991_v41 = vpop.f32.mrf.mxu1 }
 0x134   : > { %v3189_v44 = vadd.f32 %v989_v35, %v765_v37  ;;  %v499_v35 = vld [vmem:[%s2608_s7 + $0x898] sm:$0xff]  ;;  %v501_v37 = vld [vmem:[%s2608_s7 + $0x8a8] sm:$0xff] }
 0x135   : > { %v769_v45 = vpop.f32.mrf.mxu0  ;;  %v994_v47 = vpop.f32.mrf.mxu1  ;;  %1298 = vmatmul.mubr.f32.gmra.mxu0 %v444_v38  ;;  %1523 = vmatmul.mubr.f32.gmra.mxu1 %v446_v39 }
 0x136   : > { %v770_v48 = vadd.f32 %v3131_v24, %v769_v45  ;;  %1302 = vmatprep.mubr.f32.mxu0 %v454_v42  ;;  %1527 = vmatprep.mubr.f32.mxu1 %v456_v43  ;;  %v498_v42 = vld [vmem:[%s2608_s7 + $0x890] sm:$0xff]  ;;  %v500_v43 = vld [vmem:[%s2608_s7 + $0x8a0] sm:$0xff] }
 0x137   : > { %v771_v51 = vpop.f32.mrf.mxu0  ;;  %v996_v52 = vpop.f32.mrf.mxu1 }
 0x138   : > { %v3196_v55 = vadd.f32 %v994_v47, %v770_v48  ;;  %v508_v48 = vld [vmem:[%s2608_s7 + $0x8e0] sm:$0xff] }
 0x139   : > { %v774_v57 = vpop.f32.mrf.mxu0  ;;  %v999_v58 = vpop.f32.mrf.mxu1  ;;  %1303 = vmatmul.mubr.f32.gmra.mxu0 %v453_v49  ;;  %1528 = vmatmul.mubr.f32.gmra.mxu1 %v455_v50  ;;  %v510_v49 = vld [vmem:[%s2608_s7 + $0x8f0] sm:$0xff] }
 0x13a   : > { %v775_v59 = vadd.f32 %v3131_v24, %v774_v57  ;;  %1307 = vmatprep.mubr.f32.mxu0 %v463_v53  ;;  %1532 = vmatprep.mubr.f32.mxu1 %v465_v54  ;;  %v507_v54 = vld [vmem:[%s2608_s7 + $0x8d8] sm:$0xff]  ;;  %v509_v57 = vld [vmem:[%s2608_s7 + $0x8e8] sm:$0xff] }
 0x13b   : > { %v776_v62 = vpop.f32.mrf.mxu0  ;;  %v1001_v63 = vpop.f32.mrf.mxu1 }
 0x13c   : > { %v3203_v4 = vadd.f32 %v999_v58, %v775_v59 }
 0x13d   : > { %v779_v5 = vpop.f32.mrf.mxu0  ;;  %v1004_v6 = vpop.f32.mrf.mxu1  ;;  %1308 = vmatmul.mubr.f32.gmra.mxu0 %v462_v60  ;;  %1533 = vmatmul.mubr.f32.gmra.mxu1 %v464_v61  ;;  %v232_v60 = vld [vmem:[%s2608_s7 + $0x40] sm:$0xff] }
 0x13e   : > { %v780_v7 = vadd.f32 %v3131_v24, %v779_v5  ;;  %1312 = vmatprep.mubr.f32.mxu0 %v472_v0  ;;  %1537 = vmatprep.mubr.f32.mxu1 %v474_v1  ;;  %v376_v61 = vld [vmem:[%s2608_s7 + $0x4c0] sm:$0xff]  ;;  %v241_v5 = vld [vmem:[%s2608_s7 + $0x88] sm:$0xff] }
 0x13f   : > { %v781_v10 = vpop.f32.mrf.mxu0  ;;  %v1006_v11 = vpop.f32.mrf.mxu1 }
 0x140   : > { %v3210_v14 = vadd.f32 %v1004_v6, %v780_v7  ;;  %v385_v6 = vld [vmem:[%s2608_s7 + $0x508] sm:$0xff]  ;;  %v394_v10 = vld [vmem:[%s2608_s7 + $0x550] sm:$0xff] }
 0x141   : > { %v784_v15 = vpop.f32.mrf.mxu0  ;;  %v1009_v16 = vpop.f32.mrf.mxu1  ;;  %1313 = vmatmul.mubr.f32.gmra.mxu0 %v471_v8  ;;  %1538 = vmatmul.mubr.f32.gmra.mxu1 %v473_v9  ;;  %v250_v9 = vld [vmem:[%s2608_s7 + $0xd0] sm:$0xff] }
 0x142   : > { %v785_v17 = vadd.f32 %v3131_v24, %v784_v15  ;;  %1317 = vmatprep.mubr.f32.mxu0 %v481_v2  ;;  %1542 = vmatprep.mubr.f32.mxu1 %v483_v13 }
 0x143   : > { %v786_v20 = vpop.f32.mrf.mxu0  ;;  %v1011_v21 = vpop.f32.mrf.mxu1 }
 0x144   : > { %v3217_v26 = vadd.f32 %v1009_v16, %v785_v17  ;;  %v259_v16 = vld [vmem:[%s2608_s7 + $0x118] sm:$0xff]  ;;  %v268_v20 = vld [vmem:[%s2608_s7 + $0x160] sm:$0xff] }
 0x145   : > { %v789_v27 = vpop.f32.mrf.mxu0  ;;  %v1014_v28 = vpop.f32.mrf.mxu1  ;;  %1318 = vmatmul.mubr.f32.gmra.mxu0 %v480_v18  ;;  %1543 = vmatmul.mubr.f32.gmra.mxu1 %v482_v19  ;;  %v403_v17 = vld [vmem:[%s2608_s7 + $0x598] sm:$0xff]  ;;  %v412_v21 = vld [vmem:[%s2608_s7 + $0x5e0] sm:$0xff] }
 0x146   : > { %v790_v29 = vadd.f32 %v3131_v24, %v789_v27  ;;  %1322 = vmatprep.mubr.f32.mxu0 %v490_v23  ;;  %1547 = vmatprep.mubr.f32.mxu1 %v492_v25 }
 0x147   : > { %v791_v32 = vpop.f32.mrf.mxu0  ;;  %v1016_v34 = vpop.f32.mrf.mxu1 }
 0x148   : > { %v3224_v38 = vadd.f32 %v1014_v28, %v790_v29  ;;  %v277_v29 = vld [vmem:[%s2608_s7 + $0x1a8] sm:$0xff]  ;;  %v286_v34 = vld [vmem:[%s2608_s7 + $0x1f0] sm:$0xff] }
 0x149   : > { %v794_v39 = vpop.f32.mrf.mxu0  ;;  %v1019_v40 = vpop.f32.mrf.mxu1  ;;  %1323 = vmatmul.mubr.f32.gmra.mxu0 %v489_v30  ;;  %1548 = vmatmul.mubr.f32.gmra.mxu1 %v491_v31  ;;  %v421_v30 = vld [vmem:[%s2608_s7 + $0x628] sm:$0xff] }
 0x14a   : > { %v795_v41 = vadd.f32 %v3131_v24, %v794_v39  ;;  %1327 = vmatprep.mubr.f32.mxu0 %v499_v35  ;;  %1552 = vmatprep.mubr.f32.mxu1 %v501_v37  ;;  %v430_v35 = vld [vmem:[%s2608_s7 + $0x670] sm:$0xff] }
 0x14b   : > { %v796_v45 = vpop.f32.mrf.mxu0  ;;  %v1021_v47 = vpop.f32.mrf.mxu1 }
 0x14c   : > { %v3231_v50 = vadd.f32 %v1019_v40, %v795_v41 }
 0x14d   : > { %v799_v51 = vpop.f32.mrf.mxu0  ;;  %v1024_v52 = vpop.f32.mrf.mxu1  ;;  %1328 = vmatmul.mubr.f32.gmra.mxu0 %v498_v42  ;;  %1553 = vmatmul.mubr.f32.gmra.mxu1 %v500_v43  ;;  %v295_v42 = vld [vmem:[%s2608_s7 + $0x238] sm:$0xff] }
 0x14e   : > { %v800_v53 = vadd.f32 %v3131_v24, %v799_v51  ;;  %1332 = vmatprep.mubr.f32.mxu0 %v508_v48  ;;  %1557 = vmatprep.mubr.f32.mxu1 %v510_v49  ;;  %v439_v43 = vld [vmem:[%s2608_s7 + $0x6b8] sm:$0xff]  ;;  %v304_v48 = vld [vmem:[%s2608_s7 + $0x280] sm:$0xff] }
 0x14f   : > { %v801_v58 = vpop.f32.mrf.mxu0  ;;  %v1026_v59 = vpop.f32.mrf.mxu1  ;;  %v448_v49 = vld [vmem:[%s2608_s7 + $0x700] sm:$0xff] }
 0x150   : > { %v3238_v62 = vadd.f32 %v1024_v52, %v800_v53  ;;  %v457_v58 = vld [vmem:[%s2608_s7 + $0x748] sm:$0xff] }
 0x151   : > { %v804_v63 = vpop.f32.mrf.mxu0  ;;  %v1029_v0 = vpop.f32.mrf.mxu1  ;;  %1333 = vmatmul.mubr.f32.gmra.mxu0 %v507_v54  ;;  %1558 = vmatmul.mubr.f32.gmra.mxu1 %v509_v57  ;;  %v313_v57 = vld [vmem:[%s2608_s7 + $0x2c8] sm:$0xff] }
 0x152   : > { %v805_v1 = vadd.f32 %v3131_v24, %v804_v63  ;;  %2101 = vmatprep.mubr.f32.mxu0 %v232_v60  ;;  %2125 = vmatprep.mubr.f32.mxu1 %v376_v61  ;;  %v322_v61 = vld [vmem:[%s2608_s7 + $0x310] sm:$0xff] }
 0x153   : > { %v806_v7 = vpop.f32.mrf.mxu0  ;;  %v1031_v8 = vpop.f32.mrf.mxu1  ;;  %v466_v63 = vld [vmem:[%s2608_s7 + $0x790] sm:$0xff] }
 0x154   : > { %v3245_v11 = vadd.f32 %v1029_v0, %v805_v1  ;;  %v331_v7 = vld [vmem:[%s2608_s7 + $0x358] sm:$0xff] }
 0x155   : > { %v809_v2 = vpop.f32.mrf.mxu0  ;;  %v1034_v13 = vpop.f32.mrf.mxu1  ;;  %2102 = vmatmul.mubr.f32.vlgmr.msra.gmra.mxu0 %v241_v5  ;;  %2126 = vmatmul.mubr.f32.vlgmr.msra.gmra.mxu1 %v385_v6  ;;  %v475_v8 = vld [vmem:[%s2608_s7 + $0x7d8] sm:$0xff] }
 0x156   : > { %v810_v15 = vadd.f32 %v3131_v24, %v809_v2  ;;  %2104 = vmatprep.mubr.f32.mxu0 %v250_v9  ;;  %2128 = vmatprep.mubr.f32.mxu1 %v394_v10  ;;  %v340_v2 = vld [vmem:[%s2608_s7 + $0x3a0] sm:$0xff] }
 0x157   : > { %v811_v18 = vpop.f32.mrf.mxu0  ;;  %v1036_v19 = vpop.f32.mrf.mxu1 }
 0x158   : > { %v3252_v23 = vadd.f32 %v1034_v13, %v810_v15  ;;  %v484_v13 = vld [vmem:[%s2608_s7 + $0x820] sm:$0xff]  ;;  %v349_v19 = vld [vmem:[%s2608_s7 + $0x3e8] sm:$0xff] }
 0x159   : > { %v814_v25 = vpop.f32.mrf.mxu0  ;;  %v1039_v27 = vpop.f32.mrf.mxu1  ;;  %2105 = vmatmul.mubr.f32.gmra.mxu0 %v259_v16  ;;  %2129 = vmatmul.mubr.f32.gmra.mxu1 %v403_v17 }
 0x15a   : > { %v815_v28 = vadd.f32 %v3131_v24, %v814_v25  ;;  %2107 = vmatprep.mubr.f32.mxu0 %v268_v20  ;;  %2131 = vmatprep.mubr.f32.mxu1 %v412_v21  ;;  %v493_v20 = vld [vmem:[%s2608_s7 + $0x868] sm:$0xff] }
 0x15b   : > { %v816_v31 = vpop.f32.mrf.mxu0  ;;  %v1041_v32 = vpop.f32.mrf.mxu1 }
 0x15c   : > { %v3259_v37 = vadd.f32 %v1039_v27, %v815_v28  ;;  %v358_v27 = vld [vmem:[%s2608_s7 + $0x430] sm:$0xff] }
 0x15d   : > { %v819_v39 = vpop.f32.mrf.mxu0  ;;  %v1044_v40 = vpop.f32.mrf.mxu1  ;;  %2108 = vmatmul.mubr.f32.gmra.mxu0 %v277_v29  ;;  %2132 = vmatmul.mubr.f32.gmra.mxu1 %v421_v30  ;;  %v502_v28 = vld [vmem:[%s2608_s7 + $0x8b0] sm:$0xff] }
 0x15e   : > { %v820_v41 = vadd.f32 %v3131_v24, %v819_v39  ;;  %2110 = vmatprep.mubr.f32.mxu0 %v286_v34  ;;  %2134 = vmatprep.mubr.f32.mxu1 %v430_v35  ;;  %v367_v34 = vld [vmem:[%s2608_s7 + $0x478] sm:$0xff] }
 0x15f   : > { %v821_v45 = vpop.f32.mrf.mxu0  ;;  %v1046_v47 = vpop.f32.mrf.mxu1  ;;  %v511_v35 = vld [vmem:[%s2608_s7 + $0x8f8] sm:$0xff]  ;;  %s2013_s7 = sshll.u32 %s3671_s8, 3  ;;  %s3435_s8 = sshll.u32 %s207_s23, 8 }
 0x160   : > { %v3266_v51 = vadd.f32 %v1044_v40, %v820_v41  ;;  %s3425_s22 = scalar_lea.vmem %s3638_s1, %s2013_s7  ;;  %s3455_s27 = scalar_lea.vmem [#allocation2], %s3435_s8 }
 0x161   : > { %v824_v52 = vpop.f32.mrf.mxu0  ;;  %v1049_v53 = vpop.f32.mrf.mxu1  ;;  %2111 = vmatmul.mubr.f32.gmra.mxu0 %v295_v42  ;;  %2135 = vmatmul.mubr.f32.gmra.mxu1 %v439_v43  ;;  %s1931_s29 = sshll.u32 %s3455_s27, 4  ;;  %s3585_s29 = int_to_ptr.vmem [resolvable:$true] %s1931_s29 }
 0x162   : > { %v825_v54 = vadd.f32 %v3131_v24, %v824_v52  ;;  %2113 = vmatprep.mubr.f32.mxu0 %v304_v48  ;;  %2137 = vmatprep.mubr.f32.mxu1 %v448_v49  ;;  %s2224_s9 = scalar_lea.vmem %s3585_s29, 4096  ;;  %p2231_p0 = scmp.lt.s32.totalorder %s3585_s29, %s2229_s11 }
 0x163   : > { %v826_v59 = vpop.f32.mrf.mxu0  ;;  %v1051_v60 = vpop.f32.mrf.mxu1  ;;  %p2225_p11 = scmp.ne.s32.totalorder %s3585_s29, %s2224_s9  ;;  %p2232_p1 = scmp.lt.s32.totalorder %s2230_s12, %s2224_s9 }
 0x164   : > { %v3273_v0 = vadd.f32 %v1049_v53, %v825_v54 }
 0x165   : > { %v829_v1 = vpop.f32.mrf.mxu0  ;;  %v1054_v5 = vpop.f32.mrf.mxu1  ;;  %2114 = vmatmul.mubr.f32.gmra.mxu0 %v313_v57  ;;  %2138 = vmatmul.mubr.f32.gmra.mxu1 %v457_v58  ;;  %p2226_p12 = pnand %p2225_p11, %p2353_p5  ;;  %p2233_p2 = por %p2232_p1, %p2231_p0 }
 0x166   : > { %v830_v6 = vadd.f32 %v3131_v24, %v829_v1  ;;  %2116 = vmatprep.mubr.f32.mxu0 %v322_v61  ;;  %2140 = vmatprep.mubr.f32.mxu1 %v466_v63 }
 0x167   : > { %v831_v9 = vpop.f32.mrf.mxu0  ;;  %v1056_v10 = vpop.f32.mrf.mxu1  ;;  %p2227_p13 = pneg %p2226_p12 }
 0x168   : > { %v3280_v15 = vadd.f32 %v1054_v5, %v830_v6 }
 0x169   : > { %v834_v16 = vpop.f32.mrf.mxu0  ;;  %v1059_v17 = vpop.f32.mrf.mxu1  ;;  %2117 = vmatmul.mubr.f32.gmra.mxu0 %v331_v7  ;;  %2141 = vmatmul.mubr.f32.gmra.mxu1 %v475_v8  ;;  %p2234_p3 = pnand %p2233_p2, %p2227_p13 }
 0x16a   : > { %v835_v18 = vadd.f32 %v3131_v24, %v834_v16  ;;  %2119 = vmatprep.mubr.f32.mxu0 %v340_v2  ;;  %2143 = vmatprep.mubr.f32.mxu1 %v484_v13 }
 0x16b   : > { %v836_v21 = vpop.f32.mrf.mxu0  ;;  %v1061_v25 = vpop.f32.mrf.mxu1 }
 0x16c   : > { %v3287_v29 = vadd.f32 %v1059_v17, %v835_v18 }
 0x16d   : > { %v839_v30 = vpop.f32.mrf.mxu0  ;;  %v1064_v31 = vpop.f32.mrf.mxu1  ;;  %2120 = vmatmul.mubr.f32.gmra.mxu0 %v349_v19  ;;  %2144 = vmatmul.mubr.f32.gmra.mxu1 %v493_v20 }
 0x16e   : > { %v840_v32 = vadd.f32 %v3131_v24, %v839_v30  ;;  %2122 = vmatprep.mubr.f32.mxu0 %v358_v27  ;;  %2146 = vmatprep.mubr.f32.mxu1 %v502_v28 }
 0x16f   : > { %v841_v39 = vpop.f32.mrf.mxu0  ;;  %v1066_v40 = vpop.f32.mrf.mxu1 }
 0x170   : > { %v3292_v41 = vadd.f32 %v1064_v31, %v840_v32 }
 0x171   : > { %v844_v42 = vpop.f32.mrf.mxu0  ;;  %v1069_v43 = vpop.f32.mrf.mxu1  ;;  %2123 = vmatmul.mubr.f32.gmra.mxu0 %v367_v34  ;;  %2147 = vmatmul.mubr.f32.gmra.mxu1 %v511_v35 }
 0x172   : > { %v845_v45 = vadd.f32 %v3131_v24, %v844_v42 }
 0x173   : > { %v846_v47 = vpop.f32.mrf.mxu0  ;;  %v1071_v48 = vpop.f32.mrf.mxu1 }
 0x174   : > { %v3295_v49 = vadd.f32 %v1069_v43, %v845_v45 }
 0x175   : > { %v849_v52 = vpop.f32.mrf.mxu0  ;;  %v1074_v53 = vpop.f32.mrf.mxu1 }
 0x176   : > { %v850_v54 = vadd.f32 %v3131_v24, %v849_v52 }
 0x177   : > { %v851_v57 = vpop.f32.mrf.mxu0  ;;  %v1076_v58 = vpop.f32.mrf.mxu1 }
 0x178   : > { %v3298_v59 = vadd.f32 %v1074_v53, %v850_v54 }
 0x179   : > { %v854_v60 = vpop.f32.mrf.mxu0  ;;  %v1079_v61 = vpop.f32.mrf.mxu1 }
 0x17a   : > { %v855_v63 = vadd.f32 %v3131_v24, %v854_v60 }
 0x17b   : > { %v856_v1 = vpop.f32.mrf.mxu0  ;;  %v1081_v5 = vpop.f32.mrf.mxu1 }
 0x17c   : > { %v3301_v6 = vadd.f32 %v1079_v61, %v855_v63 }
 0x17d   : > { %v859_v7 = vpop.f32.mrf.mxu0  ;;  %v1084_v8 = vpop.f32.mrf.mxu1 }
 0x17e   : > { %v860_v9 = vadd.f32 %v3131_v24, %v859_v7 }
 0x17f   : > { %v861_v10 = vpop.f32.mrf.mxu0  ;;  %v1086_v2 = vpop.f32.mrf.mxu1 }
 0x180   : > { %v3304_v13 = vadd.f32 %v1084_v8, %v860_v9 }
 0x181   : > { %v864_v16 = vpop.f32.mrf.mxu0  ;;  %v1089_v17 = vpop.f32.mrf.mxu1 }
 0x182   : > { %v865_v18 = vadd.f32 %v3131_v24, %v864_v16 }
 0x183   : > { %v866_v19 = vpop.f32.mrf.mxu0  ;;  %v1091_v20 = vpop.f32.mrf.mxu1 }
 0x184   : > { %v3307_v21 = vadd.f32 %v1089_v17, %v865_v18 }
 0x185   : > { %v869_v25 = vpop.f32.mrf.mxu0  ;;  %v1094_v27 = vpop.f32.mrf.mxu1 }
 0x186   : > { %v870_v28 = vadd.f32 %v3131_v24, %v869_v25 }
 0x187   : > { %v871_v30 = vpop.f32.mrf.mxu0  ;;  %v1096_v31 = vpop.f32.mrf.mxu1 }
 0x188   : > { %v3310_v32 = vadd.f32 %v1094_v27, %v870_v28 }
 0x189   : > { %v874_v34 = vpop.f32.mrf.mxu0  ;;  %v1099_v35 = vpop.f32.mrf.mxu1 }
 0x18a   : > { %v875_v39 = vadd.f32 %v3131_v24, %v874_v34 }
 0x18b   : > { %v876_v40 = vpop.f32.mrf.mxu0  ;;  %v1101_v42 = vpop.f32.mrf.mxu1 }
 0x18c   : > { %v3313_v43 = vadd.f32 %v1099_v35, %v875_v39 }
 0x18d   : > { %v879_v45 = vpop.f32.mrf.mxu0  ;;  %v1104_v47 = vpop.f32.mrf.mxu1 }
 0x18e   : > { %v880_v48 = vadd.f32 %v3131_v24, %v879_v45 }
 0x18f   : > { %v881_v52 = vpop.f32.mrf.mxu0  ;;  %v1106_v53 = vpop.f32.mrf.mxu1 }
 0x190   : > { %v3316_v54 = vadd.f32 %v1104_v47, %v880_v48 }
 0x191   : > { %v884_v57 = vpop.f32.mrf.mxu0  ;;  %v1109_v58 = vpop.f32.mrf.mxu1 }
 0x192   : > { %3644 = vst [vmem:[#allocation5_spill] sm:$0xff] %v3316_v54  ;;  %v885_v60 = vadd.f32 %v3131_v24, %v884_v57 }
 0x193   : > { %v886_v61 = vpop.f32.mrf.mxu0  ;;  %v1111_v63 = vpop.f32.mrf.mxu1 }
 0x194   : > { %v3319_v1 = vadd.f32 %v1109_v58, %v885_v60 }
 0x195   : > { %v1179_v5 = vpop.f32.mrf.mxu0  ;;  %v1404_v7 = vpop.f32.mrf.mxu1 }
 0x196   : > { %3645 = vst [vmem:[#allocation6_spill] sm:$0xff] %v3319_v1  ;;  %v1180_v8 = vadd.f32 %v1179_v5, %v3140_v36 }
 0x197   : > { %v1181_v9 = vpop.f32.mrf.mxu0  ;;  %v1406_v10 = vpop.f32.mrf.mxu1 }
 0x198   : > { %v3322_v2 = vadd.f32 %v1404_v7, %v1180_v8 }
 0x199   : > { %v1184_v16 = vpop.f32.mrf.mxu0  ;;  %v1409_v17 = vpop.f32.mrf.mxu1 }
 0x19a   : > { %v1185_v18 = vadd.f32 %v1184_v16, %v3147_v46 }
 0x19b   : > { %v1186_v19 = vpop.f32.mrf.mxu0  ;;  %v1411_v20 = vpop.f32.mrf.mxu1 }
 0x19c   : > { %v3325_v25 = vadd.f32 %v1409_v17, %v1185_v18 }
 0x19d   : > { %v1189_v24 = vpop.f32.mrf.mxu0  ;;  %v1414_v27 = vpop.f32.mrf.mxu1 }
 0x19e   : > { %v1190_v28 = vadd.f32 %v1189_v24, %v3154_v56 }
 0x19f   : > { %v1191_v30 = vpop.f32.mrf.mxu0  ;;  %v1416_v31 = vpop.f32.mrf.mxu1 }
 0x1a0   : > { %v3328_v34 = vadd.f32 %v1414_v27, %v1190_v28 }
 0x1a1   : > { %v1194_v36 = vpop.f32.mrf.mxu0  ;;  %v1419_v35 = vpop.f32.mrf.mxu1 }
 0x1a2   : > { %v1195_v39 = vadd.f32 %v1194_v36, %v3161_v3 }
 0x1a3   : > { %v1196_v40 = vpop.f32.mrf.mxu0  ;;  %v1421_v42 = vpop.f32.mrf.mxu1 }
 0x1a4   : > { %v3331_v45 = vadd.f32 %v1419_v35, %v1195_v39 }
 0x1a5   : > { %v1199_v46 = vpop.f32.mrf.mxu0  ;;  %v1424_v47 = vpop.f32.mrf.mxu1 }
 0x1a6   : > { %v1200_v48 = vadd.f32 %v1199_v46, %v3168_v12 }
 0x1a7   : > { %v1201_v52 = vpop.f32.mrf.mxu0  ;;  %v1426_v53 = vpop.f32.mrf.mxu1 }
 0x1a8   : > { %v3334_v57 = vadd.f32 %v1424_v47, %v1200_v48 }
 0x1a9   : > { %v1204_v56 = vpop.f32.mrf.mxu0  ;;  %v1429_v58 = vpop.f32.mrf.mxu1 }
 0x1aa   : > { %v1205_v60 = vadd.f32 %v1204_v56, %v3175_v22 }
 0x1ab   : > { %v1206_v61 = vpop.f32.mrf.mxu0  ;;  %v1431_v63 = vpop.f32.mrf.mxu1 }
 0x1ac   : > { %v3337_v5 = vadd.f32 %v1429_v58, %v1205_v60 }
 0x1ad   : > { %v1209_v3 = vpop.f32.mrf.mxu0  ;;  %v1434_v7 = vpop.f32.mrf.mxu1 }
 0x1ae   : > { %v1210_v8 = vadd.f32 %v1209_v3, %v3182_v33 }
 0x1af   : > { %v1211_v9 = vpop.f32.mrf.mxu0  ;;  %v1436_v10 = vpop.f32.mrf.mxu1 }
 0x1b0   : > { %v3340_v16 = vadd.f32 %v1434_v7, %v1210_v8 }
 0x1b1   : > { %v1214_v12 = vpop.f32.mrf.mxu0  ;;  %v1439_v17 = vpop.f32.mrf.mxu1 }
 0x1b2   : > { %v1215_v18 = vadd.f32 %v1214_v12, %v3189_v44 }
 0x1b3   : > { %v1216_v19 = vpop.f32.mrf.mxu0  ;;  %v1441_v20 = vpop.f32.mrf.mxu1 }
 0x1b4   : > { %v3343_v24 = vadd.f32 %v1439_v17, %v1215_v18 }
 0x1b5   : > { %v1219_v22 = vpop.f32.mrf.mxu0  ;;  %v1444_v27 = vpop.f32.mrf.mxu1 }
 0x1b6   : > { %v1220_v28 = vadd.f32 %v1219_v22, %v3196_v55 }
 0x1b7   : > { %v1221_v30 = vpop.f32.mrf.mxu0  ;;  %v1446_v31 = vpop.f32.mrf.mxu1 }
 0x1b8   : > { %v3346_v36 = vadd.f32 %v1444_v27, %v1220_v28 }
 0x1b9   : > { %v1224_v33 = vpop.f32.mrf.mxu0  ;;  %v1449_v35 = vpop.f32.mrf.mxu1 }
 0x1ba   : > { %v1225_v39 = vadd.f32 %v1224_v33, %v3203_v4 }
 0x1bb   : > { %v1226_v40 = vpop.f32.mrf.mxu0  ;;  %v1451_v42 = vpop.f32.mrf.mxu1 }
 0x1bc   : > { %v3349_v46 = vadd.f32 %v1449_v35, %v1225_v39 }
 0x1bd   : > { %v1229_v44 = vpop.f32.mrf.mxu0  ;;  %v1454_v47 = vpop.f32.mrf.mxu1 }
 0x1be   : > { %v1230_v48 = vadd.f32 %v1229_v44, %v3210_v14 }
 0x1bf   : > { %v1231_v52 = vpop.f32.mrf.mxu0  ;;  %v1456_v53 = vpop.f32.mrf.mxu1 }
 0x1c0   : > { %v3352_v56 = vadd.f32 %v1454_v47, %v1230_v48 }
 0x1c1   : > { %v1234_v55 = vpop.f32.mrf.mxu0  ;;  %v1459_v58 = vpop.f32.mrf.mxu1 }
 0x1c2   : > { %3646 = vst [vmem:[#allocation7_spill] sm:$0xff] %v3352_v56  ;;  %v1235_v60 = vadd.f32 %v1234_v55, %v3217_v26 }
 0x1c3   : > { %v1236_v61 = vpop.f32.mrf.mxu0  ;;  %v1461_v63 = vpop.f32.mrf.mxu1 }
 0x1c4   : > { %v3355_v3 = vadd.f32 %v1459_v58, %v1235_v60 }
 0x1c5   : > { %v1239_v4 = vpop.f32.mrf.mxu0  ;;  %v1464_v7 = vpop.f32.mrf.mxu1 }
 0x1c6   : > { %v1240_v8 = vadd.f32 %v1239_v4, %v3224_v38 }
 0x1c7   : > { %v1241_v9 = vpop.f32.mrf.mxu0  ;;  %v1466_v10 = vpop.f32.mrf.mxu1 }
 0x1c8   : > { %v3358_v12 = vadd.f32 %v1464_v7, %v1240_v8 }
 0x1c9   : > { %v1244_v14 = vpop.f32.mrf.mxu0  ;;  %v1469_v17 = vpop.f32.mrf.mxu1 }
 0x1ca   : > { %3647 = vst [vmem:[#allocation8_spill] sm:$0xff] %v3358_v12  ;;  %v1245_v18 = vadd.f32 %v1244_v14, %v3231_v50 }
 0x1cb   : > { %v1246_v19 = vpop.f32.mrf.mxu0  ;;  %v1471_v20 = vpop.f32.mrf.mxu1 }
 0x1cc   : > { %v3361_v22 = vadd.f32 %v1469_v17, %v1245_v18 }
 0x1cd   : > { %v1249_v26 = vpop.f32.mrf.mxu0  ;;  %v1474_v27 = vpop.f32.mrf.mxu1 }
 0x1ce   : > { %3648 = vst [vmem:[#allocation9_spill] sm:$0xff] %v3361_v22  ;;  %v1250_v28 = vadd.f32 %v1249_v26, %v3238_v62 }
 0x1cf   : > { %v1251_v30 = vpop.f32.mrf.mxu0  ;;  %v1476_v31 = vpop.f32.mrf.mxu1 }
 0x1d0   : > { %v3364_v33 = vadd.f32 %v1474_v27, %v1250_v28 }
 0x1d1   : > { %v1254_v38 = vpop.f32.mrf.mxu0  ;;  %v1479_v35 = vpop.f32.mrf.mxu1 }
 0x1d2   : > { %3649 = vst [vmem:[#allocation10_spill] sm:$0xff] %v3364_v33  ;;  %v1255_v39 = vadd.f32 %v1254_v38, %v3245_v11 }
 0x1d3   : > { %v1256_v40 = vpop.f32.mrf.mxu0  ;;  %v1481_v42 = vpop.f32.mrf.mxu1 }
 0x1d4   : > { %v3367_v44 = vadd.f32 %v1479_v35, %v1255_v39 }
 0x1d5   : > { %v1259_v50 = vpop.f32.mrf.mxu0  ;;  %v1484_v47 = vpop.f32.mrf.mxu1 }
 0x1d6   : > { %3650 = vst [vmem:[#allocation11_spill] sm:$0xff] %v3367_v44  ;;  %v1260_v48 = vadd.f32 %v1259_v50, %v3252_v23 }
 0x1d7   : > { %v1261_v52 = vpop.f32.mrf.mxu0  ;;  %v1486_v53 = vpop.f32.mrf.mxu1 }
 0x1d8   : > { %v3370_v55 = vadd.f32 %v1484_v47, %v1260_v48 }
 0x1d9   : > { %v1264_v62 = vpop.f32.mrf.mxu0  ;;  %v3372_v58 = vpop.f32.mrf.mxu1 }
 0x1db   : > { %v1266_v60 = vpop.f32.mrf.mxu0  ;;  %v1491_v61 = vpop.f32.mrf.mxu1 }
 0x1dd   : > { %v1269_v63 = vpop.f32.mrf.mxu0  ;;  %v3374_v4 = vpop.f32.mrf.mxu1 }
 0x1df   : > { %v1271_v11 = vpop.f32.mrf.mxu0  ;;  %v1496_v7 = vpop.f32.mrf.mxu1 }
 0x1e1   : > { %v1274_v8 = vpop.f32.mrf.mxu0  ;;  %v3376_v9 = vpop.f32.mrf.mxu1 }
 0x1e3   : > { %v1276_v10 = vpop.f32.mrf.mxu0  ;;  %v1501_v14 = vpop.f32.mrf.mxu1 }
 0x1e5   : > { %v1279_v23 = vpop.f32.mrf.mxu0  ;;  %v3378_v17 = vpop.f32.mrf.mxu1 }
 0x1e7   : > { %v1281_v18 = vpop.f32.mrf.mxu0  ;;  %v1506_v19 = vpop.f32.mrf.mxu1 }
 0x1e9   : > { %v1284_v20 = vpop.f32.mrf.mxu0  ;;  %v3380_v26 = vpop.f32.mrf.mxu1 }
 0x1eb   : > { %v1286_v27 = vpop.f32.mrf.mxu0  ;;  %v1511_v28 = vpop.f32.mrf.mxu1 }
 0x1ed   : > { %v3382_v30 = vpop.f32.mrf.mxu0  ;;  %v3384_v31 = vpop.f32.mrf.mxu1 }
 0x1ef   : > { %v1291_v38 = vpop.f32.mrf.mxu0  ;;  %v1516_v35 = vpop.f32.mrf.mxu1 }
 0x1f1   : > { %v1294_v39 = vpop.f32.mrf.mxu0  ;;  %v3386_v40 = vpop.f32.mrf.mxu1 }
 0x1f3   : > { %v1296_v42 = vpop.f32.mrf.mxu0  ;;  %v1521_v50 = vpop.f32.mrf.mxu1 }
 0x1f5   : > { %v3388_v47 = vpop.f32.mrf.mxu0  ;;  %v3390_v48 = vpop.f32.mrf.mxu1 }
 0x1f7   : > { %v1301_v52 = vpop.f32.mrf.mxu0  ;;  %v1526_v53 = vpop.f32.mrf.mxu1 }
 0x1f9   : > { %v3392_v60 = vpop.f32.mrf.mxu0  ;;  %v3394_v61 = vpop.f32.mrf.mxu1 }
 0x1fb   : > { %v1306_v11 = vpop.f32.mrf.mxu0  ;;  %v1531_v7 = vpop.f32.mrf.mxu1 }
 0x1fd   : > { %v3396_v10 = vpop.f32.mrf.mxu0  ;;  %v3398_v14 = vpop.f32.mrf.mxu1 }
 0x1ff   : > { %v1311_v18 = vpop.f32.mrf.mxu0  ;;  %v1536_v19 = vpop.f32.mrf.mxu1 }
 0x201   : > { %v3400_v27 = vpop.f32.mrf.mxu0  ;;  %v3402_v28 = vpop.f32.mrf.mxu1 }
 0x203   : > { %v1316_v38 = vpop.f32.mrf.mxu0  ;;  %v1541_v35 = vpop.f32.mrf.mxu1 }
 0x204   : > { %v1265_v35 = vadd.f32 %v1264_v62, %v3259_v37  ;;  %v1270_v37 = vadd.f32 %v1269_v63, %v3266_v51  ;;  %v1275_v62 = vadd.f32 %v1274_v8, %v3273_v0  ;;  %v1804_v51 = vld [vmem:[%s3425_s22 + $0x80] sm:$0xff] }
 0x205   : > { %v3404_v42 = vpop.f32.mrf.mxu0  ;;  %v3406_v50 = vpop.f32.mrf.mxu1 }
 0x206   : > { %v1495_v54 = vadd.f32 %v3374_v4, %v1270_v37 }
 0x207   : > { %v1321_v52 = vpop.f32.mrf.mxu0  ;;  %v1546_v53 = vpop.f32.mrf.mxu1 }
 0x209   : > { %v3408_v11 = vpop.f32.mrf.mxu0  ;;  %v3410_v7 = vpop.f32.mrf.mxu1 }
 0x20b   : > { %v1326_v18 = vpop.f32.mrf.mxu0  ;;  %v1551_v19 = vpop.f32.mrf.mxu1 }
 0x20d   : > { %v3412_v33 = vpop.f32.mrf.mxu0  ;;  %v3414_v44 = vpop.f32.mrf.mxu1 }
 0x20e   : > { %3651 = vst [vmem:[#allocation12_spill] sm:$0xff] %v3412_v33  ;;  %3652 = vst [vmem:[#allocation13_spill] sm:$0xff] %v3414_v44  ;;  %v1805_v44 = vld [vmem:[%s3425_s22 + $0x88] sm:$0xff] }
 0x20f   : > { %v1331_v12 = vpop.f32.mrf.mxu0  ;;  %v1556_v38 = vpop.f32.mrf.mxu1 }
 0x210   : > { %v1490_v12 = vadd.f32 %v3372_v58, %v1265_v35  ;;  %v1789_v38 = vld [vmem:[%s3425_s22 + $0x8] sm:$0xff]  ;;  %v1788_v58 = vld [vmem:[%s3425_s22] sm:$0xff] }
 0x211   : > { %v3418_v22 = vpop.f32.mrf.mxu0  ;;  %v3420_v52 = vpop.f32.mrf.mxu1 }
 0x212   : > { %3653 = vst [vmem:[#allocation14_spill] sm:$0xff] %v3418_v22  ;;  %3654 = vst [vmem:[#allocation15_spill] sm:$0xff] %v3420_v52  ;;  %v1285_v22 = vadd.f32 %v1284_v20, %v3287_v29 }
 0x213   : > { %v1336_v53 = vpop.f32.mrf.mxu0  ;;  %v1561_v18 = vpop.f32.mrf.mxu1 }
 0x214   : > { %v1280_v18 = vadd.f32 %v1279_v23, %v3280_v15  ;;  %v1295_v15 = vadd.f32 %v1294_v39, %v3295_v49  ;;  %v1790_v49 = vld [vmem:[%s3425_s22 + $0x10] sm:$0xff] }
 0x215   : > { %v2103_v19 = vpop.f32.mrf.mxu0  ;;  %v2127_v52 = vpop.f32.mrf.mxu1 }
 0x216   : > { %v1635_v56 = vadd.f32 %v2103_v19, %v3325_v25  ;;  %v1715_v53 = vadd.f32 %v2127_v52, %v1490_v12  ;;  %v1500_v25 = vadd.f32 %v3376_v9, %v1275_v62  ;;  %v1791_v12 = vld [vmem:[%s3425_s22 + $0x18] sm:$0xff]  ;;  %v1806_v62 = vld [vmem:[%s3425_s22 + $0x90] sm:$0xff]  ;;  %v1520_v19 = vadd.f32 %v3386_v40, %v1295_v15 }
 0x217   : > { %v1629_v1 = vpop.f32.mrf.mxu0  ;;  %v1709_v35 = vpop.f32.mrf.mxu1  ;;  %v1305_v40 = vadd.f32 %v3392_v60, %v3301_v6 }
 0x218   : > { %v1821_v0 = vadd.f32 %v1789_v38, %v1635_v56  ;;  %v1837_v63 = vadd.f32 %v1805_v44, %v1715_v53  ;;  %v1630_v8 = vadd.f32 %v1629_v1, %v3322_v2  ;;  %v1710_v33 = vadd.f32 %v1709_v35, %v3370_v55  ;;  %v1807_v1 = vld [vmem:[%s3425_s22 + $0x98] sm:$0xff] }
 0x219   : > { %v2106_v29 = vpop.f32.mrf.mxu0  ;;  %v2130_v23 = vpop.f32.mrf.mxu1  ;;  %v1505_v2 = vadd.f32 %v3378_v17, %v1280_v18  ;;  %v1510_v55 = vadd.f32 %v3380_v26, %v1285_v22  ;;  %v1290_v26 = vadd.f32 %v3382_v30, %v3292_v41  ;;  %v1300_v30 = vadd.f32 %v3388_v47, %v3298_v59 }
 0x21a   : > { %v1853_v20 = vmax.f32 %v1821_v0, 0.0  ;;  %v1869_v52 = vmax.f32 %v1837_v63, 0.0  ;;  %v1820_v56 = vadd.f32 %v1788_v58, %v1630_v8  ;;  %v1836_v44 = vadd.f32 %v1804_v51, %v1710_v33  ;;  %v1793_v58 = vld [vmem:[%s3425_s22 + $0x28] sm:$0xff] }
 0x21b   : > { %v1645_v4 = vadd.f32 %v2106_v29, %v3331_v45  ;;  %v1725_v9 = vadd.f32 %v2130_v23, %v1500_v25  ;;  %v1639_v37 = vpop.f32.mrf.mxu0  ;;  %v1719_v39 = vpop.f32.mrf.mxu1  ;;  %v1809_v51 = vld [vmem:[%s3425_s22 + $0xa8] sm:$0xff]  ;;  %v1315_v59 = vadd.f32 %v3400_v27, %v3307_v21 }
 0x21c   : > { %1886 = vst.msk [vmem:[%s3455_s27 + $0x8] sm:$0xff] %vm1884_vm0, %v1853_v20  ;;  %1902 = vst.msk [vmem:[%s3455_s27 + $0x88] sm:$0xff] %vm1884_vm0, %v1869_v52  ;;  %v1852_v22 = vmax.f32 %v1820_v56, 0.0  ;;  %v1868_v33 = vmax.f32 %v1836_v44, 0.0  ;;  %v1640_v45 = vadd.f32 %v1639_v37, %v3328_v34  ;;  %v1720_v17 = vadd.f32 %v1719_v39, %v1495_v54  ;;  %v1792_v52 = vld [vmem:[%s3425_s22 + $0x20] sm:$0xff]  ;;  %v1794_v39 = vld [vmem:[%s3425_s22 + $0x30] sm:$0xff] }
 0x21d   : > { %v1823_v38 = vadd.f32 %v1791_v12, %v1645_v4  ;;  %v1839_v53 = vadd.f32 %v1807_v1, %v1725_v9  ;;  %v2109_v18 = vpop.f32.mrf.mxu0  ;;  %v2133_v35 = vpop.f32.mrf.mxu1  ;;  %v1808_v56 = vld [vmem:[%s3425_s22 + $0xa0] sm:$0xff]  ;;  %v1515_v44 = vadd.f32 %v3384_v31, %v1290_v26  ;;  %v1795_v12 = vld [vmem:[%s3425_s22 + $0x38] sm:$0xff] }
 0x21e   : > { %1885 = vst.msk [vmem:[%s3455_s27] sm:$0xff] %vm1884_vm0, %v1852_v22  ;;  %1901 = vst.msk [vmem:[%s3455_s27 + $0x80] sm:$0xff] %vm1884_vm0, %v1868_v33  ;;  %v1822_v0 = vadd.f32 %v1790_v49, %v1640_v45  ;;  %v1838_v34 = vadd.f32 %v1806_v62, %v1720_v17  ;;  %v1655_v54 = vadd.f32 %v2109_v18, %v3337_v5  ;;  %v1810_v22 = vld [vmem:[%s3425_s22 + $0xb0] sm:$0xff] }
 0x21f   : > { %v1735_v41 = vadd.f32 %v2133_v35, %v1510_v55  ;;  %v1855_v63 = vmax.f32 %v1823_v38, 0.0  ;;  %v1871_v8 = vmax.f32 %v1839_v53, 0.0  ;;  %v1649_v25 = vpop.f32.mrf.mxu0  ;;  %v1729_v15 = vpop.f32.mrf.mxu1  ;;  %v1811_v55 = vld [vmem:[%s3425_s22 + $0xb8] sm:$0xff]  ;;  %v1540_v17 = vadd.f32 %v3402_v28, %v1315_v59 }
 0x220   : > { %v1854_v29 = vmax.f32 %v1822_v0, 0.0  ;;  %v1870_v23 = vmax.f32 %v1838_v34, 0.0  ;;  %v1825_v5 = vadd.f32 %v1793_v58, %v1655_v54  ;;  %v1650_v6 = vadd.f32 %v1649_v25, %v3334_v57  ;;  %v1813_v0 = vld [vmem:[%s3425_s22 + $0xc8] sm:$0xff] }
 0x221   : > { %v1841_v20 = vadd.f32 %v1809_v51, %v1735_v41  ;;  %1888 = vst.msk [vmem:[%s3455_s27 + $0x18] sm:$0xff] %vm1884_vm0, %v1855_v63  ;;  %1904 = vst.msk [vmem:[%s3455_s27 + $0x98] sm:$0xff] %vm1884_vm0, %v1871_v8  ;;  %v1730_v47 = vadd.f32 %v1729_v15, %v1505_v2  ;;  %v2112_v60 = vpop.f32.mrf.mxu0  ;;  %v2136_v1 = vpop.f32.mrf.mxu1  ;;  %v1525_v57 = vadd.f32 %v3390_v48, %v1300_v30  ;;  %v1797_v51 = vld [vmem:[%s3425_s22 + $0x48] sm:$0xff]  ;;  %v1796_v41 = vld [vmem:[%s3425_s22 + $0x40] sm:$0xff] }
 0x222   : > { %1887 = vst.msk [vmem:[%s3455_s27 + $0x10] sm:$0xff] %vm1884_vm0, %v1854_v29  ;;  %1903 = vst.msk [vmem:[%s3455_s27 + $0x90] sm:$0xff] %vm1884_vm0, %v1870_v23  ;;  %v1857_v21 = vmax.f32 %v1825_v5, 0.0  ;;  %v1665_v27 = vadd.f32 %v2112_v60, %v3343_v24  ;;  %v1745_v4 = vadd.f32 %v2136_v1, %v1520_v19  ;;  %v1530_v2 = vadd.f32 %v3394_v61, %v1305_v40  ;;  %v1812_v40 = vld [vmem:[%s3425_s22 + $0xc0] sm:$0xff]  ;;  %v1799_v15 = vld [vmem:[%s3425_s22 + $0x58] sm:$0xff] }
 0x223   : > { %v1873_v31 = vmax.f32 %v1841_v20, 0.0  ;;  %v1824_v9 = vadd.f32 %v1792_v52, %v1650_v6  ;;  %v1840_v37 = vadd.f32 %v1808_v56, %v1730_v47  ;;  %v1659_v49 = vpop.f32.mrf.mxu0  ;;  %v1739_v62 = vpop.f32.mrf.mxu1  ;;  %v1310_v61 = vadd.f32 %v3396_v10, %v3304_v13  ;;  %v1815_v23 = vld [vmem:[%s3425_s22 + $0xd8] sm:$0xff] }
 0x224   : > { %1890 = vst.msk [vmem:[%s3455_s27 + $0x28] sm:$0xff] %vm1884_vm0, %v1857_v21  ;;  %v1827_v33 = vadd.f32 %v1795_v12, %v1665_v27  ;;  %v1843_v45 = vadd.f32 %v1811_v55, %v1745_v4  ;;  %v1660_v24 = vadd.f32 %v1659_v49, %v3340_v16  ;;  %v1740_v48 = vadd.f32 %v1739_v62, %v1515_v44  ;;  %v1814_v21 = vld [vmem:[%s3425_s22 + $0xd0] sm:$0xff]  ;;  %v3656_v27 = vld [vmem:[#allocation12_spill] sm:$0xff] }
 0x225   : > { %1906 = vst.msk [vmem:[%s3455_s27 + $0xa8] sm:$0xff] %vm1884_vm0, %v1873_v31  ;;  %v1856_v26 = vmax.f32 %v1824_v9, 0.0  ;;  %v1872_v19 = vmax.f32 %v1840_v37, 0.0  ;;  %v2115_v38 = vpop.f32.mrf.mxu0  ;;  %v2139_v53 = vpop.f32.mrf.mxu1  ;;  %v1320_v34 = vadd.f32 %v3404_v42, %v3310_v32  ;;  %v1325_v13 = vadd.f32 %v3408_v11, %v3313_v43  ;;  %v3655_v31 = vld [vmem:[#allocation5_spill] sm:$0xff] }
 0x226   : > { %v1859_v18 = vmax.f32 %v1827_v33, 0.0  ;;  %v1875_v58 = vmax.f32 %v1843_v45, 0.0  ;;  %v1826_v35 = vadd.f32 %v1794_v39, %v1660_v24  ;;  %v1842_v16 = vadd.f32 %v1810_v22, %v1740_v48  ;;  %v1801_v39 = vld [vmem:[%s3425_s22 + $0x68] sm:$0xff]  ;;  %v3660_v24 = vld [vmem:[#allocation9_spill] sm:$0xff] }
 0x227   : > { %1889 = vst.msk [vmem:[%s3455_s27 + $0x20] sm:$0xff] %vm1884_vm0, %v1856_v26  ;;  %1905 = vst.msk [vmem:[%s3455_s27 + $0xa0] sm:$0xff] %vm1884_vm0, %v1872_v19  ;;  %v1675_v10 = vadd.f32 %v2115_v38, %v3349_v46  ;;  %v1755_v28 = vadd.f32 %v2139_v53, %v1530_v2  ;;  %v1669_v54 = vpop.f32.mrf.mxu0  ;;  %v1749_v30 = vpop.f32.mrf.mxu1  ;;  %v1535_v46 = vadd.f32 %v3398_v14, %v1310_v61  ;;  %v3659_v2 = vld [vmem:[#allocation7_spill] sm:$0xff]  ;;  %v1817_v22 = vld [vmem:[%s3425_s22 + $0xe8] sm:$0xff] }
 0x228   : > { %1892 = vst.msk [vmem:[%s3455_s27 + $0x38] sm:$0xff] %vm1884_vm0, %v1859_v18  ;;  %1908 = vst.msk [vmem:[%s3455_s27 + $0xb8] sm:$0xff] %vm1884_vm0, %v1875_v58  ;;  %v1858_v32 = vmax.f32 %v1826_v35, 0.0  ;;  %v1874_v43 = vmax.f32 %v1842_v16, 0.0  ;;  %v1670_v42 = vadd.f32 %v1669_v54, %v3346_v36  ;;  %v1750_v11 = vadd.f32 %v1749_v30, %v1525_v57  ;;  %v3658_v57 = vld [vmem:[#allocation14_spill] sm:$0xff]  ;;  %v1800_v38 = vld [vmem:[%s3425_s22 + $0x60] sm:$0xff] }
 0x229   : > { %v1829_v63 = vadd.f32 %v1797_v51, %v1675_v10  ;;  %v1845_v8 = vadd.f32 %v1813_v0, %v1755_v28  ;;  %v2118_v25 = vpop.f32.mrf.mxu0  ;;  %v2142_v29 = vpop.f32.mrf.mxu1  ;;  %v1545_v14 = vadd.f32 %v3406_v50, %v1320_v34  ;;  %v1550_v56 = vadd.f32 %v3410_v7, %v1325_v13  ;;  %v3657_v50 = vld [vmem:[#allocation6_spill] sm:$0xff]  ;;  %v1816_v18 = vld [vmem:[%s3425_s22 + $0xe0] sm:$0xff]  ;;  %v3661_v16 = vld [vmem:[#allocation8_spill] sm:$0xff] }
 0x22a   : > { %1891 = vst.msk [vmem:[%s3455_s27 + $0x30] sm:$0xff] %vm1884_vm0, %v1858_v32  ;;  %1907 = vst.msk [vmem:[%s3455_s27 + $0xb0] sm:$0xff] %vm1884_vm0, %v1874_v43  ;;  %v1828_v5 = vadd.f32 %v1796_v41, %v1670_v42  ;;  %v1844_v20 = vadd.f32 %v1812_v40, %v1750_v11  ;;  %v1685_v52 = vadd.f32 %v2118_v25, %v3355_v3  ;;  %v1798_v3 = vld [vmem:[%s3425_s22 + $0x50] sm:$0xff]  ;;  %v3662_v34 = vld [vmem:[#allocation13_spill] sm:$0xff] }
 0x22b   : > { %v1765_v36 = vadd.f32 %v2142_v29, %v1540_v17  ;;  %v1861_v44 = vmax.f32 %v1829_v63, 0.0  ;;  %v1877_v59 = vmax.f32 %v1845_v8, 0.0  ;;  %v1679_v6 = vpop.f32.mrf.mxu0  ;;  %v1759_v47 = vpop.f32.mrf.mxu1  ;;  %v1330_v4 = vadd.f32 %v3656_v27, %v3655_v31  ;;  %v3663_v10 = vld [vmem:[#allocation15_spill] sm:$0xff]  ;;  %v1819_v63 = vld [vmem:[%s3425_s22 + $0xf8] sm:$0xff] }
 0x22c   : > { %v1860_v60 = vmax.f32 %v1828_v5, 0.0  ;;  %v1876_v12 = vmax.f32 %v1844_v20, 0.0  ;;  %v1831_v1 = vadd.f32 %v1799_v15, %v1685_v52  ;;  %v1335_v7 = vadd.f32 %v3658_v57, %v3657_v50  ;;  %v3664_v8 = vld [vmem:[#allocation11_spill] sm:$0xff] }
 0x22d   : > { %v1847_v55 = vadd.f32 %v1815_v23, %v1765_v36  ;;  %1894 = vst.msk [vmem:[%s3455_s27 + $0x48] sm:$0xff] %vm1884_vm0, %v1861_v44  ;;  %1910 = vst.msk [vmem:[%s3455_s27 + $0xc8] sm:$0xff] %vm1884_vm0, %v1877_v59  ;;  %v1680_v9 = vadd.f32 %v1679_v6, %v3659_v2  ;;  %v1760_v37 = vadd.f32 %v1759_v47, %v1535_v46  ;;  %v2121_v49 = vpop.f32.mrf.mxu0  ;;  %v2145_v62 = vpop.f32.mrf.mxu1  ;;  %v1803_v46 = vld [vmem:[%s3425_s22 + $0x78] sm:$0xff]  ;;  %v1802_v23 = vld [vmem:[%s3425_s22 + $0x70] sm:$0xff] }
 0x22e   : > { %1893 = vst.msk [vmem:[%s3455_s27 + $0x40] sm:$0xff] %vm1884_vm0, %v1860_v60  ;;  %1909 = vst.msk [vmem:[%s3455_s27 + $0xc0] sm:$0xff] %vm1884_vm0, %v1876_v12  ;;  %v1863_v33 = vmax.f32 %v1831_v1, 0.0  ;;  %v1695_v48 = vadd.f32 %v2121_v49, %v3660_v24  ;;  %v1775_v61 = vadd.f32 %v2145_v62, %v1550_v56  ;;  %v1555_v13 = vadd.f32 %v3662_v34, %v1330_v4  ;;  %v1818_v20 = vld [vmem:[%s3425_s22 + $0xf0] sm:$0xff] }
 0x22f   : > { %v1879_v45 = vmax.f32 %v1847_v55, 0.0  ;;  %v1830_v17 = vadd.f32 %v1798_v3, %v1680_v9  ;;  %v1846_v26 = vadd.f32 %v1814_v21, %v1760_v37  ;;  %v1689_v19 = vpop.f32.mrf.mxu0  ;;  %v1769_v53 = vpop.f32.mrf.mxu1  ;;  %v1560_v28 = vadd.f32 %v3663_v10, %v1335_v7 }
 0x230   : > { %1896 = vst.msk [vmem:[%s3455_s27 + $0x58] sm:$0xff] %vm1884_vm0, %v1863_v33  ;;  %v1833_v58 = vadd.f32 %v1801_v39, %v1695_v48  ;;  %v1849_v35 = vadd.f32 %v1817_v22, %v1775_v61  ;;  %v1690_v51 = vadd.f32 %v1689_v19, %v3661_v16  ;;  %v1770_v0 = vadd.f32 %v1769_v53, %v1545_v14  ;;  %v3665_v14 = vld [vmem:[#allocation10_spill] sm:$0xff] }
 0x231   : > { %1912 = vst.msk [vmem:[%s3455_s27 + $0xd8] sm:$0xff] %vm1884_vm0, %v1879_v45  ;;  %v1862_v54 = vmax.f32 %v1830_v17, 0.0  ;;  %v1878_v41 = vmax.f32 %v1846_v26, 0.0  ;;  %v2124_v30 = vpop.f32.mrf.mxu0  ;;  %v2148_v40 = vpop.f32.mrf.mxu1 }
 0x232   : > { %v1865_v32 = vmax.f32 %v1833_v58, 0.0  ;;  %v1881_v43 = vmax.f32 %v1849_v35, 0.0  ;;  %v1832_v42 = vadd.f32 %v1800_v38, %v1690_v51  ;;  %v1848_v11 = vadd.f32 %v1816_v18, %v1770_v0 }
 0x233   : > { %1895 = vst.msk [vmem:[%s3455_s27 + $0x50] sm:$0xff] %vm1884_vm0, %v1862_v54  ;;  %1911 = vst.msk [vmem:[%s3455_s27 + $0xd0] sm:$0xff] %vm1884_vm0, %v1878_v41  ;;  %v1705_v25 = vadd.f32 %v2124_v30, %v3664_v8  ;;  %v1785_v15 = vadd.f32 %v2148_v40, %v1560_v28  ;;  %v1699_v29 = vpop.f32.mrf.mxu0  ;;  %v1779_v5 = vpop.f32.mrf.mxu1 }
 0x234   : > { %1898 = vst.msk [vmem:[%s3455_s27 + $0x68] sm:$0xff] %vm1884_vm0, %v1865_v32  ;;  %1914 = vst.msk [vmem:[%s3455_s27 + $0xe8] sm:$0xff] %vm1884_vm0, %v1881_v43  ;;  %v1864_v52 = vmax.f32 %v1832_v42, 0.0  ;;  %v1880_v36 = vmax.f32 %v1848_v11, 0.0  ;;  %v1700_v56 = vadd.f32 %v1699_v29, %v3665_v14  ;;  %v1780_v44 = vadd.f32 %v1779_v5, %v1555_v13 }
 0x235   : > { %v1835_v59 = vadd.f32 %v1803_v46, %v1705_v25  ;;  %v1851_v6 = vadd.f32 %v1819_v63, %v1785_v15 }
 0x236   : > { %1897 = vst.msk [vmem:[%s3455_s27 + $0x60] sm:$0xff] %vm1884_vm0, %v1864_v52  ;;  %1913 = vst.msk [vmem:[%s3455_s27 + $0xe0] sm:$0xff] %vm1884_vm0, %v1880_v36  ;;  %v1834_v47 = vadd.f32 %v1802_v23, %v1700_v56  ;;  %v1850_v60 = vadd.f32 %v1818_v20, %v1780_v44 }
 0x237   : > { %v1867_v12 = vmax.f32 %v1835_v59, 0.0  ;;  %v1883_v1 = vmax.f32 %v1851_v6, 0.0 }
 0x238   : > { %v1866_v55 = vmax.f32 %v1834_v47, 0.0  ;;  %v1882_v3 = vmax.f32 %v1850_v60, 0.0 }
 0x239   : > { %1900 = vst.msk [vmem:[%s3455_s27 + $0x78] sm:$0xff] %vm1884_vm0, %v1867_v12  ;;  %1916 = vst.msk [vmem:[%s3455_s27 + $0xf8] sm:$0xff] %vm1884_vm0, %v1883_v1 }
 0x23a   : > { %1899 = vst.msk [vmem:[%s3455_s27 + $0x70] sm:$0xff] %vm1884_vm0, %v1866_v55  ;;  %1915 = vst.msk [vmem:[%s3455_s27 + $0xf0] sm:$0xff] %vm1884_vm0, %v1882_v3 }
 0x23b   : > { %2237 = shalt.err (!%p2234_p3)
}
 0x23c   : > { %s2238_s13 = scalar_lea.hbm %s3583_s6, 4096  ;;  %s2242_s20 = scalar_lea.hbm %s3641_s4, 8192 }
 0x23d   : > { %p2239_p4 = scmp.ne.s32.totalorder %s3583_s6, %s2238_s13  ;;  %p2243_p9 = scmp.lt.s32.totalorder %s3583_s6, %s3641_s4 }
 0x23e   : > { %p2244_p10 = scmp.lt.s32.totalorder %s2242_s20, %s2238_s13 }
 0x23f   : > { %p2240_p7 = pnand %p2239_p4, %p2353_p5 }
 0x240   : > { %p2245_p11 = por %p2244_p10, %p2243_p9 }
 0x241   : > { %p2241_p8 = pneg %p2240_p7 }
 0x243   : > { %p2246_p12 = pnand %p2245_p11, %p2241_p8 }
 0x245   : > { %2249 = shalt.err (!%p2246_p12)
}
 0x246   : > { %s2288_s8 = smov 128   ;;  %s2289_s27 = smov 8  }
 0x247   : > { %2182 = dma.vmem_to_hbm [thread:$0]  (%p2353_p5), %s3585_s29, 4096, %s3583_s6, %s3597_s19, %s2288_s8, %s2288_s8, %s2289_s27  }
 0x248 PF: > { %p2188_p13 = scmp.ge.s32.totalorder %s2284_s18, 2  ;;  %s1946_s28 = sand.u32 1, %s2272_s15  }
 0x249   : > { %s1947_s30 = scalar_lea.sflag [#allocation3], %s1946_s28 }
 0x24a   : > { %p2185_p0 = pnand %p2188_p13, %p2357_p6 }
 0x24c   : > { %p2186_p1 = pneg %p2185_p0 }
 0x24e   : > { %2267 = dma.done.wait (%p2186_p1), %s1947_s30, 4096  }
 0x24f   : > { %2269 = vsyncadd (%p2186_p1), %s1947_s30, 4294963200  ;;  %p14_p2 = scmp.ge.s32.totalorder %s2340_s21, 4   ;;  %s3666_s15 = smov %s2276_s16 }
 0x250   : > { %s3667_s16 = smov %s2280_s17  ;;  %s3668_s17 = smov %s2351_s24 }
 0x251   : > { %s3669_s18 = smov %s2340_s21  ;;  %16 = sbr.rel (!%p14_p2) target bundleno = 3 (0x3), region = 74 }
 0x256   :  { %1952 = vsyncpa [#allocation3], 1 }
 0x257   :  { %1954 = vsyncpa [#allocation3 + $0x1], 1 }

</bundles_post_ra>
